<compile_context>
chip_gen: v5e
topology: v5e:2x2
jax: 0.10.0
libtpu: 0.0.40
codegen_flags: <defaults>
</compile_context>

<pallas_src>
import jax
import jax.numpy as jnp
from jax import lax
from jax.experimental import pallas as pl
from jax.experimental.pallas import tpu as pltpu


def _round_up(x, m):
    return ((x + m - 1) // m) * m


def _full_spec(shape):
    # Whole-array block; grid=() so the index_map takes no grid args.
    return pl.BlockSpec(shape, lambda: (0,) * len(shape))


# ----------------------------------------------------------------------------
# Kernel 1: conv1 (im2col matmul) + bias + ReLU + 2x2 max pool, lane-dense out
# ----------------------------------------------------------------------------
def _conv1_relu_pool_kernel(p_ref, w_ref, b_ref, o_ref):
    """p: (K, 4*M) bf16  -- 4 pool-sibling patch blocks concatenated along lanes
    w: (6, K) bf16, b: (6, 1) f32, o: (6, M) bf16 (cols = b*14*14 + y*14 + x)."""
    m = o_ref.shape[1]
    # One MXU stream over all four siblings.
    z = jnp.dot(w_ref[...], p_ref[...], preferred_element_type=jnp.float32)
    z = jnp.maximum(z + b_ref[...], 0.0)
    # 2x2 max pool == elementwise max over the 4 lane-aligned sibling segments.
    pooled = jnp.maximum(jnp.maximum(z[:, 0:m], z[:, m:2 * m]),
                         jnp.maximum(z[:, 2 * m:3 * m], z[:, 3 * m:4 * m]))
    o_ref[...] = pooled.astype(o_ref.dtype)


def conv1_relu_pool(p, w, b, m_seg):
    K, M4 = p.shape
    N = w.shape[0]
    assert M4 == 4 * m_seg
    return pl.pallas_call(
        _conv1_relu_pool_kernel,
        out_shape=jax.ShapeDtypeStruct((N, m_seg), jnp.bfloat16),
        in_specs=[_full_spec((K, M4)), _full_spec((N, K)), _full_spec((N, 1))],
        out_specs=_full_spec((N, m_seg)),
    )(p, w, b)


# ----------------------------------------------------------------------------
# Kernel 2: conv2 + bias + ReLU + 2x2 max pool + flatten + fc1/fc2/fc3 (fused)
# ----------------------------------------------------------------------------
def _conv2_mlp_kernel(pt_ref, w2t_ref, b2_ref, w1_ref, b1_ref,
                      w2f_ref, b2f_ref, w3f_ref, b3f_ref, o_ref, pool_ref):
    """pt : (4*n_sp*seg_b, K2) bf16  transposed im2col patches, rows ordered
            (sibling, spatial, batch) with the batch group padded to seg_b rows
    w2t: (K2, 16) bf16, b2: (1, 16) f32
    w1 : (n_sp*16, 120) f32, rows ordered (spatial, channel)
    o  : (B, 10) f32,  pool_ref: (n_sp*seg_b, 16) f32 VMEM scratch."""
    bsz = o_ref.shape[0]
    cout = w2t_ref.shape[1]
    n_sp = w1_ref.shape[0] // cout          # 25 pooled spatial positions
    seg = pool_ref.shape[0]                 # n_sp * seg_b rows per sibling
    seg_b = seg // n_sp                     # batch rows padded to sublane tile

    # conv2 in transposed orientation: one MXU stream over all four siblings.
    z = jnp.dot(pt_ref[...], w2t_ref[...], preferred_element_type=jnp.float32)
    z = jnp.maximum(z + b2_ref[...], 0.0)
    # 2x2 max pool == max over the 4 sublane-aligned sibling row segments.
    pooled = jnp.maximum(jnp.maximum(z[0:seg], z[seg:2 * seg]),
                         jnp.maximum(z[2 * seg:3 * seg], z[3 * seg:4 * seg]))
    pool_ref[...] = pooled                  # rows = s*seg_b + b, cols = cout

    # Flatten + fc1 without any in-kernel lane relayout:
    #   flat[b, c*25 + s] = pooled[s*seg_b + b, c]
    # accumulated as n_sp tiny (B, 16) @ (16, 120) dots; w1 rows are
    # pre-permuted to (s, c) order in prepare_params().
    h = jnp.zeros((bsz, w1_ref.shape[1]), jnp.float32)
    for s in range(n_sp):
        h = h + jnp.dot(pool_ref[pl.ds(s * seg_b, bsz), :],
                        w1_ref[pl.ds(s * cout, cout), :],
                        preferred_element_type=jnp.float32)
    # Post-flatten ReLU of the spec is a no-op (pool of ReLU outputs >= 0).
    h = jnp.maximum(h + b1_ref[...], 0.0)
    h = jnp.maximum(
        jnp.dot(h, w2f_ref[...], preferred_element_type=jnp.float32)
        + b2f_ref[...], 0.0)
    o_ref[...] = (jnp.dot(h, w3f_ref[...], preferred_element_type=jnp.float32)
                  + b3f_ref[...])


def conv2_mlp(pt, w2t, b2, w1p, b1, w2f, b2f, w3f, b3f, batch, seg):
    NC = w3f.shape[1]
    return pl.pallas_call(
        _conv2_mlp_kernel,
        out_shape=jax.ShapeDtypeStruct((batch, NC), jnp.float32),
        in_specs=[_full_spec(pt.shape), _full_spec(w2t.shape),
                  _full_spec(b2.shape), _full_spec(w1p.shape),
                  _full_spec(b1.shape), _full_spec(w2f.shape),
                  _full_spec(b2f.shape), _full_spec(w3f.shape),
                  _full_spec(b3f.shape)],
        out_specs=_full_spec((batch, NC)),
        scratch_shapes=[pltpu.VMEM((seg, w2t.shape[1]), jnp.float32)],
    )(pt, w2t, b2, w1p, b1, w2f, b2f, w3f, b3f)


# ----------------------------------------------------------------------------
# Forward pass (glue = patch extraction + tiny reshapes only)
# ----------------------------------------------------------------------------
def base_model_forward(x_nchw, params):
    B = x_nchw.shape[0]
    x = x_nchw.astype(jnp.bfloat16)

    # ---- Conv2D1 (3->6, k=5) + ReLU + MaxPool 2x2 : one fused Pallas call ----
    # im2col patches for every conv-output position; K rows ordered (ci,dy,dx),
    # matching torch conv.weight.reshape(cout, -1).
    pat1 = lax.conv_general_dilated_patches(
        x, (5, 5), (1, 1), 'VALID',
        dimension_numbers=('NCHW', 'OIHW', 'CNHW'))          # (75, B, 28, 28)
    K1, Ho1, Wo1 = pat1.shape[0], pat1.shape[2], pat1.shape[3]
    assert Ho1 % 2 == 0 and Wo1 % 2 == 0                     # pool covers all
    hp1, wp1 = Ho1 // 2, Wo1 // 2
    m1 = B * hp1 * wp1
    m1_seg = _round_up(m1, 128)                              # lane-aligned seg
    # Group the 4 pool siblings; pad each segment inside the (already
    # materializing) relayout; concatenate along lanes for one MXU stream.
    pat1 = pat1.reshape(K1, B, hp1, 2, wp1, 2)
    pat1 = pat1.transpose(0, 3, 5, 1, 2, 4).reshape(K1, 4, m1)
    pat1 = jnp.pad(pat1, ((0, 0), (0, 0), (0, m1_seg - m1)))
    p1 = pat1.reshape(K1, 4 * m1_seg)

    y1 = conv1_relu_pool(p1, params['cw1'], params['cb1'], m1_seg)
    # Padded lane columns (>= m1) hold max(bias, 0) garbage -- sliced off here.
    a1 = y1[:, :m1].reshape(6, B, hp1, wp1)                  # CNHW, bf16

    # ---- Conv2D2 (6->16, k=5) + ReLU + pool + flatten + fc1/fc2/fc3 ----
    pat2 = lax.conv_general_dilated_patches(
        a1, (5, 5), (1, 1), 'VALID',
        dimension_numbers=('CNHW', 'OIHW', 'CNHW'))          # (150, B, 10, 10)
    K2, Ho2, Wo2 = pat2.shape[0], pat2.shape[2], pat2.shape[3]
    assert Ho2 % 2 == 0 and Wo2 % 2 == 0
    hp2, wp2 = Ho2 // 2, Wo2 // 2
    n_sp = hp2 * wp2                                         # 25
    seg_b = _round_up(B, 8)                                  # sublane-aligned
    # Transposed-orientation patch matrix: rows = (sibling, spatial, batch).
    pat2 = pat2.reshape(K2, B, hp2, 2, wp2, 2)
    pat2 = pat2.transpose(3, 5, 2, 4, 1, 0).reshape(4, n_sp, B, K2)
    pat2 = jnp.pad(pat2, ((0, 0), (0, 0), (0, seg_b - B), (0, 0)))
    pt = pat2.reshape(4 * n_sp * seg_b, K2)

    return conv2_mlp(pt, params['cw2t'], params['cb2'],
                     params['fw1p'], params['fb1'],
                     params['fw2'], params['fb2'],
                     params['fw3'], params['fb3'],
                     B, n_sp * seg_b)


# ----------------------------------------------------------------------------
# Parameters (torch layouts -> kernel layouts, one-time outside jit)
# ----------------------------------------------------------------------------
def prepare_params(tp):
    """tp holds tensors in exact torch layouts (conv.weight (O,I,kh,kw),
    linear.weight (out,in), biases 1-D).  Returns kernel-layout params."""
    cw1 = tp['conv1_w'].reshape(6, -1).astype(jnp.bfloat16)        # (6, 75)
    cb1 = tp['conv1_b'].reshape(-1, 1).astype(jnp.float32)         # (6, 1)
    cw2t = tp['conv2_w'].reshape(16, -1).T.astype(jnp.bfloat16)    # (150, 16)
    cb2 = tp['conv2_b'].reshape(1, -1).astype(jnp.float32)         # (1, 16)
    # fc1.weight is (120, 400) with input index c*25 + s (torch NCHW flatten);
    # the kernel wants rows ordered (s, c): fw1p[s*16 + c, j] = fc1.w[j, c*25+s]
    fw1p = (tp['fc1_w'].reshape(120, 16, 25).transpose(2, 1, 0)
            .reshape(400, 120).astype(jnp.float32))
    fb1 = tp['fc1_b'].reshape(1, -1).astype(jnp.float32)
    fw2 = tp['fc2_w'].T.astype(jnp.float32)                        # (120, 84)
    fb2 = tp['fc2_b'].reshape(1, -1).astype(jnp.float32)
    fw3 = tp['fc3_w'].T.astype(jnp.float32)                        # (84, 10)
    fb3 = tp['fc3_b'].reshape(1, -1).astype(jnp.float32)
    return dict(cw1=cw1, cb1=cb1, cw2t=cw2t, cb2=cb2,
                fw1p=fw1p, fb1=fb1, fw2=fw2, fb2=fb2, fw3=fw3, fb3=fb3)


def init_torch_params(key):
    """Deterministic synthetic params mirroring PyTorch default init bounds,
    in exact torch tensor layouts."""
    def u(k, shape, fan_in):
        bound = 1.0 / jnp.sqrt(jnp.float32(fan_in))
        return jax.random.uniform(k, shape, jnp.float32, -bound, bound)

    ks = jax.random.split(key, 10)
    return {
        'conv1_w': u(ks[0], (6, 3, 5, 5), 75),   'conv1_b': u(ks[1], (6,), 75),
        'conv2_w': u(ks[2], (16, 6, 5, 5), 150), 'conv2_b': u(ks[3], (16,), 150),
        'fc1_w': u(ks[4], (120, 400), 400),      'fc1_b': u(ks[5], (120,), 400),
        'fc2_w': u(ks[6], (84, 120), 120),       'fc2_b': u(ks[7], (84,), 120),
        'fc3_w': u(ks[8], (10, 84), 84),         'fc3_b': u(ks[9], (10,), 84),
    }


if __name__ == "__main__":
    key = jax.random.PRNGKey(0)
    k_x, k_p = jax.random.split(key)
    # fc1 in_features=400 implies 3x32x32 input (CIFAR-like).
    x = jax.random.normal(k_x, (2, 3, 32, 32), dtype=jnp.float32)
    params = prepare_params(init_torch_params(k_p))

    fwd = jax.jit(base_model_forward)
    out = jax.block_until_ready(fwd(x, params))
    assert out.shape == (2, 10), out.shape
    assert out.dtype == jnp.float32, out.dtype
    print("KERNEL_OK")
</pallas_src>

<mosaic_0001>
module attributes {stable_mosaic.version = 11 : i64} {
  func.func @_conv1_relu_pool_kernel(%arg0: memref<75x2048xbf16, #tpu.memory_space<vmem>>, %arg1: memref<6x75xbf16, #tpu.memory_space<vmem>>, %arg2: memref<6x1xf32, #tpu.memory_space<vmem>>, %arg3: memref<6x512xbf16, #tpu.memory_space<vmem>>) attributes {dimension_semantics = [], scalar_prefetch = 0 : i64, scratch_operands = 0 : i64, tpu.core_type = #tpu.core_type<tc>} {
    %c0 = arith.constant 0 : index
    %c0_0 = arith.constant 0 : index
    %0 = vector.load %arg1[%c0, %c0_0] : memref<6x75xbf16, #tpu.memory_space<vmem>>, vector<6x75xbf16>
    %c0_1 = arith.constant 0 : index
    %c0_2 = arith.constant 0 : index
    %1 = vector.load %arg0[%c0_1, %c0_2] : memref<75x2048xbf16, #tpu.memory_space<vmem>>, vector<75x2048xbf16>
    %cst = arith.constant dense<0.000000e+00> : vector<6x2048xf32>
    %2 = tpu.matmul %0, %1, %cst {dimension_numbers = #tpu.dot_dimension_numbers<[1], [0], [0], [1], [0, 0, 1, 1], [], []>} : vector<6x75xbf16>, vector<75x2048xbf16>, vector<6x2048xf32> -> vector<6x2048xf32>
    %c0_3 = arith.constant 0 : index
    %c0_4 = arith.constant 0 : index
    %3 = vector.load %arg2[%c0_3, %c0_4] : memref<6x1xf32, #tpu.memory_space<vmem>>, vector<6x1xf32>
    %4 = vector.broadcast %3 : vector<6x1xf32> to vector<6x2048xf32>
    %5 = arith.addf %2, %4 : vector<6x2048xf32>
    %cst_5 = arith.constant 0.000000e+00 : f32
    %6 = vector.broadcast %cst_5 : f32 to vector<6x2048xf32>
    %7 = arith.maximumf %5, %6 : vector<6x2048xf32>
    %8 = vector.extract_strided_slice %7 {offsets = [0, 0], sizes = [6, 512], strides = [1, 1]} : vector<6x2048xf32> to vector<6x512xf32>
    %9 = vector.extract_strided_slice %7 {offsets = [0, 512], sizes = [6, 512], strides = [1, 1]} : vector<6x2048xf32> to vector<6x512xf32>
    %10 = arith.maximumf %8, %9 : vector<6x512xf32>
    %11 = vector.extract_strided_slice %7 {offsets = [0, 1024], sizes = [6, 512], strides = [1, 1]} : vector<6x2048xf32> to vector<6x512xf32>
    %12 = vector.extract_strided_slice %7 {offsets = [0, 1536], sizes = [6, 512], strides = [1, 1]} : vector<6x2048xf32> to vector<6x512xf32>
    %13 = arith.maximumf %11, %12 : vector<6x512xf32>
    %14 = arith.maximumf %10, %13 : vector<6x512xf32>
    %15 = arith.truncf %14 : vector<6x512xf32> to vector<6x512xbf16>
    %c0_6 = arith.constant 0 : index
    %c0_7 = arith.constant 0 : index
    %16 = vector.load %arg3[%c0_6, %c0_7] : memref<6x512xbf16, #tpu.memory_space<vmem>>, vector<6x512xbf16>
    tpu.vector_store %arg3[%c0_6, %c0_7], %15 {strides = array<i32>} : memref<6x512xbf16, #tpu.memory_space<vmem>>, vector<6x512xbf16>,
    return
  }
}

module attributes {stable_mosaic.version = 11 : i64} {
  func.func @_conv2_mlp_kernel(%arg0: memref<800x150xbf16, #tpu.memory_space<vmem>>, %arg1: memref<150x16xbf16, #tpu.memory_space<vmem>>, %arg2: memref<1x16xf32, #tpu.memory_space<vmem>>, %arg3: memref<400x120xf32, #tpu.memory_space<vmem>>, %arg4: memref<1x120xf32, #tpu.memory_space<vmem>>, %arg5: memref<120x84xf32, #tpu.memory_space<vmem>>, %arg6: memref<1x84xf32, #tpu.memory_space<vmem>>, %arg7: memref<84x10xf32, #tpu.memory_space<vmem>>, %arg8: memref<1x10xf32, #tpu.memory_space<vmem>>, %arg9: memref<2x10xf32, #tpu.memory_space<vmem>>, %arg10: memref<200x16xf32, #tpu.memory_space<vmem>>) attributes {dimension_semantics = [], scalar_prefetch = 0 : i64, scratch_operands = 1 : i64, tpu.core_type = #tpu.core_type<tc>} {
    %c0 = arith.constant 0 : index
    %c0_0 = arith.constant 0 : index
    %0 = vector.load %arg0[%c0, %c0_0] : memref<800x150xbf16, #tpu.memory_space<vmem>>, vector<800x150xbf16>
    %c0_1 = arith.constant 0 : index
    %c0_2 = arith.constant 0 : index
    %1 = vector.load %arg1[%c0_1, %c0_2] : memref<150x16xbf16, #tpu.memory_space<vmem>>, vector<150x16xbf16>
    %cst = arith.constant dense<0.000000e+00> : vector<800x16xf32>
    %2 = tpu.matmul %0, %1, %cst {dimension_numbers = #tpu.dot_dimension_numbers<[1], [0], [0], [1], [0, 0, 1, 1], [], []>} : vector<800x150xbf16>, vector<150x16xbf16>, vector<800x16xf32> -> vector<800x16xf32>
    %c0_3 = arith.constant 0 : index
    %c0_4 = arith.constant 0 : index
    %3 = vector.load %arg2[%c0_3, %c0_4] : memref<1x16xf32, #tpu.memory_space<vmem>>, vector<1x16xf32>
    %4 = vector.broadcast %3 : vector<1x16xf32> to vector<800x16xf32>
    %5 = arith.addf %2, %4 : vector<800x16xf32>
    %cst_5 = arith.constant 0.000000e+00 : f32
    %6 = vector.broadcast %cst_5 : f32 to vector<800x16xf32>
    %7 = arith.maximumf %5, %6 : vector<800x16xf32>
    %8 = vector.extract_strided_slice %7 {offsets = [0, 0], sizes = [200, 16], strides = [1, 1]} : vector<800x16xf32> to vector<200x16xf32>
    %9 = vector.extract_strided_slice %7 {offsets = [200, 0], sizes = [200, 16], strides = [1, 1]} : vector<800x16xf32> to vector<200x16xf32>
    %10 = arith.maximumf %8, %9 : vector<200x16xf32>
    %11 = vector.extract_strided_slice %7 {offsets = [400, 0], sizes = [200, 16], strides = [1, 1]} : vector<800x16xf32> to vector<200x16xf32>
    %12 = vector.extract_strided_slice %7 {offsets = [600, 0], sizes = [200, 16], strides = [1, 1]} : vector<800x16xf32> to vector<200x16xf32>
    %13 = arith.maximumf %11, %12 : vector<200x16xf32>
    %14 = arith.maximumf %10, %13 : vector<200x16xf32>
    %c0_6 = arith.constant 0 : index
    %c0_7 = arith.constant 0 : index
    %15 = vector.load %arg10[%c0_6, %c0_7] : memref<200x16xf32, #tpu.memory_space<vmem>>, vector<200x16xf32>
    tpu.vector_store %arg10[%c0_6, %c0_7], %14 {strides = array<i32>} : memref<200x16xf32, #tpu.memory_space<vmem>>, vector<200x16xf32>,
    %cst_8 = arith.constant 0.000000e+00 : f32
    %16 = vector.broadcast %cst_8 : f32 to vector<2x120xf32>
    %c0_9 = arith.constant 0 : index
    %c0_10 = arith.constant 0 : index
    %17 = vector.load %arg10[%c0_9, %c0_10] : memref<200x16xf32, #tpu.memory_space<vmem>>, vector<2x16xf32>
    %c0_11 = arith.constant 0 : index
    %c0_12 = arith.constant 0 : index
    %18 = vector.load %arg3[%c0_11, %c0_12] : memref<400x120xf32, #tpu.memory_space<vmem>>, vector<16x120xf32>
    %cst_13 = arith.constant dense<0.000000e+00> : vector<2x120xf32>
    %19 = tpu.matmul %17, %18, %cst_13 {dimension_numbers = #tpu.dot_dimension_numbers<[1], [0], [0], [1], [0, 0, 1, 1], [], []>} : vector<2x16xf32>, vector<16x120xf32>, vector<2x120xf32> -> vector<2x120xf32>
    %20 = arith.addf %16, %19 : vector<2x120xf32>
    %c8 = arith.constant 8 : index
    %c0_14 = arith.constant 0 : index
    %21 = vector.load %arg10[%c8, %c0_14] : memref<200x16xf32, #tpu.memory_space<vmem>>, vector<2x16xf32>
    %c16 = arith.constant 16 : index
    %c0_15 = arith.constant 0 : index
    %22 = vector.load %arg3[%c16, %c0_15] : memref<400x120xf32, #tpu.memory_space<vmem>>, vector<16x120xf32>
    %cst_16 = arith.constant dense<0.000000e+00> : vector<2x120xf32>
    %23 = tpu.matmul %21, %22, %cst_16 {dimension_numbers = #tpu.dot_dimension_numbers<[1], [0], [0], [1], [0, 0, 1, 1], [], []>} : vector<2x16xf32>, vector<16x120xf32>, vector<2x120xf32> -> vector<2x120xf32>
    %24 = arith.addf %20, %23 : vector<2x120xf32>
    %c16_17 = arith.constant 16 : index
    %c0_18 = arith.constant 0 : index
    %25 = vector.load %arg10[%c16_17, %c0_18] : memref<200x16xf32, #tpu.memory_space<vmem>>, vector<2x16xf32>
    %c32 = arith.constant 32 : index
    %c0_19 = arith.constant 0 : index
    %26 = vector.load %arg3[%c32, %c0_19] : memref<400x120xf32, #tpu.memory_space<vmem>>, vector<16x120xf32>
    %cst_20 = arith.constant dense<0.000000e+00> : vector<2x120xf32>
    %27 = tpu.matmul %25, %26, %cst_20 {dimension_numbers = #tpu.dot_dimension_numbers<[1], [0], [0], [1], [0, 0, 1, 1], [], []>} : vector<2x16xf32>, vector<16x120xf32>, vector<2x120xf32> -> vector<2x120xf32>
    %28 = arith.addf %24, %27 : vector<2x120xf32>
    %c24 = arith.constant 24 : index
    %c0_21 = arith.constant 0 : index
    %29 = vector.load %arg10[%c24, %c0_21] : memref<200x16xf32, #tpu.memory_space<vmem>>, vector<2x16xf32>
    %c48 = arith.constant 48 : index
    %c0_22 = arith.constant 0 : index
    %30 = vector.load %arg3[%c48, %c0_22] : memref<400x120xf32, #tpu.memory_space<vmem>>, vector<16x120xf32>
    %cst_23 = arith.constant dense<0.000000e+00> : vector<2x120xf32>
    %31 = tpu.matmul %29, %30, %cst_23 {dimension_numbers = #tpu.dot_dimension_numbers<[1], [0], [0], [1], [0, 0, 1, 1], [], []>} : vector<2x16xf32>, vector<16x120xf32>, vector<2x120xf32> -> vector<2x120xf32>
    %32 = arith.addf %28, %31 : vector<2x120xf32>
    %c32_24 = arith.constant 32 : index
    %c0_25 = arith.constant 0 : index
    %33 = vector.load %arg10[%c32_24, %c0_25] : memref<200x16xf32, #tpu.memory_space<vmem>>, vector<2x16xf32>
    %c64 = arith.constant 64 : index
    %c0_26 = arith.constant 0 : index
    %34 = vector.load %arg3[%c64, %c0_26] : memref<400x120xf32, #tpu.memory_space<vmem>>, vector<16x120xf32>
    %cst_27 = arith.constant dense<0.000000e+00> : vector<2x120xf32>
    %35 = tpu.matmul %33, %34, %cst_27 {dimension_numbers = #tpu.dot_dimension_numbers<[1], [0], [0], [1], [0, 0, 1, 1], [], []>} : vector<2x16xf32>, vector<16x120xf32>, vector<2x120xf32> -> vector<2x120xf32>
    %36 = arith.addf %32, %35 : vector<2x120xf32>
    %c40 = arith.constant 40 : index
    %c0_28 = arith.constant 0 : index
    %37 = vector.load %arg10[%c40, %c0_28] : memref<200x16xf32, #tpu.memory_space<vmem>>, vector<2x16xf32>
    %c80 = arith.constant 80 : index
    %c0_29 = arith.constant 0 : index
    %38 = vector.load %arg3[%c80, %c0_29] : memref<400x120xf32, #tpu.memory_space<vmem>>, vector<16x120xf32>
    %cst_30 = arith.constant dense<0.000000e+00> : vector<2x120xf32>
    %39 = tpu.matmul %37, %38, %cst_30 {dimension_numbers = #tpu.dot_dimension_numbers<[1], [0], [0], [1], [0, 0, 1, 1], [], []>} : vector<2x16xf32>, vector<16x120xf32>, vector<2x120xf32> -> vector<2x120xf32>
    %40 = arith.addf %36, %39 : vector<2x120xf32>
    %c48_31 = arith.constant 48 : index
    %c0_32 = arith.constant 0 : index
    %41 = vector.load %arg10[%c48_31, %c0_32] : memref<200x16xf32, #tpu.memory_space<vmem>>, vector<2x16xf32>
    %c96 = arith.constant 96 : index
    %c0_33 = arith.constant 0 : index
    %42 = vector.load %arg3[%c96, %c0_33] : memref<400x120xf32, #tpu.memory_space<vmem>>, vector<16x120xf32>
    %cst_34 = arith.constant dense<0.000000e+00> : vector<2x120xf32>
    %43 = tpu.matmul %41, %42, %cst_34 {dimension_numbers = #tpu.dot_dimension_numbers<[1], [0], [0], [1], [0, 0, 1, 1], [], []>} : vector<2x16xf32>, vector<16x120xf32>, vector<2x120xf32> -> vector<2x120xf32>
    %44 = arith.addf %40, %43 : vector<2x120xf32>
    %c56 = arith.constant 56 : index
    %c0_35 = arith.constant 0 : index
    %45 = vector.load %arg10[%c56, %c0_35] : memref<200x16xf32, #tpu.memory_space<vmem>>, vector<2x16xf32>
    %c112 = arith.constant 112 : index
    %c0_36 = arith.constant 0 : index
    %46 = vector.load %arg3[%c112, %c0_36] : memref<400x120xf32, #tpu.memory_space<vmem>>, vector<16x120xf32>
    %cst_37 = arith.constant dense<0.000000e+00> : vector<2x120xf32>
    %47 = tpu.matmul %45, %46, %cst_37 {dimension_numbers = #tpu.dot_dimension_numbers<[1], [0], [0], [1], [0, 0, 1, 1], [], []>} : vector<2x16xf32>, vector<16x120xf32>, vector<2x120xf32> -> vector<2x120xf32>
    %48 = arith.addf %44, %47 : vector<2x120xf32>
    %c64_38 = arith.constant 64 : index
    %c0_39 = arith.constant 0 : index
    %49 = vector.load %arg10[%c64_38, %c0_39] : memref<200x16xf32, #tpu.memory_space<vmem>>, vector<2x16xf32>
    %c128 = arith.constant 128 : index
    %c0_40 = arith.constant 0 : index
    %50 = vector.load %arg3[%c128, %c0_40] : memref<400x120xf32, #tpu.memory_space<vmem>>, vector<16x120xf32>
    %cst_41 = arith.constant dense<0.000000e+00> : vector<2x120xf32>
    %51 = tpu.matmul %49, %50, %cst_41 {dimension_numbers = #tpu.dot_dimension_numbers<[1], [0], [0], [1], [0, 0, 1, 1], [], []>} : vector<2x16xf32>, vector<16x120xf32>, vector<2x120xf32> -> vector<2x120xf32>
    %52 = arith.addf %48, %51 : vector<2x120xf32>
    %c72 = arith.constant 72 : index
    %c0_42 = arith.constant 0 : index
    %53 = vector.load %arg10[%c72, %c0_42] : memref<200x16xf32, #tpu.memory_space<vmem>>, vector<2x16xf32>
    %c144 = arith.constant 144 : index
    %c0_43 = arith.constant 0 : index
    %54 = vector.load %arg3[%c144, %c0_43] : memref<400x120xf32, #tpu.memory_space<vmem>>, vector<16x120xf32>
    %cst_44 = arith.constant dense<0.000000e+00> : vector<2x120xf32>
    %55 = tpu.matmul %53, %54, %cst_44 {dimension_numbers = #tpu.dot_dimension_numbers<[1], [0], [0], [1], [0, 0, 1, 1], [], []>} : vector<2x16xf32>, vector<16x120xf32>, vector<2x120xf32> -> vector<2x120xf32>
    %56 = arith.addf %52, %55 : vector<2x120xf32>
    %c80_45 = arith.constant 80 : index
    %c0_46 = arith.constant 0 : index
    %57 = vector.load %arg10[%c80_45, %c0_46] : memref<200x16xf32, #tpu.memory_space<vmem>>, vector<2x16xf32>
    %c160 = arith.constant 160 : index
    %c0_47 = arith.constant 0 : index
    %58 = vector.load %arg3[%c160, %c0_47] : memref<400x120xf32, #tpu.memory_space<vmem>>, vector<16x120xf32>
    %cst_48 = arith.constant dense<0.000000e+00> : vector<2x120xf32>
    %59 = tpu.matmul %57, %58, %cst_48 {dimension_numbers = #tpu.dot_dimension_numbers<[1], [0], [0], [1], [0, 0, 1, 1], [], []>} : vector<2x16xf32>, vector<16x120xf32>, vector<2x120xf32> -> vector<2x120xf32>
    %60 = arith.addf %56, %59 : vector<2x120xf32>
    %c88 = arith.constant 88 : index
    %c0_49 = arith.constant 0 : index
    %61 = vector.load %arg10[%c88, %c0_49] : memref<200x16xf32, #tpu.memory_space<vmem>>, vector<2x16xf32>
    %c176 = arith.constant 176 : index
    %c0_50 = arith.constant 0 : index
    %62 = vector.load %arg3[%c176, %c0_50] : memref<400x120xf32, #tpu.memory_space<vmem>>, vector<16x120xf32>
    %cst_51 = arith.constant dense<0.000000e+00> : vector<2x120xf32>
    %63 = tpu.matmul %61, %62, %cst_51 {dimension_numbers = #tpu.dot_dimension_numbers<[1], [0], [0], [1], [0, 0, 1, 1], [], []>} : vector<2x16xf32>, vector<16x120xf32>, vector<2x120xf32> -> vector<2x120xf32>
    %64 = arith.addf %60, %63 : vector<2x120xf32>
    %c96_52 = arith.constant 96 : index
    %c0_53 = arith.constant 0 : index
    %65 = vector.load %arg10[%c96_52, %c0_53] : memref<200x16xf32, #tpu.memory_space<vmem>>, vector<2x16xf32>
    %c192 = arith.constant 192 : index
    %c0_54 = arith.constant 0 : index
    %66 = vector.load %arg3[%c192, %c0_54] : memref<400x120xf32, #tpu.memory_space<vmem>>, vector<16x120xf32>
    %cst_55 = arith.constant dense<0.000000e+00> : vector<2x120xf32>
    %67 = tpu.matmul %65, %66, %cst_55 {dimension_numbers = #tpu.dot_dimension_numbers<[1], [0], [0], [1], [0, 0, 1, 1], [], []>} : vector<2x16xf32>, vector<16x120xf32>, vector<2x120xf32> -> vector<2x120xf32>
    %68 = arith.addf %64, %67 : vector<2x120xf32>
    %c104 = arith.constant 104 : index
    %c0_56 = arith.constant 0 : index
    %69 = vector.load %arg10[%c104, %c0_56] : memref<200x16xf32, #tpu.memory_space<vmem>>, vector<2x16xf32>
    %c208 = arith.constant 208 : index
    %c0_57 = arith.constant 0 : index
    %70 = vector.load %arg3[%c208, %c0_57] : memref<400x120xf32, #tpu.memory_space<vmem>>, vector<16x120xf32>
    %cst_58 = arith.constant dense<0.000000e+00> : vector<2x120xf32>
    %71 = tpu.matmul %69, %70, %cst_58 {dimension_numbers = #tpu.dot_dimension_numbers<[1], [0], [0], [1], [0, 0, 1, 1], [], []>} : vector<2x16xf32>, vector<16x120xf32>, vector<2x120xf32> -> vector<2x120xf32>
    %72 = arith.addf %68, %71 : vector<2x120xf32>
    %c112_59 = arith.constant 112 : index
    %c0_60 = arith.constant 0 : index
    %73 = vector.load %arg10[%c112_59, %c0_60] : memref<200x16xf32, #tpu.memory_space<vmem>>, vector<2x16xf32>
    %c224 = arith.constant 224 : index
    %c0_61 = arith.constant 0 : index
    %74 = vector.load %arg3[%c224, %c0_61] : memref<400x120xf32, #tpu.memory_space<vmem>>, vector<16x120xf32>
    %cst_62 = arith.constant dense<0.000000e+00> : vector<2x120xf32>
    %75 = tpu.matmul %73, %74, %cst_62 {dimension_numbers = #tpu.dot_dimension_numbers<[1], [0], [0], [1], [0, 0, 1, 1], [], []>} : vector<2x16xf32>, vector<16x120xf32>, vector<2x120xf32> -> vector<2x120xf32>
    %76 = arith.addf %72, %75 : vector<2x120xf32>
    %c120 = arith.constant 120 : index
    %c0_63 = arith.constant 0 : index
    %77 = vector.load %arg10[%c120, %c0_63] : memref<200x16xf32, #tpu.memory_space<vmem>>, vector<2x16xf32>
    %c240 = arith.constant 240 : index
    %c0_64 = arith.constant 0 : index
    %78 = vector.load %arg3[%c240, %c0_64] : memref<400x120xf32, #tpu.memory_space<vmem>>, vector<16x120xf32>
    %cst_65 = arith.constant dense<0.000000e+00> : vector<2x120xf32>
    %79 = tpu.matmul %77, %78, %cst_65 {dimension_numbers = #tpu.dot_dimension_numbers<[1], [0], [0], [1], [0, 0, 1, 1], [], []>} : vector<2x16xf32>, vector<16x120xf32>, vector<2x120xf32> -> vector<2x120xf32>
    %80 = arith.addf %76, %79 : vector<2x120xf32>
    %c128_66 = arith.constant 128 : index
    %c0_67 = arith.constant 0 : index
    %81 = vector.load %arg10[%c128_66, %c0_67] : memref<200x16xf32, #tpu.memory_space<vmem>>, vector<2x16xf32>
    %c256 = arith.constant 256 : index
    %c0_68 = arith.constant 0 : index
    %82 = vector.load %arg3[%c256, %c0_68] : memref<400x120xf32, #tpu.memory_space<vmem>>, vector<16x120xf32>
    %cst_69 = arith.constant dense<0.000000e+00> : vector<2x120xf32>
    %83 = tpu.matmul %81, %82, %cst_69 {dimension_numbers = #tpu.dot_dimension_numbers<[1], [0], [0], [1], [0, 0, 1, 1], [], []>} : vector<2x16xf32>, vector<16x120xf32>, vector<2x120xf32> -> vector<2x120xf32>
    %84 = arith.addf %80, %83 : vector<2x120xf32>
    %c136 = arith.constant 136 : index
    %c0_70 = arith.constant 0 : index
    %85 = vector.load %arg10[%c136, %c0_70] : memref<200x16xf32, #tpu.memory_space<vmem>>, vector<2x16xf32>
    %c272 = arith.constant 272 : index
    %c0_71 = arith.constant 0 : index
    %86 = vector.load %arg3[%c272, %c0_71] : memref<400x120xf32, #tpu.memory_space<vmem>>, vector<16x120xf32>
    %cst_72 = arith.constant dense<0.000000e+00> : vector<2x120xf32>
    %87 = tpu.matmul %85, %86, %cst_72 {dimension_numbers = #tpu.dot_dimension_numbers<[1], [0], [0], [1], [0, 0, 1, 1], [], []>} : vector<2x16xf32>, vector<16x120xf32>, vector<2x120xf32> -> vector<2x120xf32>
    %88 = arith.addf %84, %87 : vector<2x120xf32>
    %c144_73 = arith.constant 144 : index
    %c0_74 = arith.constant 0 : index
    %89 = vector.load %arg10[%c144_73, %c0_74] : memref<200x16xf32, #tpu.memory_space<vmem>>, vector<2x16xf32>
    %c288 = arith.constant 288 : index
    %c0_75 = arith.constant 0 : index
    %90 = vector.load %arg3[%c288, %c0_75] : memref<400x120xf32, #tpu.memory_space<vmem>>, vector<16x120xf32>
    %cst_76 = arith.constant dense<0.000000e+00> : vector<2x120xf32>
    %91 = tpu.matmul %89, %90, %cst_76 {dimension_numbers = #tpu.dot_dimension_numbers<[1], [0], [0], [1], [0, 0, 1, 1], [], []>} : vector<2x16xf32>, vector<16x120xf32>, vector<2x120xf32> -> vector<2x120xf32>
    %92 = arith.addf %88, %91 : vector<2x120xf32>
    %c152 = arith.constant 152 : index
    %c0_77 = arith.constant 0 : index
    %93 = vector.load %arg10[%c152, %c0_77] : memref<200x16xf32, #tpu.memory_space<vmem>>, vector<2x16xf32>
    %c304 = arith.constant 304 : index
    %c0_78 = arith.constant 0 : index
    %94 = vector.load %arg3[%c304, %c0_78] : memref<400x120xf32, #tpu.memory_space<vmem>>, vector<16x120xf32>
    %cst_79 = arith.constant dense<0.000000e+00> : vector<2x120xf32>
    %95 = tpu.matmul %93, %94, %cst_79 {dimension_numbers = #tpu.dot_dimension_numbers<[1], [0], [0], [1], [0, 0, 1, 1], [], []>} : vector<2x16xf32>, vector<16x120xf32>, vector<2x120xf32> -> vector<2x120xf32>
    %96 = arith.addf %92, %95 : vector<2x120xf32>
    %c160_80 = arith.constant 160 : index
    %c0_81 = arith.constant 0 : index
    %97 = vector.load %arg10[%c160_80, %c0_81] : memref<200x16xf32, #tpu.memory_space<vmem>>, vector<2x16xf32>
    %c320 = arith.constant 320 : index
    %c0_82 = arith.constant 0 : index
    %98 = vector.load %arg3[%c320, %c0_82] : memref<400x120xf32, #tpu.memory_space<vmem>>, vector<16x120xf32>
    %cst_83 = arith.constant dense<0.000000e+00> : vector<2x120xf32>
    %99 = tpu.matmul %97, %98, %cst_83 {dimension_numbers = #tpu.dot_dimension_numbers<[1], [0], [0], [1], [0, 0, 1, 1], [], []>} : vector<2x16xf32>, vector<16x120xf32>, vector<2x120xf32> -> vector<2x120xf32>
    %100 = arith.addf %96, %99 : vector<2x120xf32>
    %c168 = arith.constant 168 : index
    %c0_84 = arith.constant 0 : index
    %101 = vector.load %arg10[%c168, %c0_84] : memref<200x16xf32, #tpu.memory_space<vmem>>, vector<2x16xf32>
    %c336 = arith.constant 336 : index
    %c0_85 = arith.constant 0 : index
    %102 = vector.load %arg3[%c336, %c0_85] : memref<400x120xf32, #tpu.memory_space<vmem>>, vector<16x120xf32>
    %cst_86 = arith.constant dense<0.000000e+00> : vector<2x120xf32>
    %103 = tpu.matmul %101, %102, %cst_86 {dimension_numbers = #tpu.dot_dimension_numbers<[1], [0], [0], [1], [0, 0, 1, 1], [], []>} : vector<2x16xf32>, vector<16x120xf32>, vector<2x120xf32> -> vector<2x120xf32>
    %104 = arith.addf %100, %103 : vector<2x120xf32>
    %c176_87 = arith.constant 176 : index
    %c0_88 = arith.constant 0 : index
    %105 = vector.load %arg10[%c176_87, %c0_88] : memref<200x16xf32, #tpu.memory_space<vmem>>, vector<2x16xf32>
    %c352 = arith.constant 352 : index
    %c0_89 = arith.constant 0 : index
    %106 = vector.load %arg3[%c352, %c0_89] : memref<400x120xf32, #tpu.memory_space<vmem>>, vector<16x120xf32>
    %cst_90 = arith.constant dense<0.000000e+00> : vector<2x120xf32>
    %107 = tpu.matmul %105, %106, %cst_90 {dimension_numbers = #tpu.dot_dimension_numbers<[1], [0], [0], [1], [0, 0, 1, 1], [], []>} : vector<2x16xf32>, vector<16x120xf32>, vector<2x120xf32> -> vector<2x120xf32>
    %108 = arith.addf %104, %107 : vector<2x120xf32>
    %c184 = arith.constant 184 : index
    %c0_91 = arith.constant 0 : index
    %109 = vector.load %arg10[%c184, %c0_91] : memref<200x16xf32, #tpu.memory_space<vmem>>, vector<2x16xf32>
    %c368 = arith.constant 368 : index
    %c0_92 = arith.constant 0 : index
    %110 = vector.load %arg3[%c368, %c0_92] : memref<400x120xf32, #tpu.memory_space<vmem>>, vector<16x120xf32>
    %cst_93 = arith.constant dense<0.000000e+00> : vector<2x120xf32>
    %111 = tpu.matmul %109, %110, %cst_93 {dimension_numbers = #tpu.dot_dimension_numbers<[1], [0], [0], [1], [0, 0, 1, 1], [], []>} : vector<2x16xf32>, vector<16x120xf32>, vector<2x120xf32> -> vector<2x120xf32>
    %112 = arith.addf %108, %111 : vector<2x120xf32>
    %c192_94 = arith.constant 192 : index
    %c0_95 = arith.constant 0 : index
    %113 = vector.load %arg10[%c192_94, %c0_95] : memref<200x16xf32, #tpu.memory_space<vmem>>, vector<2x16xf32>
    %c384 = arith.constant 384 : index
    %c0_96 = arith.constant 0 : index
    %114 = vector.load %arg3[%c384, %c0_96] : memref<400x120xf32, #tpu.memory_space<vmem>>, vector<16x120xf32>
    %cst_97 = arith.constant dense<0.000000e+00> : vector<2x120xf32>
    %115 = tpu.matmul %113, %114, %cst_97 {dimension_numbers = #tpu.dot_dimension_numbers<[1], [0], [0], [1], [0, 0, 1, 1], [], []>} : vector<2x16xf32>, vector<16x120xf32>, vector<2x120xf32> -> vector<2x120xf32>
    %116 = arith.addf %112, %115 : vector<2x120xf32>
    %c0_98 = arith.constant 0 : index
    %c0_99 = arith.constant 0 : index
    %117 = vector.load %arg4[%c0_98, %c0_99] : memref<1x120xf32, #tpu.memory_space<vmem>>, vector<1x120xf32>
    %118 = vector.broadcast %117 : vector<1x120xf32> to vector<2x120xf32>
    %119 = arith.addf %116, %118 : vector<2x120xf32>
    %cst_100 = arith.constant 0.000000e+00 : f32
    %120 = vector.broadcast %cst_100 : f32 to vector<2x120xf32>
    %121 = arith.maximumf %119, %120 : vector<2x120xf32>
    %c0_101 = arith.constant 0 : index
    %c0_102 = arith.constant 0 : index
    %122 = vector.load %arg5[%c0_101, %c0_102] : memref<120x84xf32, #tpu.memory_space<vmem>>, vector<120x84xf32>
    %cst_103 = arith.constant dense<0.000000e+00> : vector<2x84xf32>
    %123 = tpu.matmul %121, %122, %cst_103 {dimension_numbers = #tpu.dot_dimension_numbers<[1], [0], [0], [1], [0, 0, 1, 1], [], []>} : vector<2x120xf32>, vector<120x84xf32>, vector<2x84xf32> -> vector<2x84xf32>
    %c0_104 = arith.constant 0 : index
    %c0_105 = arith.constant 0 : index
    %124 = vector.load %arg6[%c0_104, %c0_105] : memref<1x84xf32, #tpu.memory_space<vmem>>, vector<1x84xf32>
    %125 = vector.broadcast %124 : vector<1x84xf32> to vector<2x84xf32>
    %126 = arith.addf %123, %125 : vector<2x84xf32>
    %cst_106 = arith.constant 0.000000e+00 : f32
    %127 = vector.broadcast %cst_106 : f32 to vector<2x84xf32>
    %128 = arith.maximumf %126, %127 : vector<2x84xf32>
    %c0_107 = arith.constant 0 : index
    %c0_108 = arith.constant 0 : index
    %129 = vector.load %arg7[%c0_107, %c0_108] : memref<84x10xf32, #tpu.memory_space<vmem>>, vector<84x10xf32>
    %cst_109 = arith.constant dense<0.000000e+00> : vector<2x10xf32>
    %130 = tpu.matmul %128, %129, %cst_109 {dimension_numbers = #tpu.dot_dimension_numbers<[1], [0], [0], [1], [0, 0, 1, 1], [], []>} : vector<2x84xf32>, vector<84x10xf32>, vector<2x10xf32> -> vector<2x10xf32>
    %c0_110 = arith.constant 0 : index
    %c0_111 = arith.constant 0 : index
    %131 = vector.load %arg8[%c0_110, %c0_111] : memref<1x10xf32, #tpu.memory_space<vmem>>, vector<1x10xf32>
    %132 = vector.broadcast %131 : vector<1x10xf32> to vector<2x10xf32>
    %133 = arith.addf %130, %132 : vector<2x10xf32>
    %c0_112 = arith.constant 0 : index
    %c0_113 = arith.constant 0 : index
    %134 = vector.load %arg9[%c0_112, %c0_113] : memref<2x10xf32, #tpu.memory_space<vmem>>, vector<2x10xf32>
    tpu.vector_store %arg9[%c0_112, %c0_113], %133 {strides = array<i32>} : memref<2x10xf32, #tpu.memory_space<vmem>>, vector<2x10xf32>,
    return
  }
}

</mosaic_0001>

<bundles_post_ra>
// kernel: base_model_forward.2
= control target key start
LH: loop header
LB: loop body
LE: loop exit
PB: predicated region body
PF: predicated region fallthrough
CT: control target
= control target key end

     0   :  { %vm490_vm0 = vcmask 1044480   ;;  %vm491_vm1 = vcmask 1045504   ;;  %v1205_v2 = vmov 65535   ;;  %vm486_vm2 = vcmask 613376   ;;  %s1771_s0 = inlined_call_operand.vmem [shape: bf16[75,2048], index: 0, kind: input, shape index: {}]   ;;  %s1772_s1 = inlined_call_operand.vmem [shape: bf16[6,75], index: 1, kind: input, shape index: {}]   ;;  %s1773_s2 = inlined_call_operand.vmem [shape: f32[6,1], index: 2, kind: input, shape index: {}]   ;;  %s1774_s3 = inlined_call_operand.vmem [shape: bf16[6,512], index: 3, kind: output, shape index: {}]  }
   0x1   :  { %v1044_v0 = vld [vmem:[%s1771_s0 + $0x200] sm:$0xf]  ;;  %v492_v3 = vsel %vm490_vm0, 4294967295, %v1205_v2  ;;  %v1186_v6 = vld [vmem:[%s1771_s0 + $0x204] sm:$0xf] }
   0x2   :  { %v1194_v1 = vld [vmem:[%s1771_s0 + $0x23c] sm:$0x30]  ;;  %v1233_v5 = vsel %vm491_vm1, %v492_v3, 0  ;;  %v1046_v7 = vld [vmem:[%s1771_s0 + $0x240] sm:$0x30] }
   0x3   :  { %v1045_v4 = vor.u32 %v1194_v1, %v1044_v0  ;;  %v1049_v8 = vor.u32 %v1186_v6, %v1046_v7  ;;  %v1052_v9 = vld [vmem:[%s1771_s0 + $0x208] sm:$0xf]  ;;  %v1187_v11 = vld [vmem:[%s1771_s0 + $0x20c] sm:$0xf]  ;;  %v980_v15 = vld [vmem:[%s1771_s0 + $0x180] sm:$0xf] }
   0x4   :  { %v1195_v10 = vld [vmem:[%s1771_s0 + $0x244] sm:$0x30]  ;;  %v1054_v14 = vld [vmem:[%s1771_s0 + $0x248] sm:$0x30]  ;;  %v1178_v16 = vld [vmem:[%s1771_s0 + $0x1bc] sm:$0xf0] }
   0x5   :  { %v495_v12 = vand.u32 %v1045_v4, %v1233_v5  ;;  %v1053_v13 = vor.u32 %v1195_v10, %v1052_v9  ;;  %v498_v17 = vand.u32 %v1049_v8, %v1233_v5  ;;  %v1057_v18 = vor.u32 %v1187_v11, %v1054_v14  ;;  %v1170_v19 = vld [vmem:[%s1771_s0 + $0x184] sm:$0xf]  ;;  %v988_v21 = vld [vmem:[%s1771_s0 + $0x188] sm:$0xf]  ;;  %v1171_v25 = vld [vmem:[%s1771_s0 + $0x18c] sm:$0xf] }
   0x6   :  { %v982_v20 = vld [vmem:[%s1771_s0 + $0x1c0] sm:$0xf0]  ;;  %v981_v23 = vor.u32 %v1178_v16, %v980_v15  ;;  %v1179_v24 = vld [vmem:[%s1771_s0 + $0x1c4] sm:$0xf0]  ;;  %v990_v26 = vld [vmem:[%s1771_s0 + $0x1c8] sm:$0xf0] }
   0x7   :  { %545 = vmatpush.bf16.msra.mxu0 %v495_v12  ;;  %v501_v22 = vand.u32 %v1053_v13, %v1233_v5  ;;  %558 = vmatpush.bf16.msra.mxu1 %v498_v17  ;;  %v504_v27 = vand.u32 %v1057_v18, %v1233_v5  ;;  %v985_v28 = vor.u32 %v1170_v19, %v982_v20  ;;  %v916_v29 = vld [vmem:[%s1771_s0 + $0x100] sm:$0xf]  ;;  %v1154_v32 = vld [vmem:[%s1771_s0 + $0x104] sm:$0xf]  ;;  %v924_v35 = vld [vmem:[%s1771_s0 + $0x108] sm:$0xf] }
   0x8   :  { %v1162_v30 = vld [vmem:[%s1771_s0 + $0x13c] sm:$0xf0]  ;;  %v989_v31 = vor.u32 %v1179_v24, %v988_v21  ;;  %v918_v33 = vld [vmem:[%s1771_s0 + $0x140] sm:$0xf0]  ;;  %v993_v34 = vor.u32 %v1171_v25, %v990_v26  ;;  %v1163_v36 = vld [vmem:[%s1771_s0 + $0x144] sm:$0xf0] }
   0x9   :  { %571 = vmatpush.bf16.msra.mxu2 %v501_v22  ;;  %584 = vmatpush.bf16.msra.mxu3 %v504_v27  ;;  %v917_v37 = vor.u32 %v1162_v30, %v916_v29  ;;  %v1155_v38 = vld [vmem:[%s1771_s0 + $0x10c] sm:$0xf]  ;;  %v921_v40 = vor.u32 %v1154_v32, %v918_v33  ;;  %v852_v41 = vld [vmem:[%s1771_s0 + $0x80] sm:$0xf]  ;;  %v1138_v43 = vld [vmem:[%s1771_s0 + $0x84] sm:$0xf]  ;;  %v925_v44 = vor.u32 %v1163_v36, %v924_v35 }
   0xa   :  { %v926_v39 = vld [vmem:[%s1771_s0 + $0x148] sm:$0xf0]  ;;  %v1146_v42 = vld [vmem:[%s1771_s0 + $0xbc] sm:$0xf0]  ;;  %v854_v45 = vld [vmem:[%s1771_s0 + $0xc0] sm:$0xf0] }
   0xb   :  { %546 = vmatpush.bf16.msra.mxu0 %v981_v23  ;;  %559 = vmatpush.bf16.msra.mxu1 %v985_v28  ;;  %v860_v46 = vld [vmem:[%s1771_s0 + $0x88] sm:$0xf]  ;;  %v929_v48 = vor.u32 %v1155_v38, %v926_v39  ;;  %v1139_v49 = vld [vmem:[%s1771_s0 + $0x8c] sm:$0xf]  ;;  %v788_v51 = vld [vmem:[%s1771_s0] sm:$0xf]  ;;  %v853_v52 = vor.u32 %v1146_v42, %v852_v41  ;;  %v857_v56 = vor.u32 %v1138_v43, %v854_v45 }
   0xc   :  { %v1147_v47 = vld [vmem:[%s1771_s0 + $0xc4] sm:$0xf0]  ;;  %v862_v50 = vld [vmem:[%s1771_s0 + $0xc8] sm:$0xf0]  ;;  %v1130_v53 = vld [vmem:[%s1771_s0 + $0x3c] sm:$0xf0] }
   0xd   :  { %572 = vmatpush.bf16.msra.mxu2 %v989_v31  ;;  %585 = vmatpush.bf16.msra.mxu3 %v993_v34  ;;  %v1122_v54 = vld [vmem:[%s1771_s0 + $0x4] sm:$0xf]  ;;  %v796_v57 = vld [vmem:[%s1771_s0 + $0x8] sm:$0xf]  ;;  %v1060_v58 = vld [vmem:[%s1771_s0 + $0x210] sm:$0xf]  ;;  %v861_v61 = vor.u32 %v1147_v47, %v860_v46  ;;  %v865_v2 = vor.u32 %v1139_v49, %v862_v50  ;;  %v789_v9 = vor.u32 %v1130_v53, %v788_v51 }
   0xe   :  { %v790_v55 = vld [vmem:[%s1771_s0 + $0x40] sm:$0xf0]  ;;  %v1196_v59 = vld [vmem:[%s1771_s0 + $0x24c] sm:$0x30]  ;;  %v1188_v60 = vld [vmem:[%s1771_s0 + $0x214] sm:$0xf] }
   0xf   :  { %547 = vmatpush.bf16.msra.mxu0 %v917_v37  ;;  %560 = vmatpush.bf16.msra.mxu1 %v921_v40  ;;  %v1061_v62 = vor.u32 %v1196_v59, %v1060_v58  ;;  %v1062_v63 = vld [vmem:[%s1771_s0 + $0x250] sm:$0x30]  ;;  %v1068_v0 = vld [vmem:[%s1771_s0 + $0x218] sm:$0xf]  ;;  %v1131_v3 = vld [vmem:[%s1771_s0 + $0x44] sm:$0xf0]  ;;  %v793_v13 = vor.u32 %v1122_v54, %v790_v55 }
  0x10   :  { %v1197_v1 = vld [vmem:[%s1771_s0 + $0x254] sm:$0x30]  ;;  %v1065_v4 = vor.u32 %v1188_v60, %v1062_v63  ;;  %v1189_v7 = vld [vmem:[%s1771_s0 + $0x21c] sm:$0xf]  ;;  %v1123_v10 = vld [vmem:[%s1771_s0 + $0xc] sm:$0xf]  ;;  %v797_v15 = vor.u32 %v1131_v3, %v796_v57 }
  0x11   :  { %573 = vmatpush.bf16.msra.mxu2 %v925_v44  ;;  %586 = vmatpush.bf16.msra.mxu3 %v929_v48  ;;  %v1069_v6 = vor.u32 %v1197_v1, %v1068_v0  ;;  %v1070_v8 = vld [vmem:[%s1771_s0 + $0x258] sm:$0x30]  ;;  %v798_v11 = vld [vmem:[%s1771_s0 + $0x48] sm:$0xf0]  ;;  %v507_v14 = vand.u32 %v1061_v62, %v1233_v5  ;;  %v996_v19 = vld [vmem:[%s1771_s0 + $0x190] sm:$0xf] }
  0x12   :  { %v1073_v12 = vor.u32 %v1189_v7, %v1070_v8  ;;  %v510_v16 = vand.u32 %v1065_v4, %v1233_v5  ;;  %v801_v17 = vor.u32 %v1123_v10, %v798_v11  ;;  %v1180_v20 = vld [vmem:[%s1771_s0 + $0x1cc] sm:$0xf0]  ;;  %v1172_v21 = vld [vmem:[%s1771_s0 + $0x194] sm:$0xf]  ;;  %v1004_v24 = vld [vmem:[%s1771_s0 + $0x198] sm:$0xf] }
  0x13   :  { %548 = vmatpush.bf16.msra.mxu0 %v853_v52  ;;  %561 = vmatpush.bf16.msra.mxu1 %v857_v56  ;;  %v513_v18 = vand.u32 %v1069_v6, %v1233_v5  ;;  %v998_v23 = vld [vmem:[%s1771_s0 + $0x1d0] sm:$0xf0]  ;;  %v1181_v25 = vld [vmem:[%s1771_s0 + $0x1d4] sm:$0xf0]  ;;  %v1402_v26 = vld [vmem:[%s1772_s1] sm:$0x7]  ;;  %v997_v29 = vor.u32 %v1180_v20, %v996_v19 }
  0x14   :  { %v516_v22 = vand.u32 %v1073_v12, %v1233_v5  ;;  %v1173_v27 = vld [vmem:[%s1771_s0 + $0x19c] sm:$0xf]  ;;  %v1001_v30 = vor.u32 %v1172_v21, %v998_v23  ;;  %v1005_v31 = vor.u32 %v1181_v25, %v1004_v24  ;;  %v932_v32 = vld [vmem:[%s1771_s0 + $0x110] sm:$0xf]  ;;  %v1156_v34 = vld [vmem:[%s1771_s0 + $0x114] sm:$0xf] }
  0x15   :  { %574 = vmatpush.bf16.msra.mxu2 %v861_v61  ;;  %587 = vmatpush.bf16.msra.mxu3 %v865_v2  ;;  %v1006_v28 = vld [vmem:[%s1771_s0 + $0x1d8] sm:$0xf0]  ;;  %v1164_v33 = vld [vmem:[%s1771_s0 + $0x14c] sm:$0xf0]  ;;  %v934_v36 = vld [vmem:[%s1771_s0 + $0x150] sm:$0xf0] }
  0x16   :  { %v1009_v35 = vor.u32 %v1173_v27, %v1006_v28  ;;  %v940_v37 = vld [vmem:[%s1771_s0 + $0x118] sm:$0xf]  ;;  %v1157_v39 = vld [vmem:[%s1771_s0 + $0x11c] sm:$0xf]  ;;  %v933_v41 = vor.u32 %v1164_v33, %v932_v32  ;;  %v868_v42 = vld [vmem:[%s1771_s0 + $0x90] sm:$0xf]  ;;  %v937_v45 = vor.u32 %v1156_v34, %v934_v36 }
  0x17   :  { %549 = vmatpush.bf16.msra.mxu0 %v789_v9  ;;  %562 = vmatpush.bf16.msra.mxu1 %v793_v13  ;;  %v1165_v38 = vld [vmem:[%s1771_s0 + $0x154] sm:$0xf0]  ;;  %v942_v40 = vld [vmem:[%s1771_s0 + $0x158] sm:$0xf0]  ;;  %v1148_v43 = vld [vmem:[%s1771_s0 + $0xcc] sm:$0xf0] }
  0x18   :  { %v1140_v44 = vld [vmem:[%s1771_s0 + $0x94] sm:$0xf]  ;;  %v941_v46 = vor.u32 %v1165_v38, %v940_v37  ;;  %v876_v48 = vld [vmem:[%s1771_s0 + $0x98] sm:$0xf]  ;;  %v945_v50 = vor.u32 %v1157_v39, %v942_v40  ;;  %v1141_v51 = vld [vmem:[%s1771_s0 + $0x9c] sm:$0xf]  ;;  %v869_v58 = vor.u32 %v1148_v43, %v868_v42 }
  0x19   :  { %575 = vmatpush.bf16.msra.mxu2 %v797_v15  ;;  %588 = vmatpush.bf16.msra.mxu3 %v801_v17  ;;  %v870_v47 = vld [vmem:[%s1771_s0 + $0xd0] sm:$0xf0]  ;;  %v1149_v49 = vld [vmem:[%s1771_s0 + $0xd4] sm:$0xf0]  ;;  %v878_v52 = vld [vmem:[%s1771_s0 + $0xd8] sm:$0xf0] }
  0x1a   :  { %1106 = vmatmul.msk.bf16.vlgmr.msra.gmra.mxu0 %vm486_vm2, %v1402_v26  ;;  %1107 = vmatmul.msk.bf16.vlgmr.msra.gmra.mxu1 %vm486_vm2, %v1402_v26  ;;  %v1076_v53 = vld [vmem:[%s1771_s0 + $0x220] sm:$0xf]  ;;  %v804_v54 = vld [vmem:[%s1771_s0 + $0x10] sm:$0xf]  ;;  %v1190_v57 = vld [vmem:[%s1771_s0 + $0x224] sm:$0xf]  ;;  %v873_v0 = vor.u32 %v1140_v44, %v870_v47  ;;  %v877_v1 = vor.u32 %v1149_v49, %v876_v48  ;;  %v881_v6 = vor.u32 %v1141_v51, %v878_v52 }
  0x1b   :  { %597 = vmatpush.bf16.msrb.mxu0 %v507_v14  ;;  %610 = vmatpush.bf16.msrb.mxu1 %v510_v16  ;;  %v1132_v55 = vld [vmem:[%s1771_s0 + $0x4c] sm:$0xf0]  ;;  %v1198_v56 = vld [vmem:[%s1771_s0 + $0x25c] sm:$0x30]  ;;  %v1124_v59 = vld [vmem:[%s1771_s0 + $0x14] sm:$0xf] }
  0x1c   :  { %1108 = vmatmul.msk.bf16.vlgmr.msra.gmra.mxu2 %vm486_vm2, %v1402_v26  ;;  %1109 = vmatmul.msk.bf16.vlgmr.msra.gmra.mxu3 %vm486_vm2, %v1402_v26  ;;  %v1078_v60 = vld [vmem:[%s1771_s0 + $0x260] sm:$0x30]  ;;  %v1084_v61 = vld [vmem:[%s1771_s0 + $0x228] sm:$0xf]  ;;  %v1206_v63 = vmov 0   ;;  %v1077_v9 = vor.u32 %v1198_v56, %v1076_v53  ;;  %v805_v15 = vor.u32 %v1132_v55, %v804_v54 }
  0x1d   :  { %623 = vmatpush.bf16.msrb.mxu2 %v513_v18  ;;  %636 = vmatpush.bf16.msrb.mxu3 %v516_v22  ;;  %v1199_v62 = vld [vmem:[%s1771_s0 + $0x264] sm:$0x30]  ;;  %v806_v2 = vld [vmem:[%s1771_s0 + $0x50] sm:$0xf0]  ;;  %v1191_v3 = vld [vmem:[%s1771_s0 + $0x22c] sm:$0xf]  ;;  %v1081_v13 = vor.u32 %v1190_v57, %v1078_v60 }
  0x1e   :  { %1204 = vset.pattern.permute.xlu0 %v1206_v63  ;;  %v1086_v4 = vld [vmem:[%s1771_s0 + $0x268] sm:$0x30]  ;;  %v812_v7 = vld [vmem:[%s1771_s0 + $0x18] sm:$0xf]  ;;  %v96_v10 = vld [vmem:[%s1773_s2] sm:$0x3f]  ;;  %v1085_v14 = vor.u32 %v1199_v62, %v1084_v61  ;;  %v809_v17 = vor.u32 %v1124_v59, %v806_v2  ;;  %v519_v20 = vand.u32 %v1077_v9, %v1233_v5 }
  0x1f   :  { %598 = vmatpush.bf16.msrb.mxu0 %v997_v29  ;;  %611 = vmatpush.bf16.msrb.mxu1 %v1001_v30  ;;  %v1133_v8 = vld [vmem:[%s1771_s0 + $0x54] sm:$0xf0]  ;;  %v1125_v11 = vld [vmem:[%s1771_s0 + $0x1c] sm:$0xf]  ;;  %v1089_v16 = vor.u32 %v1191_v3, %v1086_v4  ;;  %v522_v21 = vand.u32 %v1081_v13, %v1233_v5  ;;  %v1012_v23 = vld [vmem:[%s1771_s0 + $0x1a0] sm:$0xf] }
  0x20   :  { %v814_v12 = vld [vmem:[%s1771_s0 + $0x58] sm:$0xf0]  ;;  %99 = vperm.xlu0 %1204, %v96_v10   ;;  %v813_v18 = vor.u32 %v1133_v8, %v812_v7  ;;  %v525_v22 = vand.u32 %v1085_v14, %v1233_v5  ;;  %v1182_v24 = vld [vmem:[%s1771_s0 + $0x1dc] sm:$0xf0]  ;;  %v1174_v25 = vld [vmem:[%s1771_s0 + $0x1a4] sm:$0xf] }
  0x21   :  { %624 = vmatpush.bf16.msrb.mxu2 %v1005_v31  ;;  %637 = vmatpush.bf16.msrb.mxu3 %v1009_v35  ;;  %v817_v19 = vor.u32 %v1125_v11, %v814_v12  ;;  %v528_v27 = vand.u32 %v1089_v16, %v1233_v5  ;;  %v1014_v28 = vld [vmem:[%s1771_s0 + $0x1e0] sm:$0xf0]  ;;  %v1020_v29 = vld [vmem:[%s1771_s0 + $0x1a8] sm:$0xf]  ;;  %v1175_v31 = vld [vmem:[%s1771_s0 + $0x1ac] sm:$0xf]  ;;  %v1013_v33 = vor.u32 %v1182_v24, %v1012_v23 }
  0x22   :  { %v1183_v30 = vld [vmem:[%s1771_s0 + $0x1e4] sm:$0xf0]  ;;  %v1022_v32 = vld [vmem:[%s1771_s0 + $0x1e8] sm:$0xf0]  ;;  %v1017_v34 = vor.u32 %v1174_v25, %v1014_v28  ;;  %v948_v36 = vld [vmem:[%s1771_s0 + $0x120] sm:$0xf] }
  0x23   :  { %599 = vmatpush.bf16.msrb.mxu0 %v933_v41  ;;  %612 = vmatpush.bf16.msrb.mxu1 %v937_v45  ;;  %v1021_v35 = vor.u32 %v1183_v30, %v1020_v29  ;;  %v1166_v37 = vld [vmem:[%s1771_s0 + $0x15c] sm:$0xf0]  ;;  %v1158_v38 = vld [vmem:[%s1771_s0 + $0x124] sm:$0xf]  ;;  %v1025_v39 = vor.u32 %v1175_v31, %v1022_v32  ;;  %v956_v41 = vld [vmem:[%s1771_s0 + $0x128] sm:$0xf] }
  0x24   :  { %v950_v40 = vld [vmem:[%s1771_s0 + $0x160] sm:$0xf0]  ;;  %v1167_v42 = vld [vmem:[%s1771_s0 + $0x164] sm:$0xf0]  ;;  %v1159_v43 = vld [vmem:[%s1771_s0 + $0x12c] sm:$0xf]  ;;  %v949_v45 = vor.u32 %v1166_v37, %v948_v36 }
  0x25   :  { %625 = vmatpush.bf16.msrb.mxu2 %v941_v46  ;;  %638 = vmatpush.bf16.msrb.mxu3 %v945_v50  ;;  %v958_v44 = vld [vmem:[%s1771_s0 + $0x168] sm:$0xf0]  ;;  %v884_v46 = vld [vmem:[%s1771_s0 + $0xa0] sm:$0xf]  ;;  %v953_v48 = vor.u32 %v1158_v38, %v950_v40  ;;  %v957_v49 = vor.u32 %v1167_v42, %v956_v41  ;;  %v1142_v50 = vld [vmem:[%s1771_s0 + $0xa4] sm:$0xf] }
  0x26   :  { %v1150_v47 = vld [vmem:[%s1771_s0 + $0xdc] sm:$0xf0]  ;;  %v886_v51 = vld [vmem:[%s1771_s0 + $0xe0] sm:$0xf0]  ;;  %v892_v52 = vld [vmem:[%s1771_s0 + $0xa8] sm:$0xf]  ;;  %v961_v53 = vor.u32 %v1159_v43, %v958_v44 }
  0x27   :  { %600 = vmatpush.bf16.msrb.mxu0 %v869_v58  ;;  %613 = vmatpush.bf16.msrb.mxu1 %v873_v0  ;;  %v1151_v54 = vld [vmem:[%s1771_s0 + $0xe4] sm:$0xf0]  ;;  %v1143_v55 = vld [vmem:[%s1771_s0 + $0xac] sm:$0xf]  ;;  %v820_v57 = vld [vmem:[%s1771_s0 + $0x20] sm:$0xf]  ;;  %v885_v62 = vor.u32 %v1150_v47, %v884_v46  ;;  %v889_v2 = vor.u32 %v1142_v50, %v886_v51 }
  0x28   :  { %v894_v56 = vld [vmem:[%s1771_s0 + $0xe8] sm:$0xf0]  ;;  %v1134_v58 = vld [vmem:[%s1771_s0 + $0x5c] sm:$0xf0]  ;;  %v1092_v59 = vld [vmem:[%s1771_s0 + $0x230] sm:$0xf]  ;;  %v893_v3 = vor.u32 %v1151_v54, %v892_v52 }
  0x29   :  { %626 = vmatpush.bf16.msrb.mxu2 %v877_v1  ;;  %639 = vmatpush.bf16.msrb.mxu3 %v881_v6  ;;  %v1200_v60 = vld [vmem:[%s1771_s0 + $0x26c] sm:$0x30]  ;;  %v1192_v61 = vld [vmem:[%s1771_s0 + $0x234] sm:$0xf]  ;;  %v1100_v0 = vld [vmem:[%s1771_s0 + $0x238] sm:$0xf]  ;;  %v897_v8 = vor.u32 %v1143_v55, %v894_v56 }
  0x2a   :  { %v1094_v63 = vld [vmem:[%s1771_s0 + $0x270] sm:$0x30]  ;;  %v1201_v1 = vld [vmem:[%s1771_s0 + $0x274] sm:$0x30]  ;;  %v1126_v4 = vld [vmem:[%s1771_s0 + $0x24] sm:$0xf]  ;;  %v1093_v12 = vor.u32 %v1200_v60, %v1092_v59 }
  0x2b   :  { %601 = vmatpush.bf16.msrb.mxu0 %v805_v15  ;;  %614 = vmatpush.bf16.msrb.mxu1 %v809_v17  ;;  %v1193_v6 = vld [vmem:[%s1771_s0 + $0x23c] sm:$0xf]  ;;  %v822_v9 = vld [vmem:[%s1771_s0 + $0x60] sm:$0xf0]  ;;  %v828_v10 = vld [vmem:[%s1771_s0 + $0x28] sm:$0xf]  ;;  %v1097_v15 = vor.u32 %v1192_v61, %v1094_v63  ;;  %v1101_v16 = vor.u32 %v1201_v1, %v1100_v0  ;;  %v821_v17 = vor.u32 %v1134_v58, %v820_v57 }
  0x2c   :  { %v1102_v7 = vld [vmem:[%s1771_s0 + $0x278] sm:$0x30]  ;;  %v1135_v11 = vld [vmem:[%s1771_s0 + $0x64] sm:$0xf0]  ;;  %v1127_v13 = vld [vmem:[%s1771_s0 + $0x2c] sm:$0xf] }
  0x2d   :  { %627 = vmatpush.bf16.msrb.mxu2 %v813_v18  ;;  %640 = vmatpush.bf16.msrb.mxu3 %v817_v19  ;;  %v830_v14 = vld [vmem:[%s1771_s0 + $0x68] sm:$0xf0]  ;;  %v1105_v18 = vor.u32 %v1193_v6, %v1102_v7  ;;  %v825_v19 = vor.u32 %v1126_v4, %v822_v9  ;;  %v534_v23 = vand.u32 %v1097_v15, %v1233_v5  ;;  %v1028_v25 = vld [vmem:[%s1771_s0 + $0x1b0] sm:$0xf]  ;;  %v1176_v28 = vld [vmem:[%s1771_s0 + $0x1b4] sm:$0xf] }
  0x2e   :  { %1110 = vmatmul.msk.bf16.vlgmr.msrb.gmra.mxu0 %vm486_vm2, %v1402_v26  ;;  %1111 = vmatmul.msk.bf16.vlgmr.msrb.gmra.mxu1 %vm486_vm2, %v1402_v26  ;;  %v537_v24 = vand.u32 %v1101_v16, %v1233_v5  ;;  %v1030_v30 = vld [vmem:[%s1771_s0 + $0x1f0] sm:$0xf0]  ;;  %v1036_v31 = vld [vmem:[%s1771_s0 + $0x1b8] sm:$0xf]  ;;  %v964_v37 = vld [vmem:[%s1771_s0 + $0x130] sm:$0xf] }
  0x2f   :  { %649 = vmatpush.bf16.msra.mxu0 %v519_v20  ;;  %662 = vmatpush.bf16.msra.mxu1 %v522_v21  ;;  %v829_v20 = vor.u32 %v1135_v11, %v828_v10  ;;  %v833_v21 = vor.u32 %v1127_v13, %v830_v14  ;;  %v540_v29 = vand.u32 %v1105_v18, %v1233_v5  ;;  %v1185_v32 = vld [vmem:[%s1771_s0 + $0x1f4] sm:$0xf0]  ;;  %v1168_v38 = vld [vmem:[%s1771_s0 + $0x16c] sm:$0xf0]  ;;  %v966_v41 = vld [vmem:[%s1771_s0 + $0x170] sm:$0xf0] }
  0x30   :  { %1112 = vmatmul.msk.bf16.vlgmr.msrb.gmra.mxu2 %vm486_vm2, %v1402_v26  ;;  %1113 = vmatmul.msk.bf16.vlgmr.msrb.gmra.mxu3 %vm486_vm2, %v1402_v26  ;;  %v1037_v36 = vor.u32 %v1185_v32, %v1036_v31  ;;  %v972_v42 = vld [vmem:[%s1771_s0 + $0x138] sm:$0xf]  ;;  %v1161_v44 = vld [vmem:[%s1771_s0 + $0x13c] sm:$0xf]  ;;  %v965_v46 = vor.u32 %v1168_v38, %v964_v37  ;;  %v1152_v50 = vld [vmem:[%s1771_s0 + $0xec] sm:$0xf0] }
  0x31   :  { %675 = vmatpush.bf16.msra.mxu2 %v525_v22  ;;  %688 = vmatpush.bf16.msra.mxu3 %v528_v27  ;;  %v531_v22 = vand.u32 %v1093_v12, %v1233_v5  ;;  %v1184_v27 = vld [vmem:[%s1771_s0 + $0x1ec] sm:$0xf0]  ;;  %v1038_v5 = vld [vmem:[%s1771_s0 + $0x1f8] sm:$0xf0]  ;;  %v1169_v43 = vld [vmem:[%s1771_s0 + $0x174] sm:$0xf0] }
  0x32   :  { %v1144_v51 = vld [vmem:[%s1771_s0 + $0xb4] sm:$0xf]  ;;  %v908_v54 = vld [vmem:[%s1771_s0 + $0xb8] sm:$0xf]  ;;  %v1145_v56 = vld [vmem:[%s1771_s0 + $0xbc] sm:$0xf] }
  0x33   :  { %650 = vmatpush.bf16.msra.mxu0 %v1013_v33  ;;  %663 = vmatpush.bf16.msra.mxu1 %v1017_v34  ;;  %v1177_v33 = vld [vmem:[%s1771_s0 + $0x1bc] sm:$0xf]  ;;  %v1029_v34 = vor.u32 %v1184_v27, %v1028_v25  ;;  %v1153_v55 = vld [vmem:[%s1771_s0 + $0xf4] sm:$0xf0]  ;;  %v836_v61 = vld [vmem:[%s1771_s0 + $0x30] sm:$0xf] }
  0x34   :  { %v1041_v40 = vor.u32 %v1177_v33, %v1038_v5  ;;  %v910_v57 = vld [vmem:[%s1771_s0 + $0xf8] sm:$0xf0]  ;;  %v909_v60 = vor.u32 %v1153_v55, %v908_v54  ;;  %v1128_v63 = vld [vmem:[%s1771_s0 + $0x34] sm:$0xf] }
  0x35   :  { %676 = vmatpush.bf16.msra.mxu2 %v1021_v35  ;;  %689 = vmatpush.bf16.msra.mxu3 %v1025_v39  ;;  %v1033_v35 = vor.u32 %v1176_v28, %v1030_v30  ;;  %v1160_v39 = vld [vmem:[%s1771_s0 + $0x134] sm:$0xf]  ;;  %v913_v0 = vor.u32 %v1145_v56, %v910_v57  ;;  %v1129_v4 = vld [vmem:[%s1771_s0 + $0x3c] sm:$0xf] }
  0x36   :  { %v969_v47 = vor.u32 %v1160_v39, %v966_v41  ;;  %v838_v1 = vld [vmem:[%s1771_s0 + $0x70] sm:$0xf0]  ;;  %v846_v6 = vld [vmem:[%s1771_s0 + $0x78] sm:$0xf0] }
  0x37   :  { %651 = vmatpush.bf16.msra.mxu0 %v949_v45  ;;  %664 = vmatpush.bf16.msra.mxu1 %v953_v48  ;;  %v974_v45 = vld [vmem:[%s1771_s0 + $0x178] sm:$0xf0]  ;;  %v973_v48 = vor.u32 %v1169_v43, %v972_v42  ;;  %v849_v10 = vor.u32 %v1129_v4, %v846_v6 }
  0x38   :  { %v977_v52 = vor.u32 %v1161_v44, %v974_v45 }
  0x39   :  { %677 = vmatpush.bf16.msra.mxu2 %v957_v49  ;;  %690 = vmatpush.bf16.msra.mxu3 %v961_v53  ;;  %v900_v49 = vld [vmem:[%s1771_s0 + $0xb0] sm:$0xf]  ;;  %v902_v53 = vld [vmem:[%s1771_s0 + $0xf0] sm:$0xf0] }
  0x3a   :  { %v901_v58 = vor.u32 %v1152_v50, %v900_v49  ;;  %v905_v59 = vor.u32 %v1144_v51, %v902_v53 }
  0x3b   :  { %652 = vmatpush.bf16.msra.mxu0 %v885_v62  ;;  %665 = vmatpush.bf16.msra.mxu1 %v889_v2  ;;  %v1136_v62 = vld [vmem:[%s1771_s0 + $0x6c] sm:$0xf0]  ;;  %v844_v2 = vld [vmem:[%s1771_s0 + $0x38] sm:$0xf] }
  0x3c   :  { %v837_v7 = vor.u32 %v1136_v62, %v836_v61 }
  0x3d   :  { %678 = vmatpush.bf16.msra.mxu2 %v893_v3  ;;  %691 = vmatpush.bf16.msra.mxu3 %v897_v8  ;;  %v1137_v3 = vld [vmem:[%s1771_s0 + $0x74] sm:$0xf0]  ;;  %v841_v8 = vor.u32 %v1128_v63, %v838_v1 }
  0x3e   :  { %v845_v9 = vor.u32 %v1137_v3, %v844_v2 }
  0x3f   :  { %653 = vmatpush.bf16.msra.mxu0 %v821_v17  ;;  %666 = vmatpush.bf16.msra.mxu1 %v825_v19 }
  0x41   :  { %679 = vmatpush.bf16.msra.mxu2 %v829_v20  ;;  %692 = vmatpush.bf16.msra.mxu3 %v833_v21 }
  0x42   :  { %1114 = vmatmul.msk.bf16.vlgmr.msra.gmra.mxu0 %vm486_vm2, %v1402_v26  ;;  %1115 = vmatmul.msk.bf16.vlgmr.msra.gmra.mxu1 %vm486_vm2, %v1402_v26 }
  0x43   :  { %701 = vmatpush.bf16.msrb.mxu0 %v531_v22  ;;  %714 = vmatpush.bf16.msrb.mxu1 %v534_v23 }
  0x44   :  { %1116 = vmatmul.msk.bf16.vlgmr.msra.gmra.mxu2 %vm486_vm2, %v1402_v26  ;;  %1117 = vmatmul.msk.bf16.vlgmr.msra.gmra.mxu3 %vm486_vm2, %v1402_v26 }
  0x45   :  { %727 = vmatpush.bf16.msrb.mxu2 %v537_v24  ;;  %740 = vmatpush.bf16.msrb.mxu3 %v540_v29 }
  0x47   :  { %702 = vmatpush.bf16.msrb.mxu0 %v1029_v34  ;;  %715 = vmatpush.bf16.msrb.mxu1 %v1033_v35 }
  0x49   :  { %728 = vmatpush.bf16.msrb.mxu2 %v1037_v36  ;;  %741 = vmatpush.bf16.msrb.mxu3 %v1041_v40 }
  0x4b   :  { %703 = vmatpush.bf16.msrb.mxu0 %v965_v46  ;;  %716 = vmatpush.bf16.msrb.mxu1 %v969_v47 }
  0x4d   :  { %729 = vmatpush.bf16.msrb.mxu2 %v973_v48  ;;  %742 = vmatpush.bf16.msrb.mxu3 %v977_v52 }
  0x4f   :  { %704 = vmatpush.bf16.msrb.mxu0 %v901_v58  ;;  %717 = vmatpush.bf16.msrb.mxu1 %v905_v59 }
  0x51   :  { %730 = vmatpush.bf16.msrb.mxu2 %v909_v60  ;;  %743 = vmatpush.bf16.msrb.mxu3 %v913_v0 }
  0x53   :  { %705 = vmatpush.bf16.msrb.mxu0 %v837_v7  ;;  %718 = vmatpush.bf16.msrb.mxu1 %v841_v8 }
  0x55   :  { %731 = vmatpush.bf16.msrb.mxu2 %v845_v9  ;;  %744 = vmatpush.bf16.msrb.mxu3 %v849_v10 }
  0x56   :  { %1118 = vmatmul.msk.bf16.vlgmr.msrb.gmra.mxu0 %vm486_vm2, %v1402_v26  ;;  %1119 = vmatmul.msk.bf16.vlgmr.msrb.gmra.mxu1 %vm486_vm2, %v1402_v26 }
  0x58   :  { %1120 = vmatmul.msk.bf16.vlgmr.msrb.gmra.mxu2 %vm486_vm2, %v1402_v26  ;;  %1121 = vmatmul.msk.bf16.vlgmr.msrb.gmra.mxu3 %vm486_vm2, %v1402_v26 }
  0x92   :  { %v100_v33 = vpop.permute.xlu0 %99 }
  0x97   :  { %v551_v11 = vpop.f32.mrf.mxu0  ;;  %v564_v12 = vpop.f32.mrf.mxu1 }
  0x98   :  { %v552_v36 = vadd.f32 %v551_v11, %v100_v33  ;;  %v565_v39 = vadd.f32 %v564_v12, %v100_v33 }
  0x9a   :  { %v750_v47 = vmax.f32 %v552_v36, 0.0  ;;  %v751_v50 = vmax.f32 %v565_v39, 0.0 }
  0x9f   :  { %v577_v13 = vpop.f32.mrf.mxu2  ;;  %v590_v14 = vpop.f32.mrf.mxu3 }
  0xa0   :  { %v553_v15 = vpop.f32.mrf.mxu0  ;;  %v566_v16 = vpop.f32.mrf.mxu1  ;;  %v578_v58 = vadd.f32 %v577_v13, %v100_v33  ;;  %v591_v61 = vadd.f32 %v590_v14, %v100_v33 }
  0xa2   :  { %v752_v10 = vmax.f32 %v578_v58, 0.0  ;;  %v753_v16 = vmax.f32 %v591_v61, 0.0 }
  0xa7   :  { %v579_v17 = vpop.f32.mrf.mxu2  ;;  %v592_v18 = vpop.f32.mrf.mxu3 }
  0xab   :  { %v603_v19 = vpop.f32.mrf.mxu0  ;;  %v616_v20 = vpop.f32.mrf.mxu1 }
  0xac   :  { %v604_v5 = vadd.f32 %v603_v19, %v100_v33  ;;  %v617_v34 = vadd.f32 %v616_v20, %v100_v33 }
  0xae   :  { %v754_v42 = vmax.f32 %v604_v5, 0.0  ;;  %v755_v45 = vmax.f32 %v617_v34, 0.0 }
  0xb0   :  { %v766_v54 = vmax.f32 %v750_v47, %v754_v42  ;;  %v767_v57 = vmax.f32 %v751_v50, %v755_v45 }
  0xb3   :  { %v629_v21 = vpop.f32.mrf.mxu2  ;;  %v642_v22 = vpop.f32.mrf.mxu3 }
  0xb4   :  { %v605_v23 = vpop.f32.mrf.mxu0  ;;  %v618_v24 = vpop.f32.mrf.mxu1  ;;  %v630_v51 = vadd.f32 %v629_v21, %v100_v33  ;;  %v643_v55 = vadd.f32 %v642_v22, %v100_v33 }
  0xb6   :  { %v756_v1 = vmax.f32 %v630_v51, 0.0  ;;  %v757_v7 = vmax.f32 %v643_v55, 0.0 }
  0xb8   :  { %v768_v18 = vmax.f32 %v752_v10, %v756_v1  ;;  %v769_v19 = vmax.f32 %v753_v16, %v757_v7 }
  0xbb   :  { %v631_v25 = vpop.f32.mrf.mxu2  ;;  %v644_v27 = vpop.f32.mrf.mxu3 }
  0xbf   :  { %v655_v28 = vpop.f32.mrf.mxu0  ;;  %v668_v29 = vpop.f32.mrf.mxu1 }
  0xc0   :  { %v656_v37 = vadd.f32 %v655_v28, %v100_v33  ;;  %v669_v40 = vadd.f32 %v668_v29, %v100_v33 }
  0xc2   :  { %v758_v48 = vmax.f32 %v656_v37, 0.0  ;;  %v759_v52 = vmax.f32 %v669_v40, 0.0 }
  0xc7   :  { %v681_v30 = vpop.f32.mrf.mxu2  ;;  %v694_v26 = vpop.f32.mrf.mxu3 }
  0xc8   :  { %v657_v31 = vpop.f32.mrf.mxu0  ;;  %v670_v32 = vpop.f32.mrf.mxu1  ;;  %v682_v59 = vadd.f32 %v681_v30, %v100_v33  ;;  %v695_v62 = vadd.f32 %v694_v26, %v100_v33 }
  0xca   :  { %v760_v11 = vmax.f32 %v682_v59, 0.0  ;;  %v761_v13 = vmax.f32 %v695_v62, 0.0 }
  0xcf   :  { %v683_v35 = vpop.f32.mrf.mxu2  ;;  %v696_v38 = vpop.f32.mrf.mxu3 }
  0xd3   :  { %v707_v41 = vpop.f32.mrf.mxu0  ;;  %v720_v44 = vpop.f32.mrf.mxu1 }
  0xd4   :  { %v708_v43 = vadd.f32 %v707_v41, %v100_v33  ;;  %v721_v46 = vadd.f32 %v720_v44, %v100_v33 }
  0xd6   :  { %v762_v49 = vmax.f32 %v708_v43, 0.0  ;;  %v763_v53 = vmax.f32 %v721_v46, 0.0 }
  0xd8   :  { %v770_v56 = vmax.f32 %v758_v48, %v762_v49  ;;  %v771_v60 = vmax.f32 %v759_v52, %v763_v53 }
  0xda   :  { %v774_v63 = vmax.f32 %v766_v54, %v770_v56  ;;  %v775_v2 = vmax.f32 %v767_v57, %v771_v60 }
  0xdb   :  { %v733_v0 = vpop.f32.mrf.mxu2  ;;  %v746_v4 = vpop.f32.mrf.mxu3 }
  0xdc   :  { %v734_v3 = vadd.f32 %v733_v0, %v100_v33  ;;  %v709_v6 = vpop.f32.mrf.mxu0  ;;  %v747_v8 = vadd.f32 %v746_v4, %v100_v33  ;;  %v722_v9 = vpop.f32.mrf.mxu1  ;;  %v778_v12 = vpack.c.bf16 %v775_v2, %v774_v63 }
  0xde   :  { %v764_v15 = vmax.f32 %v734_v3, 0.0  ;;  %v765_v17 = vmax.f32 %v747_v8, 0.0  ;;  %780 = vst [vmem:[%s1774_s3] sm:$0x77] %v778_v12 }
  0xe0   :  { %v772_v14 = vmax.f32 %v760_v11, %v764_v15  ;;  %v773_v20 = vmax.f32 %v761_v13, %v765_v17 }
  0xe2   :  { %v776_v21 = vmax.f32 %v768_v18, %v772_v14  ;;  %v777_v22 = vmax.f32 %v769_v19, %v773_v20 }
  0xe3   :  { %v735_v23 = vpop.f32.mrf.mxu2  ;;  %v748_v24 = vpop.f32.mrf.mxu3 }
  0xe4   :  { %v779_v25 = vpack.c.bf16 %v777_v22, %v776_v21 }
  0xe6   :  { %781 = vst [vmem:[%s1774_s3 + $0x8] sm:$0x77] %v779_v25 }

// kernel: base_model_forward.3
= control target key start
LH: loop header
LB: loop body
LE: loop exit
PB: predicated region body
PF: predicated region fallthrough
CT: control target
= control target key end

     0   :  { %vm815_vm0 = vcmask 1042432   ;;  %s4334_s0 = inlined_call_operand.vmem [shape: bf16[800,150], index: 0, kind: input, shape index: {}]   ;;  %s4335_s1 = inlined_call_operand.vmem [shape: bf16[150,16], index: 1, kind: input, shape index: {}]   ;;  %s4336_s2 = inlined_call_operand.vmem [shape: f32[1,16], index: 2, kind: input, shape index: {}]   ;;  %s4337_s3 = inlined_call_operand.vmem [shape: f32[400,120], index: 3, kind: input, shape index: {}]   ;;  %s4338_s4 = inlined_call_operand.vmem [shape: f32[1,120], index: 4, kind: input, shape index: {}]   ;;  %s4339_s5 = inlined_call_operand.vmem [shape: f32[120,84], index: 5, kind: input, shape index: {}]   ;;  %s4340_s6 = inlined_call_operand.vmem [shape: f32[1,84], index: 6, kind: input, shape index: {}]   ;;  %s4341_s7 = inlined_call_operand.vmem [shape: f32[84,10], index: 7, kind: input, shape index: {}]   ;;  %s4342_s8 = inlined_call_operand.vmem [shape: f32[1,10], index: 8, kind: input, shape index: {}]   ;;  %s4343_s9 = inlined_call_operand.hbm [shape: f32[2,10], index: 9, kind: output, shape index: {}]  }
   0x1   :  { %v2943_v0 = vld [vmem:[%s4335_s1 + $0x38] sm:$0xff]  ;;  %v152_v1 = vld [vmem:[%s4335_s1 + $0x48] sm:$0x7]  ;;  %v2942_v3 = vld [vmem:[%s4335_s1 + $0x30] sm:$0xff] }
   0x2   :  { %v644_v2 = vunpack.c.l.b16 %v152_v1  ;;  %819 = vmatpush.bf16.msra.mxu0 %v2943_v0  ;;  %2945 = vmatpush.bf16.msra.mxu2 %v2943_v0  ;;  %v2944_v6 = vld [vmem:[%s4335_s1 + $0x40] sm:$0xff]  ;;  %v2941_v7 = vld [vmem:[%s4335_s1 + $0x28] sm:$0xff] }
   0x3   :  { %v2836_v8 = vld [vmem:[%s4334_s0 + $0x4] sm:$0xf]  ;;  %v2326_v9 = vld [vmem:[%s4334_s0 + $0x8] sm:$0xf0] }
   0x4   :  { %v654_v4 = vpack.c.b16 %v644_v2, %v644_v2 }
   0x6   :  { %v817_v5 = vsel %vm815_vm0, %v654_v4, 0  ;;  %820 = vmatpush.bf16.msra.mxu0 %v2942_v3  ;;  %2946 = vmatpush.bf16.msra.mxu2 %v2942_v3 }
   0x7   :  { %1084 = vmatpush.bf16.msra.mxu1 %v817_v5  ;;  %2953 = vmatpush.bf16.msra.mxu3 %v817_v5 }
   0x8   :  { %14 = vsyncpa [#allocation4], 0  ;;  %v2329_v10 = vor.u32 %v2836_v8, %v2326_v9  ;;  %vm664_vm1 = vcmask 179200   ;;  %v2940_v11 = vld [vmem:[%s4335_s1 + $0x20] sm:$0xff]  ;;  %v2939_v12 = vld [vmem:[%s4335_s1 + $0x18] sm:$0xff]  ;;  %vm1512_vm2 = vcmask 130048  }
   0x9   :  { %v2896_v13 = vld [vmem:[%s4334_s0 + $0x1e4] sm:$0xf]  ;;  %v2566_v14 = vld [vmem:[%s4334_s0 + $0x1e8] sm:$0xf0]  ;;  %v2938_v15 = vld [vmem:[%s4335_s1 + $0x10] sm:$0xff]  ;;  %vm2280_vm3 = vcmask 1043456  }
   0xa   :  { %821 = vmatpush.bf16.msra.mxu0 %v2941_v7  ;;  %2947 = vmatpush.bf16.msra.mxu2 %v2941_v7  ;;  %v2569_v16 = vor.u32 %v2896_v13, %v2566_v14  ;;  %v2937_v17 = vld [vmem:[%s4335_s1 + $0x8] sm:$0xff]  ;;  %v2838_v18 = vld [vmem:[%s4334_s0 + $0x14] sm:$0xf]  ;;  %v2334_v19 = vld [vmem:[%s4334_s0 + $0x18] sm:$0xf0]  ;;  %vm2236_vm4 = vcmask 982016  }
   0xb   :  { %1085 = vmatpush.bf16.msra.mxu1 %v2944_v6  ;;  %2954 = vmatpush.bf16.msra.mxu3 %v2944_v6  ;;  %v2337_v20 = vor.u32 %v2838_v18, %v2334_v19  ;;  %v2936_v21 = vld [vmem:[%s4335_s1] sm:$0xff]  ;;  %v2837_v23 = vld [vmem:[%s4334_s0 + $0x4] sm:$0xf0]  ;;  %v2556_v24 = vld [vmem:[%s4334_s0 + $0x1d0] sm:$0xf]  ;;  %vm2276_vm5 = vcmask 687104  }
   0xc   :  { %v2324_v22 = vld [vmem:[%s4334_s0] sm:$0xf]  ;;  %v2895_v25 = vld [vmem:[%s4334_s0 + $0x1d4] sm:$0xf0]  ;;  %v2898_v28 = vld [vmem:[%s4334_s0 + $0x1f4] sm:$0xf] }
   0xd   :  { %v2325_v26 = vor.u32 %v2837_v23, %v2324_v22  ;;  %v2557_v27 = vor.u32 %v2895_v25, %v2556_v24  ;;  %v2574_v29 = vld [vmem:[%s4334_s0 + $0x1f8] sm:$0xf0]  ;;  %v2840_v31 = vld [vmem:[%s4334_s0 + $0x24] sm:$0xf]  ;;  %v2342_v32 = vld [vmem:[%s4334_s0 + $0x28] sm:$0xf0] }
   0xe   :  { %2758 = vmatmul.msk.bf16.vlgmr.msra.gmra.mxu1 %vm664_vm1, %v2329_v10  ;;  %822 = vmatpush.bf16.msra.mxu0 %v2940_v11  ;;  %v2577_v30 = vor.u32 %v2898_v28, %v2574_v29  ;;  %v2345_v33 = vor.u32 %v2840_v31, %v2342_v32  ;;  %v2332_v34 = vld [vmem:[%s4334_s0 + $0x10] sm:$0xf]  ;;  %v2839_v35 = vld [vmem:[%s4334_s0 + $0x14] sm:$0xf0]  ;;  %v2564_v36 = vld [vmem:[%s4334_s0 + $0x1e0] sm:$0xf] }
   0xf   :  { %2948 = vmatpush.bf16.msra.mxu2 %v2940_v11  ;;  %2788 = vmatmul.msk.bf16.vlgmr.msra.gmra.mxu3 %vm664_vm1, %v2569_v16  ;;  %v2897_v37 = vld [vmem:[%s4334_s0 + $0x1e4] sm:$0xf0]  ;;  %v2333_v38 = vor.u32 %v2839_v35, %v2332_v34  ;;  %v2900_v40 = vld [vmem:[%s4334_s0 + $0x204] sm:$0xf]  ;;  %v2582_v41 = vld [vmem:[%s4334_s0 + $0x208] sm:$0xf0] }
  0x10   :  { %v2565_v39 = vor.u32 %v2897_v37, %v2564_v36  ;;  %v2585_v42 = vor.u32 %v2900_v40, %v2582_v41  ;;  %v2842_v43 = vld [vmem:[%s4334_s0 + $0x34] sm:$0xf]  ;;  %v2350_v44 = vld [vmem:[%s4334_s0 + $0x38] sm:$0xf0]  ;;  %v2340_v46 = vld [vmem:[%s4334_s0 + $0x20] sm:$0xf] }
  0x11   :  { %v2353_v45 = vor.u32 %v2842_v43, %v2350_v44  ;;  %v2841_v47 = vld [vmem:[%s4334_s0 + $0x24] sm:$0xf0]  ;;  %v2572_v48 = vld [vmem:[%s4334_s0 + $0x1f0] sm:$0xf]  ;;  %v2899_v49 = vld [vmem:[%s4334_s0 + $0x1f4] sm:$0xf0] }
  0x12   :  { %823 = vmatpush.bf16.msra.mxu0 %v2939_v12  ;;  %v2341_v50 = vor.u32 %v2841_v47, %v2340_v46  ;;  %v2573_v51 = vor.u32 %v2899_v49, %v2572_v48  ;;  %v2902_v52 = vld [vmem:[%s4334_s0 + $0x214] sm:$0xf]  ;;  %v2590_v53 = vld [vmem:[%s4334_s0 + $0x218] sm:$0xf0]  ;;  %v2844_v55 = vld [vmem:[%s4334_s0 + $0x44] sm:$0xf] }
  0x13   :  { %2949 = vmatpush.bf16.msra.mxu2 %v2939_v12  ;;  %v2593_v54 = vor.u32 %v2902_v52, %v2590_v53  ;;  %v2358_v56 = vld [vmem:[%s4334_s0 + $0x48] sm:$0xf0]  ;;  %v2348_v58 = vld [vmem:[%s4334_s0 + $0x30] sm:$0xf]  ;;  %v2843_v59 = vld [vmem:[%s4334_s0 + $0x34] sm:$0xf0] }
  0x14   :  { %v2361_v57 = vor.u32 %v2844_v55, %v2358_v56  ;;  %v2580_v60 = vld [vmem:[%s4334_s0 + $0x200] sm:$0xf]  ;;  %v2901_v61 = vld [vmem:[%s4334_s0 + $0x204] sm:$0xf0]  ;;  %v2349_v62 = vor.u32 %v2843_v59, %v2348_v58  ;;  %v2904_v0 = vld [vmem:[%s4334_s0 + $0x224] sm:$0xf] }
  0x15   :  { %v2581_v63 = vor.u32 %v2901_v61, %v2580_v60  ;;  %v2598_v1 = vld [vmem:[%s4334_s0 + $0x228] sm:$0xf0]  ;;  %v2846_v3 = vld [vmem:[%s4334_s0 + $0x54] sm:$0xf]  ;;  %v2366_v4 = vld [vmem:[%s4334_s0 + $0x58] sm:$0xf0] }
  0x16   :  { %824 = vmatpush.bf16.msra.mxu0 %v2938_v15  ;;  %v2601_v2 = vor.u32 %v2904_v0, %v2598_v1  ;;  %v2369_v5 = vor.u32 %v2846_v3, %v2366_v4  ;;  %v2356_v6 = vld [vmem:[%s4334_s0 + $0x40] sm:$0xf]  ;;  %v2845_v7 = vld [vmem:[%s4334_s0 + $0x44] sm:$0xf0]  ;;  %v2588_v8 = vld [vmem:[%s4334_s0 + $0x210] sm:$0xf] }
  0x17   :  { %2950 = vmatpush.bf16.msra.mxu2 %v2938_v15  ;;  %v2903_v9 = vld [vmem:[%s4334_s0 + $0x214] sm:$0xf0]  ;;  %v2357_v10 = vor.u32 %v2845_v7, %v2356_v6  ;;  %v2906_v12 = vld [vmem:[%s4334_s0 + $0x234] sm:$0xf]  ;;  %v2606_v13 = vld [vmem:[%s4334_s0 + $0x238] sm:$0xf0] }
  0x18   :  { %v2589_v11 = vor.u32 %v2903_v9, %v2588_v8  ;;  %v2609_v14 = vor.u32 %v2906_v12, %v2606_v13  ;;  %v2848_v15 = vld [vmem:[%s4334_s0 + $0x64] sm:$0xf]  ;;  %v2374_v16 = vld [vmem:[%s4334_s0 + $0x68] sm:$0xf0]  ;;  %v2364_v18 = vld [vmem:[%s4334_s0 + $0x50] sm:$0xf] }
  0x19   :  { %v2847_v19 = vld [vmem:[%s4334_s0 + $0x54] sm:$0xf0]  ;;  %v2908_v24 = vld [vmem:[%s4334_s0 + $0x244] sm:$0xf]  ;;  %v2614_v25 = vld [vmem:[%s4334_s0 + $0x248] sm:$0xf0] }
  0x1a   :  { %825 = vmatpush.bf16.msra.mxu0 %v2937_v17  ;;  %v2365_v22 = vor.u32 %v2847_v19, %v2364_v18  ;;  %v2382_v28 = vld [vmem:[%s4334_s0 + $0x78] sm:$0xf0]  ;;  %v2849_v31 = vld [vmem:[%s4334_s0 + $0x64] sm:$0xf0]  ;;  %v2604_v32 = vld [vmem:[%s4334_s0 + $0x230] sm:$0xf] }
  0x1b   :  { %2951 = vmatpush.bf16.msra.mxu2 %v2937_v17  ;;  %v2377_v17 = vor.u32 %v2848_v15, %v2374_v16  ;;  %v2910_v36 = vld [vmem:[%s4334_s0 + $0x254] sm:$0xf]  ;;  %v2622_v37 = vld [vmem:[%s4334_s0 + $0x258] sm:$0xf0]  ;;  %v2390_v40 = vld [vmem:[%s4334_s0 + $0x88] sm:$0xf0] }
  0x1c   :  { %v2380_v43 = vld [vmem:[%s4334_s0 + $0x70] sm:$0xf]  ;;  %v2851_v44 = vld [vmem:[%s4334_s0 + $0x74] sm:$0xf0]  ;;  %v2909_v46 = vld [vmem:[%s4334_s0 + $0x244] sm:$0xf0] }
  0x1d   :  { %v2381_v47 = vor.u32 %v2851_v44, %v2380_v43  ;;  %v2912_v49 = vld [vmem:[%s4334_s0 + $0x264] sm:$0xf]  ;;  %v2854_v53 = vld [vmem:[%s4334_s0 + $0x94] sm:$0xf]  ;;  %v2388_v58 = vld [vmem:[%s4334_s0 + $0x80] sm:$0xf] }
  0x1e   :  { %2759 = vmatmul.msk.bf16.gmra.mxu1 %vm664_vm1, %v2337_v20  ;;  %826 = vmatpush.bf16.msra.mxu0 %v2936_v21  ;;  %v2596_v20 = vld [vmem:[%s4334_s0 + $0x220] sm:$0xf]  ;;  %v2853_v59 = vld [vmem:[%s4334_s0 + $0x84] sm:$0xf0]  ;;  %v2620_v61 = vld [vmem:[%s4334_s0 + $0x250] sm:$0xf] }
  0x1f   :  { %2952 = vmatpush.bf16.msra.mxu2 %v2936_v21  ;;  %2789 = vmatmul.msk.bf16.gmra.mxu3 %vm664_vm1, %v2577_v30  ;;  %v2905_v21 = vld [vmem:[%s4334_s0 + $0x224] sm:$0xf0]  ;;  %v2372_v30 = vld [vmem:[%s4334_s0 + $0x60] sm:$0xf]  ;;  %v2914_v4 = vld [vmem:[%s4334_s0 + $0x274] sm:$0xf] }
  0x20   :  { %v2597_v23 = vor.u32 %v2905_v21, %v2596_v20  ;;  %v2373_v34 = vor.u32 %v2849_v31, %v2372_v30  ;;  %v3305_v60 = vld [vmem:[%s4336_s2] ss:$0 sm:$0xff]  ;;  %v2406_v12 = vld [vmem:[%s4334_s0 + $0xa8] sm:$0xf0]  ;;  %v2855_v18 = vld [vmem:[%s4334_s0 + $0x94] sm:$0xf0] }
  0x21   :  { %827 = vmatmul.bf16.vlgmr.msra.gmra.mxu0 %v2325_v26  ;;  %v2617_v26 = vor.u32 %v2908_v24, %v2614_v25  ;;  %v2628_v19 = vld [vmem:[%s4334_s0 + $0x260] sm:$0xf]  ;;  %v2913_v20 = vld [vmem:[%s4334_s0 + $0x264] sm:$0xf0]  ;;  %s2987_s23 = smov [#allocation3]   ;;  %vm2304_vm6 = vcmask 74752  }
  0x22   :  { %972 = vmatmul.bf16.vlgmr.msra.gmra.mxu2 %v2557_v27  ;;  %v2850_v27 = vld [vmem:[%s4334_s0 + $0x74] sm:$0xf]  ;;  %v2629_v25 = vor.u32 %v2913_v20, %v2628_v19  ;;  %v2404_v43 = vld [vmem:[%s4334_s0 + $0xa0] sm:$0xf]  ;;  %v2857_v44 = vld [vmem:[%s4334_s0 + $0xa4] sm:$0xf0] }
  0x23   :  { %v2385_v29 = vor.u32 %v2850_v27, %v2382_v28  ;;  %v2916_v28 = vld [vmem:[%s4334_s0 + $0x284] sm:$0xf]  ;;  %s2311_s24 = sshll.u32 %s2987_s23, 4  ;;  %s2312_s24 = int_to_ptr.vmem [resolvable:$true] %s2311_s24 }
  0x2e   :  { %2760 = vmatmul.msk.bf16.gmra.mxu1 %vm664_vm1, %v2345_v33  ;;  %v2907_v33 = vld [vmem:[%s4334_s0 + $0x234] sm:$0xf0] }
  0x2f   :  { %2790 = vmatmul.msk.bf16.gmra.mxu3 %vm664_vm1, %v2585_v42  ;;  %v2605_v35 = vor.u32 %v2907_v33, %v2604_v32 }
  0x31   :  { %832 = vmatmul.bf16.gmra.mxu0 %v2333_v38  ;;  %v2625_v38 = vor.u32 %v2910_v36, %v2622_v37  ;;  %v2414_v36 = vld [vmem:[%s4334_s0 + $0xb8] sm:$0xf0] }
  0x32   :  { %977 = vmatmul.bf16.gmra.mxu2 %v2565_v39  ;;  %v2852_v39 = vld [vmem:[%s4334_s0 + $0x84] sm:$0xf] }
  0x33   :  { %v2393_v41 = vor.u32 %v2852_v39, %v2390_v40 }
  0x3e   :  { %2761 = vmatmul.msk.bf16.gmra.mxu1 %vm664_vm1, %v2353_v45  ;;  %v2612_v45 = vld [vmem:[%s4334_s0 + $0x240] sm:$0xf] }
  0x3f   :  { %2791 = vmatmul.msk.bf16.gmra.mxu3 %vm664_vm1, %v2593_v54  ;;  %v2613_v48 = vor.u32 %v2909_v46, %v2612_v45  ;;  %v2398_v54 = vld [vmem:[%s4334_s0 + $0x98] sm:$0xf0]  ;;  %v2636_v45 = vld [vmem:[%s4334_s0 + $0x270] sm:$0xf]  ;;  %v2915_v46 = vld [vmem:[%s4334_s0 + $0x274] sm:$0xf0] }
  0x40   :  { %v2401_v55 = vor.u32 %v2854_v53, %v2398_v54 }
  0x41   :  { %837 = vmatmul.bf16.gmra.mxu0 %v2341_v50  ;;  %v2630_v50 = vld [vmem:[%s4334_s0 + $0x268] sm:$0xf0] }
  0x42   :  { %982 = vmatmul.bf16.gmra.mxu2 %v2573_v51  ;;  %v2633_v52 = vor.u32 %v2912_v49, %v2630_v50 }
  0x4e   :  { %2762 = vmatmul.msk.bf16.gmra.mxu1 %vm664_vm1, %v2361_v57 }
  0x4f   :  { %2792 = vmatmul.msk.bf16.gmra.mxu3 %vm664_vm1, %v2601_v2 }
  0x51   :  { %842 = vmatmul.bf16.gmra.mxu0 %v2349_v62  ;;  %v2911_v62 = vld [vmem:[%s4334_s0 + $0x254] sm:$0xf0] }
  0x52   :  { %987 = vmatmul.bf16.gmra.mxu2 %v2581_v63  ;;  %v2389_v63 = vor.u32 %v2853_v59, %v2388_v58  ;;  %v2621_v1 = vor.u32 %v2911_v62, %v2620_v61 }
  0x5e   :  { %2763 = vmatmul.msk.bf16.gmra.mxu1 %vm664_vm1, %v2369_v5  ;;  %v2638_v5 = vld [vmem:[%s4334_s0 + $0x278] sm:$0xf0] }
  0x5f   :  { %2793 = vmatmul.msk.bf16.gmra.mxu3 %vm664_vm1, %v2609_v14  ;;  %v2641_v7 = vor.u32 %v2914_v4, %v2638_v5 }
  0x61   :  { %847 = vmatmul.bf16.gmra.mxu0 %v2357_v10 }
  0x62   :  { %992 = vmatmul.bf16.gmra.mxu2 %v2589_v11  ;;  %v2856_v11 = vld [vmem:[%s4334_s0 + $0xa4] sm:$0xf] }
  0x63   :  { %v2409_v15 = vor.u32 %v2856_v11, %v2406_v12  ;;  %v2644_v11 = vld [vmem:[%s4334_s0 + $0x280] sm:$0xf]  ;;  %v2917_v12 = vld [vmem:[%s4334_s0 + $0x284] sm:$0xf0] }
  0x64   :  { %v2645_v19 = vor.u32 %v2917_v12, %v2644_v11 }
  0x6e   :  { %2764 = vmatmul.msk.bf16.gmra.mxu1 %vm664_vm1, %v2377_v17  ;;  %v2396_v17 = vld [vmem:[%s4334_s0 + $0x90] sm:$0xf] }
  0x6f   :  { %2794 = vmatmul.msk.bf16.gmra.mxu3 %vm664_vm1, %v2617_v26 }
  0x71   :  { %852 = vmatmul.bf16.gmra.mxu0 %v2365_v22  ;;  %v2397_v22 = vor.u32 %v2855_v18, %v2396_v17 }
  0x72   :  { %997 = vmatmul.bf16.gmra.mxu2 %v2597_v23 }
  0x7e   :  { %2765 = vmatmul.msk.bf16.gmra.mxu1 %vm664_vm1, %v2385_v29  ;;  %v2646_v29 = vld [vmem:[%s4334_s0 + $0x288] sm:$0xf0] }
  0x7f   :  { %2795 = vmatmul.msk.bf16.gmra.mxu3 %vm664_vm1, %v2625_v38  ;;  %v2649_v31 = vor.u32 %v2916_v28, %v2646_v29 }
  0x81   :  { %857 = vmatmul.bf16.gmra.mxu0 %v2373_v34 }
  0x82   :  { %1002 = vmatmul.bf16.gmra.mxu2 %v2605_v35  ;;  %v2858_v35 = vld [vmem:[%s4334_s0 + $0xb4] sm:$0xf] }
  0x8b   :  { %v1087_v42 = vpop.f32.mrf.mxu1 }
  0x8e   :  { %2766 = vmatmul.msk.bf16.gmra.mxu1 %vm664_vm1, %v2393_v41  ;;  %v2417_v41 = vor.u32 %v2858_v35, %v2414_v36 }
  0x8f   :  { %2796 = vmatmul.msk.bf16.gmra.mxu3 %vm664_vm1, %v2633_v52 }
  0x91   :  { %862 = vmatmul.bf16.gmra.mxu0 %v2381_v47 }
  0x92   :  { %1007 = vmatmul.bf16.gmra.mxu2 %v2613_v48  ;;  %v1237_v56 = vpop.f32.mrf.mxu3  ;;  %v2405_v48 = vor.u32 %v2857_v44, %v2404_v43  ;;  %v2861_v43 = vld [vmem:[%s4334_s0 + $0xc4] sm:$0xf0]  ;;  %v2652_v44 = vld [vmem:[%s4334_s0 + $0x290] sm:$0xf] }
  0x93   :  { %v1089_v51 = vpop.f32.mrf.mxu1 }
  0x9a   :  { %v1239_v8 = vpop.f32.mrf.mxu3 }
  0x9b   :  { %v1092_v57 = vpop.f32.mrf.mxu1 }
  0x9e   :  { %2767 = vmatmul.msk.bf16.gmra.mxu1 %vm664_vm1, %v2401_v55  ;;  %v828_v0 = vpop.f32.mrf.mxu0 }
  0x9f   :  { %v829_v2 = vadd.f32 %v3305_v60, %v828_v0  ;;  %2797 = vmatmul.msk.bf16.gmra.mxu3 %vm664_vm1, %v2641_v7  ;;  %v2860_v0 = vld [vmem:[%s4334_s0 + $0xc4] sm:$0xf] }
  0xa1   :  { %v3315_v3 = vadd.f32 %v1087_v42, %v829_v2  ;;  %867 = vmatmul.bf16.gmra.mxu0 %v2389_v63 }
  0xa2   :  { %1012 = vmatmul.bf16.gmra.mxu2 %v2621_v1  ;;  %v1242_v23 = vpop.f32.mrf.mxu3  ;;  %v2422_v1 = vld [vmem:[%s4334_s0 + $0xc8] sm:$0xf0] }
  0xa3   :  { %v1094_v6 = vpop.f32.mrf.mxu1 }
  0xa5   :  { %v3324_v9 = vpop.f32.mrf.mxu2 }
  0xa6   :  { %4344 = vst [vmem:[#allocation6_spill] sm:$0xff] %v3324_v9  ;;  %v830_v10 = vpop.f32.mrf.mxu0 }
  0xa7   :  { %v831_v13 = vadd.f32 %v3305_v60, %v830_v10  ;;  %v2859_v10 = vld [vmem:[%s4334_s0 + $0xb4] sm:$0xf0] }
  0xa9   :  { %v3333_v14 = vadd.f32 %v1089_v51, %v831_v13  ;;  %v2637_v51 = vor.u32 %v2915_v46, %v2636_v45  ;;  %v2919_v45 = vld [vmem:[%s4334_s0 + $0x294] sm:$0xf0] }
  0xaa   :  { %v1244_v38 = vpop.f32.mrf.mxu3 }
  0xab   :  { %v1097_v16 = vpop.f32.mrf.mxu1 }
  0xad   :  { %v3347_v21 = vpop.f32.mrf.mxu2 }
  0xae   :  { %4345 = vst [vmem:[#allocation7_spill] sm:$0xff] %v3347_v21  ;;  %2768 = vmatmul.msk.bf16.gmra.mxu1 %vm664_vm1, %v2409_v15  ;;  %v833_v24 = vpop.f32.mrf.mxu0 }
  0xaf   :  { %v834_v26 = vadd.f32 %v3305_v60, %v833_v24  ;;  %2798 = vmatmul.msk.bf16.gmra.mxu3 %vm664_vm1, %v2649_v31  ;;  %v2920_v24 = vld [vmem:[%s4334_s0 + $0x2a4] sm:$0xf] }
  0xb1   :  { %v3351_v27 = vadd.f32 %v1092_v57, %v834_v26  ;;  %872 = vmatmul.bf16.gmra.mxu0 %v2397_v22  ;;  %v2654_v57 = vld [vmem:[%s4334_s0 + $0x298] sm:$0xf0] }
  0xb2   :  { %1017 = vmatmul.bf16.gmra.mxu2 %v2629_v25  ;;  %v1247_v55 = vpop.f32.mrf.mxu3  ;;  %v2662_v25 = vld [vmem:[%s4334_s0 + $0x2a8] sm:$0xf0] }
  0xb3   :  { %v1099_v30 = vpop.f32.mrf.mxu1  ;;  %v2665_v28 = vor.u32 %v2920_v24, %v2662_v25 }
  0xb5   :  { %v978_v32 = vpop.f32.mrf.mxu2 }
  0xb6   :  { %v979_v33 = vadd.f32 %v3305_v60, %v978_v32  ;;  %v835_v34 = vpop.f32.mrf.mxu0 }
  0xb7   :  { %v836_v37 = vadd.f32 %v3305_v60, %v835_v34  ;;  %v2430_v34 = vld [vmem:[%s4334_s0 + $0xd8] sm:$0xf0] }
  0xb8   :  { %v3368_v39 = vadd.f32 %v1237_v56, %v979_v33  ;;  %v2918_v56 = vld [vmem:[%s4334_s0 + $0x294] sm:$0xf] }
  0xb9   :  { %v3370_v40 = vadd.f32 %v1094_v6, %v836_v37  ;;  %v2657_v59 = vor.u32 %v2918_v56, %v2654_v57  ;;  %v2425_v6 = vor.u32 %v2860_v0, %v2422_v1  ;;  %v2862_v33 = vld [vmem:[%s4334_s0 + $0xd4] sm:$0xf]  ;;  %v2864_v1 = vld [vmem:[%s4334_s0 + $0xe4] sm:$0xf] }
  0xba   :  { %v1249_v13 = vpop.f32.mrf.mxu3  ;;  %v2922_v57 = vld [vmem:[%s4334_s0 + $0x2b4] sm:$0xf] }
  0xbb   :  { %v1102_v42 = vpop.f32.mrf.mxu1 }
  0xbd   :  { %v980_v47 = vpop.f32.mrf.mxu2 }
  0xbe   :  { %2769 = vmatmul.msk.bf16.gmra.mxu1 %vm664_vm1, %v2417_v41  ;;  %v981_v49 = vadd.f32 %v3305_v60, %v980_v47  ;;  %v838_v50 = vpop.f32.mrf.mxu0 }
  0xbf   :  { %v839_v52 = vadd.f32 %v3305_v60, %v838_v50  ;;  %2799 = vmatmul.msk.bf16.gmra.mxu3 %vm664_vm1, %v2657_v59  ;;  %v2653_v50 = vor.u32 %v2919_v45, %v2652_v44  ;;  %v2446_v44 = vld [vmem:[%s4334_s0 + $0xf8] sm:$0xf0] }
  0xc0   :  { %v3387_v53 = vadd.f32 %v1239_v8, %v981_v49  ;;  %v2412_v8 = vld [vmem:[%s4334_s0 + $0xb0] sm:$0xf] }
  0xc1   :  { %v3389_v54 = vadd.f32 %v1097_v16, %v839_v52  ;;  %877 = vmatmul.bf16.gmra.mxu0 %v2405_v48  ;;  %v2413_v16 = vor.u32 %v2859_v10, %v2412_v8 }
  0xc2   :  { %1022 = vmatmul.bf16.gmra.mxu2 %v2637_v51 }
  0xc3   :  { %v1104_v58 = vpop.f32.mrf.mxu1 }
  0xc5   :  { %v983_v61 = vpop.f32.mrf.mxu2 }
  0xc6   :  { %v984_v62 = vadd.f32 %v3305_v60, %v983_v61  ;;  %v840_v63 = vpop.f32.mrf.mxu0 }
  0xc7   :  { %v841_v2 = vadd.f32 %v3305_v60, %v840_v63 }
  0xc8   :  { %v3406_v4 = vadd.f32 %v1242_v23, %v984_v62 }
  0xc9   :  { %v3408_v5 = vadd.f32 %v1099_v30, %v841_v2  ;;  %v1252_v30 = vpop.f32.mrf.mxu3  ;;  %v2438_v2 = vld [vmem:[%s4334_s0 + $0xe8] sm:$0xf0] }
  0xca   :  { %v2441_v10 = vor.u32 %v2864_v1, %v2438_v2 }
  0xcb   :  { %v1107_v7 = vpop.f32.mrf.mxu1 }
  0xcd   :  { %v985_v15 = vpop.f32.mrf.mxu2 }
  0xce   :  { %2770 = vmatmul.msk.bf16.gmra.mxu1 %vm664_vm1, %v2425_v6  ;;  %v986_v17 = vadd.f32 %v3305_v60, %v985_v15  ;;  %v843_v18 = vpop.f32.mrf.mxu0  ;;  %v2863_v15 = vld [vmem:[%s4334_s0 + $0xd4] sm:$0xf0] }
  0xcf   :  { %v844_v20 = vadd.f32 %v3305_v60, %v843_v18  ;;  %2800 = vmatmul.msk.bf16.gmra.mxu3 %vm664_vm1, %v2665_v28  ;;  %v1543_v18 = vld [vmem:[%s4337_s3 + $0x18] sm:$0xff] }
  0xd0   :  { %v3425_v22 = vadd.f32 %v1244_v38, %v986_v17  ;;  %v2433_v38 = vor.u32 %v2862_v33, %v2430_v34  ;;  %v2921_v17 = vld [vmem:[%s4334_s0 + $0x2a4] sm:$0xf0]  ;;  %1561 = vmatpush.msrb.mxu2 %v1543_v18 }
  0xd1   :  { %v3427_v23 = vadd.f32 %v1102_v42, %v844_v20  ;;  %882 = vmatmul.bf16.gmra.mxu0 %v2413_v16  ;;  %v2420_v42 = vld [vmem:[%s4334_s0 + $0xc0] sm:$0xf]  ;;  %v1254_v52 = vpop.f32.mrf.mxu3 }
  0xd2   :  { %1027 = vmatmul.bf16.gmra.mxu2 %v2645_v19  ;;  %v2421_v47 = vor.u32 %v2861_v43, %v2420_v42  ;;  %v2660_v16 = vld [vmem:[%s4334_s0 + $0x2a0] sm:$0xf]  ;;  %v2866_v43 = vld [vmem:[%s4334_s0 + $0xf4] sm:$0xf] }
  0xd3   :  { %v1109_v26 = vpop.f32.mrf.mxu1 }
  0xd5   :  { %v988_v29 = vpop.f32.mrf.mxu2 }
  0xd6   :  { %v989_v31 = vadd.f32 %v3305_v60, %v988_v29  ;;  %v845_v32 = vpop.f32.mrf.mxu0 }
  0xd7   :  { %v846_v35 = vadd.f32 %v3305_v60, %v845_v32  ;;  %v2678_v32 = vld [vmem:[%s4334_s0 + $0x2c8] sm:$0xf0] }
  0xd8   :  { %v3444_v36 = vadd.f32 %v1247_v55, %v989_v31  ;;  %v2924_v31 = vld [vmem:[%s4334_s0 + $0x2c4] sm:$0xf] }
  0xd9   :  { %v3446_v37 = vadd.f32 %v1104_v58, %v846_v35  ;;  %v2670_v58 = vld [vmem:[%s4334_s0 + $0x2b8] sm:$0xf0]  ;;  %v1257_v11 = vpop.f32.mrf.mxu3  ;;  %v2681_v34 = vor.u32 %v2924_v31, %v2678_v32 }
  0xda   :  { %v2673_v61 = vor.u32 %v2922_v57, %v2670_v58  ;;  %v2923_v57 = vld [vmem:[%s4334_s0 + $0x2b4] sm:$0xf0] }
  0xdb   :  { %v1112_v41 = vpop.f32.mrf.mxu1 }
  0xdd   :  { %v990_v46 = vpop.f32.mrf.mxu2 }
  0xde   :  { %2771 = vmatmul.msk.bf16.gmra.mxu1 %vm664_vm1, %v2433_v38  ;;  %v991_v48 = vadd.f32 %v3305_v60, %v990_v46  ;;  %v848_v49 = vpop.f32.mrf.mxu0 }
  0xdf   :  { %v849_v51 = vadd.f32 %v3305_v60, %v848_v49  ;;  %2801 = vmatmul.msk.bf16.gmra.mxu3 %vm664_vm1, %v2673_v61 }
  0xe0   :  { %v3463_v55 = vadd.f32 %v1249_v13, %v991_v48  ;;  %v2428_v13 = vld [vmem:[%s4334_s0 + $0xd0] sm:$0xf]  ;;  %v2449_v48 = vor.u32 %v2866_v43, %v2446_v44 }
  0xe1   :  { %v3465_v56 = vadd.f32 %v1107_v7, %v849_v51  ;;  %887 = vmatmul.bf16.gmra.mxu0 %v2421_v47  ;;  %v2429_v20 = vor.u32 %v2863_v15, %v2428_v13  ;;  %v1259_v35 = vpop.f32.mrf.mxu3  ;;  %v2865_v51 = vld [vmem:[%s4334_s0 + $0xe4] sm:$0xf0] }
  0xe2   :  { %1032 = vmatmul.bf16.gmra.mxu2 %v2653_v50  ;;  %v2436_v50 = vld [vmem:[%s4334_s0 + $0xe0] sm:$0xf] }
  0xe3   :  { %v1114_v59 = vpop.f32.mrf.mxu1 }
  0xe5   :  { %v993_v62 = vpop.f32.mrf.mxu2 }
  0xe6   :  { %v994_v63 = vadd.f32 %v3305_v60, %v993_v62  ;;  %v850_v0 = vpop.f32.mrf.mxu0 }
  0xe7   :  { %v851_v6 = vadd.f32 %v3305_v60, %v850_v0 }
  0xe8   :  { %v3482_v7 = vadd.f32 %v1252_v30, %v994_v63 }
  0xe9   :  { %v3484_v8 = vadd.f32 %v1109_v26, %v851_v6  ;;  %v2661_v26 = vor.u32 %v2921_v17, %v2660_v16  ;;  %v1262_v61 = vpop.f32.mrf.mxu3  ;;  %v1540_v16 = vld [vmem:[%s4337_s3 + $0x8] sm:$0xff] }
  0xea   :  { %1584 = vmatpush.msrb.mxu3 %v1540_v16 }
  0xeb   :  { %v1117_v12 = vpop.f32.mrf.mxu1 }
  0xed   :  { %v995_v19 = vpop.f32.mrf.mxu2 }
  0xee   :  { %2772 = vmatmul.msk.bf16.gmra.mxu1 %vm664_vm1, %v2441_v10  ;;  %v996_v24 = vadd.f32 %v3305_v60, %v995_v19  ;;  %v853_v25 = vpop.f32.mrf.mxu0  ;;  %v2926_v10 = vld [vmem:[%s4334_s0 + $0x2d4] sm:$0xf]  ;;  %v2868_v19 = vld [vmem:[%s4334_s0 + $0x104] sm:$0xf] }
  0xef   :  { %v854_v28 = vadd.f32 %v3305_v60, %v853_v25  ;;  %2802 = vmatmul.msk.bf16.gmra.mxu3 %vm664_vm1, %v2681_v34  ;;  %v2444_v34 = vld [vmem:[%s4334_s0 + $0xf0] sm:$0xf] }
  0xf0   :  { %v3504_v29 = vadd.f32 %v1254_v52, %v996_v24  ;;  %v2668_v52 = vld [vmem:[%s4334_s0 + $0x2b0] sm:$0xf] }
  0xf1   :  { %v3506_v30 = vadd.f32 %v1112_v41, %v854_v28  ;;  %892 = vmatmul.bf16.gmra.mxu0 %v2429_v20  ;;  %v2669_v0 = vor.u32 %v2923_v57, %v2668_v52  ;;  %v2454_v20 = vld [vmem:[%s4334_s0 + $0x108] sm:$0xf0]  ;;  %v1264_v25 = vpop.f32.mrf.mxu3  ;;  %v2928_v57 = vld [vmem:[%s4334_s0 + $0x2e4] sm:$0xf] }
  0xf2   :  { %1037 = vmatmul.bf16.gmra.mxu2 %v2661_v26  ;;  %v2457_v31 = vor.u32 %v2868_v19, %v2454_v20  ;;  %v2684_v20 = vld [vmem:[%s4334_s0 + $0x2d0] sm:$0xf] }
  0xf3   :  { %v1119_v33 = vpop.f32.mrf.mxu1 }
  0xf5   :  { %v998_v38 = vpop.f32.mrf.mxu2 }
  0xf6   :  { %v999_v42 = vadd.f32 %v3305_v60, %v998_v38  ;;  %v855_v41 = vpop.f32.mrf.mxu0  ;;  %v2676_v38 = vld [vmem:[%s4334_s0 + $0x2c0] sm:$0xf] }
  0xf7   :  { %v856_v45 = vadd.f32 %v3305_v60, %v855_v41 }
  0xf8   :  { %v3523_v46 = vadd.f32 %v1257_v11, %v999_v42  ;;  %v2686_v11 = vld [vmem:[%s4334_s0 + $0x2d8] sm:$0xf0]  ;;  %v2925_v42 = vld [vmem:[%s4334_s0 + $0x2c4] sm:$0xf0] }
  0xf9   :  { %v3525_v47 = vadd.f32 %v1114_v59, %v856_v45  ;;  %v2437_v59 = vor.u32 %v2865_v51, %v2436_v50  ;;  %v2689_v15 = vor.u32 %v2926_v10, %v2686_v11  ;;  %v2677_v45 = vor.u32 %v2925_v42, %v2676_v38  ;;  %v1267_v52 = vpop.f32.mrf.mxu3 }
  0xfb   :  { %v1122_v49 = vpop.f32.mrf.mxu1 }
  0xfd   :  { %v1000_v58 = vpop.f32.mrf.mxu2 }
  0xfe   :  { %2773 = vmatmul.msk.bf16.gmra.mxu1 %vm664_vm1, %v2449_v48  ;;  %v1001_v62 = vadd.f32 %v3305_v60, %v1000_v58  ;;  %v858_v63 = vpop.f32.mrf.mxu0  ;;  %v2694_v58 = vld [vmem:[%s4334_s0 + $0x2e8] sm:$0xf0] }
  0xff   :  { %v859_v1 = vadd.f32 %v3305_v60, %v858_v63  ;;  %2803 = vmatmul.msk.bf16.gmra.mxu3 %vm664_vm1, %v2689_v15 }
 0x100   :  { %v3542_v2 = vadd.f32 %v1259_v35, %v1001_v62  ;;  %v2867_v35 = vld [vmem:[%s4334_s0 + $0xf4] sm:$0xf0] }
 0x101   :  { %v3544_v6 = vadd.f32 %v1117_v12, %v859_v1  ;;  %897 = vmatmul.bf16.gmra.mxu0 %v2437_v59  ;;  %v2445_v41 = vor.u32 %v2867_v35, %v2444_v34  ;;  %v2462_v1 = vld [vmem:[%s4334_s0 + $0x118] sm:$0xf0]  ;;  %v1269_v19 = vpop.f32.mrf.mxu3 }
 0x102   :  { %1042 = vmatmul.bf16.gmra.mxu2 %v2669_v0  ;;  %v2870_v0 = vld [vmem:[%s4334_s0 + $0x114] sm:$0xf] }
 0x103   :  { %v1124_v13 = vpop.f32.mrf.mxu1  ;;  %v2465_v16 = vor.u32 %v2870_v0, %v2462_v1 }
 0x105   :  { %v1003_v17 = vpop.f32.mrf.mxu2 }
 0x106   :  { %v1004_v12 = vadd.f32 %v3305_v60, %v1003_v17  ;;  %v860_v18 = vpop.f32.mrf.mxu0 }
 0x107   :  { %v861_v24 = vadd.f32 %v3305_v60, %v860_v18  ;;  %v2869_v18 = vld [vmem:[%s4334_s0 + $0x104] sm:$0xf0] }
 0x108   :  { %v3564_v26 = vadd.f32 %v1262_v61, %v1004_v12  ;;  %v2697_v61 = vor.u32 %v2928_v57, %v2694_v58  ;;  %v2452_v12 = vld [vmem:[%s4334_s0 + $0x100] sm:$0xf]  ;;  %v2872_v58 = vld [vmem:[%s4334_s0 + $0x124] sm:$0xf] }
 0x109   :  { %v3566_v28 = vadd.f32 %v1119_v33, %v861_v24 }
 0x10b   :  { %v1127_v32 = vpop.f32.mrf.mxu1 }
 0x10d   :  { %v1005_v33 = vpop.f32.mrf.mxu2 }
 0x10e   :  { %2774 = vmatmul.msk.bf16.gmra.mxu1 %vm664_vm1, %v2457_v31  ;;  %v1006_v43 = vadd.f32 %v3305_v60, %v1005_v33  ;;  %v863_v44 = vpop.f32.mrf.mxu0 }
 0x10f   :  { %v864_v48 = vadd.f32 %v3305_v60, %v863_v44  ;;  %2804 = vmatmul.msk.bf16.gmra.mxu3 %vm664_vm1, %v2697_v61  ;;  %v2470_v61 = vld [vmem:[%s4334_s0 + $0x128] sm:$0xf0] }
 0x110   :  { %v3583_v50 = vadd.f32 %v1264_v25, %v1006_v43  ;;  %v2453_v25 = vor.u32 %v2869_v18, %v2452_v12  ;;  %v2702_v43 = vld [vmem:[%s4334_s0 + $0x2f8] sm:$0xf0]  ;;  %v2473_v0 = vor.u32 %v2872_v58, %v2470_v61  ;;  %v2692_v12 = vld [vmem:[%s4334_s0 + $0x2e0] sm:$0xf]  ;;  %v2929_v18 = vld [vmem:[%s4334_s0 + $0x2e4] sm:$0xf0] }
 0x111   :  { %v3585_v51 = vadd.f32 %v1122_v49, %v864_v48  ;;  %902 = vmatmul.bf16.gmra.mxu0 %v2445_v41  ;;  %v2930_v41 = vld [vmem:[%s4334_s0 + $0x2f4] sm:$0xf] }
 0x112   :  { %1047 = vmatmul.bf16.gmra.mxu2 %v2677_v45  ;;  %v2705_v45 = vor.u32 %v2930_v41, %v2702_v43  ;;  %v2710_v41 = vld [vmem:[%s4334_s0 + $0x308] sm:$0xf0] }
 0x113   :  { %v1129_v59 = vpop.f32.mrf.mxu1 }
 0x115   :  { %v1008_v62 = vpop.f32.mrf.mxu2 }
 0x116   :  { %v1009_v63 = vadd.f32 %v3305_v60, %v1008_v62  ;;  %v865_v49 = vpop.f32.mrf.mxu0 }
 0x117   :  { %v866_v10 = vadd.f32 %v3305_v60, %v865_v49 }
 0x118   :  { %v3602_v11 = vadd.f32 %v1267_v52, %v1009_v63  ;;  %v1272_v52 = vpop.f32.mrf.mxu3 }
 0x119   :  { %v3604_v15 = vadd.f32 %v1124_v13, %v866_v10  ;;  %v2927_v13 = vld [vmem:[%s4334_s0 + $0x2d4] sm:$0xf0]  ;;  %v2460_v10 = vld [vmem:[%s4334_s0 + $0x110] sm:$0xf] }
 0x11a   :  { %v2685_v35 = vor.u32 %v2927_v13, %v2684_v20 }
 0x11b   :  { %v1132_v17 = vpop.f32.mrf.mxu1 }
 0x11d   :  { %v1010_v24 = vpop.f32.mrf.mxu2 }
 0x11e   :  { %2775 = vmatmul.msk.bf16.gmra.mxu1 %vm664_vm1, %v2465_v16  ;;  %v1011_v31 = vadd.f32 %v3305_v60, %v1010_v24  ;;  %v868_v34 = vpop.f32.mrf.mxu0  ;;  %v2871_v16 = vld [vmem:[%s4334_s0 + $0x114] sm:$0xf0]  ;;  %v2693_v24 = vor.u32 %v2929_v18, %v2692_v12 }
 0x11f   :  { %v869_v38 = vadd.f32 %v3305_v60, %v868_v34  ;;  %2805 = vmatmul.msk.bf16.gmra.mxu3 %vm664_vm1, %v2705_v45  ;;  %v2931_v12 = vld [vmem:[%s4334_s0 + $0x2f4] sm:$0xf0] }
 0x120   :  { %v3621_v42 = vadd.f32 %v1269_v19, %v1011_v31  ;;  %v2461_v19 = vor.u32 %v2871_v16, %v2460_v10  ;;  %v1274_v31 = vpop.f32.mrf.mxu3  ;;  %v2873_v10 = vld [vmem:[%s4334_s0 + $0x124] sm:$0xf0]  ;;  %v2700_v16 = vld [vmem:[%s4334_s0 + $0x2f0] sm:$0xf] }
 0x121   :  { %v3623_v33 = vadd.f32 %v1127_v32, %v869_v38  ;;  %907 = vmatmul.bf16.gmra.mxu0 %v2453_v25  ;;  %v2932_v38 = vld [vmem:[%s4334_s0 + $0x304] sm:$0xf] }
 0x122   :  { %1052 = vmatmul.bf16.gmra.mxu2 %v2685_v35  ;;  %v2713_v45 = vor.u32 %v2932_v38, %v2710_v41 }
 0x123   :  { %v1134_v44 = vpop.f32.mrf.mxu1 }
 0x125   :  { %v1013_v48 = vpop.f32.mrf.mxu2 }
 0x126   :  { %v1014_v57 = vadd.f32 %v3305_v60, %v1013_v48  ;;  %v870_v32 = vpop.f32.mrf.mxu0 }
 0x127   :  { %v871_v62 = vadd.f32 %v3305_v60, %v870_v32 }
 0x128   :  { %v3640_v63 = vadd.f32 %v1272_v52, %v1014_v57  ;;  %v2478_v52 = vld [vmem:[%s4334_s0 + $0x138] sm:$0xf0] }
 0x129   :  { %v3642_v49 = vadd.f32 %v1129_v59, %v871_v62 }
 0x12b   :  { %v1137_v1 = vpop.f32.mrf.mxu1 }
 0x12d   :  { %v1015_v59 = vpop.f32.mrf.mxu2 }
 0x12e   :  { %2776 = vmatmul.msk.bf16.gmra.mxu1 %vm664_vm1, %v2473_v0  ;;  %v1016_v20 = vadd.f32 %v3305_v60, %v1015_v59  ;;  %v873_v13 = vpop.f32.mrf.mxu0  ;;  %v2468_v0 = vld [vmem:[%s4334_s0 + $0x120] sm:$0xf] }
 0x12f   :  { %v874_v25 = vadd.f32 %v3305_v60, %v873_v13  ;;  %2806 = vmatmul.msk.bf16.gmra.mxu3 %vm664_vm1, %v2713_v45  ;;  %v2469_v18 = vor.u32 %v2873_v10, %v2468_v0  ;;  %v2476_v10 = vld [vmem:[%s4334_s0 + $0x130] sm:$0xf] }
 0x130   :  { %v3659_v34 = vadd.f32 %v1274_v31, %v1016_v20 }
 0x131   :  { %v3661_v35 = vadd.f32 %v1132_v17, %v874_v25  ;;  %912 = vmatmul.bf16.gmra.mxu0 %v2461_v19  ;;  %v2874_v17 = vld [vmem:[%s4334_s0 + $0x134] sm:$0xf]  ;;  %v2701_v19 = vor.u32 %v2931_v12, %v2700_v16  ;;  %v2718_v25 = vld [vmem:[%s4334_s0 + $0x318] sm:$0xf0]  ;;  %v2875_v16 = vld [vmem:[%s4334_s0 + $0x134] sm:$0xf0] }
 0x132   :  { %1057 = vmatmul.bf16.gmra.mxu2 %v2693_v24  ;;  %v2481_v61 = vor.u32 %v2874_v17, %v2478_v52  ;;  %v2934_v24 = vld [vmem:[%s4334_s0 + $0x314] sm:$0xf]  ;;  %v2486_v17 = vld [vmem:[%s4334_s0 + $0x148] sm:$0xf0]  ;;  %v2708_v12 = vld [vmem:[%s4334_s0 + $0x300] sm:$0xf] }
 0x133   :  { %v1139_v43 = vpop.f32.mrf.mxu1  ;;  %v2721_v41 = vor.u32 %v2934_v24, %v2718_v25 }
 0x135   :  { %v3677_v32 = vpop.f32.mrf.mxu2 }
 0x136   :  { %v875_v48 = vpop.f32.mrf.mxu0 }
 0x137   :  { %v876_v57 = vadd.f32 %v3305_v60, %v875_v48  ;;  %v2876_v48 = vld [vmem:[%s4334_s0 + $0x144] sm:$0xf] }
 0x139   :  { %v3679_v58 = vadd.f32 %v1134_v44, %v876_v57  ;;  %v3693_v44 = vpop.f32.mrf.mxu3 }
 0x13b   :  { %v1142_v62 = vpop.f32.mrf.mxu1 }
 0x13d   :  { %v3705_v31 = vpop.f32.mrf.mxu2 }
 0x13e   :  { %2777 = vmatmul.msk.bf16.gmra.mxu1 %vm664_vm1, %v2481_v61  ;;  %v878_v59 = vpop.f32.mrf.mxu0  ;;  %v2489_v61 = vor.u32 %v2876_v48, %v2486_v17 }
 0x13f   :  { %v879_v20 = vadd.f32 %v3305_v60, %v878_v59  ;;  %2807 = vmatmul.msk.bf16.gmra.mxu3 %vm664_vm1, %v2721_v41  ;;  %v2477_v59 = vor.u32 %v2875_v16, %v2476_v10 }
 0x141   :  { %v3697_v13 = vadd.f32 %v1137_v1, %v879_v20  ;;  %917 = vmatmul.bf16.gmra.mxu0 %v2469_v18  ;;  %v3708_v45 = vpop.f32.mrf.mxu3  ;;  %v2933_v18 = vld [vmem:[%s4334_s0 + $0x304] sm:$0xf0] }
 0x142   :  { %1062 = vmatmul.bf16.gmra.mxu2 %v2701_v19  ;;  %4346 = vst [vmem:[#allocation8_spill] sm:$0xff] %v3708_v45  ;;  %v2709_v20 = vor.u32 %v2933_v18, %v2708_v12 }
 0x143   :  { %v1144_v38 = vpop.f32.mrf.mxu1 }
 0x146   :  { %v880_v1 = vpop.f32.mrf.mxu0 }
 0x147   :  { %v881_v52 = vadd.f32 %v3305_v60, %v880_v1 }
 0x149   :  { %v3717_v57 = vadd.f32 %v1139_v43, %v881_v52  ;;  %v3731_v43 = vpop.f32.mrf.mxu2  ;;  %v3735_v25 = vpop.f32.mrf.mxu3  ;;  %v2878_v52 = vld [vmem:[%s4334_s0 + $0x154] sm:$0xf] }
 0x14a   :  { %4347 = vst [vmem:[#allocation9_spill] sm:$0xff] %v3731_v43 }
 0x14b   :  { %v1147_v0 = vpop.f32.mrf.mxu1  ;;  %4348 = vst [vmem:[#allocation10_spill] sm:$0xff] %v3735_v25  ;;  %v2880_v25 = vld [vmem:[%s4334_s0 + $0x164] sm:$0xf] }
 0x14e   :  { %2778 = vmatmul.msk.bf16.gmra.mxu1 %vm664_vm1, %v2489_v61  ;;  %v883_v19 = vpop.f32.mrf.mxu0  ;;  %v2494_v61 = vld [vmem:[%s4334_s0 + $0x158] sm:$0xf0] }
 0x14f   :  { %v884_v24 = vadd.f32 %v3305_v60, %v883_v19  ;;  %v2877_v19 = vld [vmem:[%s4334_s0 + $0x144] sm:$0xf0] }
 0x151   :  { %v3737_v41 = vadd.f32 %v1142_v62, %v884_v24  ;;  %922 = vmatmul.bf16.gmra.mxu0 %v2477_v59  ;;  %v3739_v48 = vpop.f32.mrf.mxu2  ;;  %v2497_v62 = vor.u32 %v2878_v52, %v2494_v61  ;;  %v3750_v12 = vpop.f32.mrf.mxu3  ;;  %v2484_v59 = vld [vmem:[%s4334_s0 + $0x140] sm:$0xf] }
 0x152   :  { %1067 = vmatmul.bf16.gmra.mxu2 %v2709_v20  ;;  %4349 = vst [vmem:[#allocation11_spill] sm:$0xff] %v3739_v48  ;;  %v2716_v20 = vld [vmem:[%s4334_s0 + $0x310] sm:$0xf]  ;;  %v2485_v24 = vor.u32 %v2877_v19, %v2484_v59 }
 0x153   :  { %v1149_v1 = vpop.f32.mrf.mxu1  ;;  %4350 = vst [vmem:[#allocation12_spill] sm:$0xff] %v3750_v12 }
 0x156   :  { %v885_v17 = vpop.f32.mrf.mxu0 }
 0x157   :  { %v886_v10 = vadd.f32 %v3305_v60, %v885_v17 }
 0x159   :  { %v3748_v16 = vadd.f32 %v1144_v38, %v886_v10  ;;  %v2935_v38 = vld [vmem:[%s4334_s0 + $0x314] sm:$0xf0]  ;;  %v3766_v10 = vpop.f32.mrf.mxu2  ;;  %v3770_v12 = vpop.f32.mrf.mxu3 }
 0x15a   :  { %v2717_v52 = vor.u32 %v2935_v38, %v2716_v20  ;;  %4351 = vst [vmem:[#allocation13_spill] sm:$0xff] %v3766_v10  ;;  %v1338_v10 = vmax.f32 %v3333_v14, 0.0 }
 0x15b   :  { %v1152_v18 = vpop.f32.mrf.mxu1  ;;  %4352 = vst [vmem:[#allocation14_spill] sm:$0xff] %v3770_v12 }
 0x15e   :  { %2779 = vmatmul.msk.bf16.gmra.mxu1 %vm664_vm1, %v2497_v62  ;;  %v888_v17 = vpop.f32.mrf.mxu0  ;;  %v2502_v62 = vld [vmem:[%s4334_s0 + $0x168] sm:$0xf0] }
 0x15f   :  { %v889_v61 = vadd.f32 %v3305_v60, %v888_v17  ;;  %v2505_v20 = vor.u32 %v2880_v25, %v2502_v62  ;;  %v2879_v17 = vld [vmem:[%s4334_s0 + $0x154] sm:$0xf0] }
 0x161   :  { %v3768_v21 = vadd.f32 %v1147_v0, %v889_v61  ;;  %927 = vmatmul.bf16.gmra.mxu0 %v2485_v24  ;;  %v3779_v0 = vpop.f32.mrf.mxu2  ;;  %v2492_v24 = vld [vmem:[%s4334_s0 + $0x150] sm:$0xf]  ;;  %v3791_v25 = vpop.f32.mrf.mxu3 }
 0x162   :  { %1072 = vmatmul.bf16.gmra.mxu2 %v2717_v52  ;;  %4353 = vst [vmem:[#allocation15_spill] sm:$0xff] %v3779_v0  ;;  %v1337_v52 = vmax.f32 %v3315_v3, 0.0 }
 0x163   :  { %v1154_v9 = vpop.f32.mrf.mxu1  ;;  %4354 = vst [vmem:[#allocation16_spill] sm:$0xff] %v3791_v25 }
 0x166   :  { %v890_v48 = vpop.f32.mrf.mxu0 }
 0x167   :  { %v891_v59 = vadd.f32 %v3305_v60, %v890_v48 }
 0x169   :  { %v1150_v19 = vadd.f32 %v1149_v1, %v891_v59  ;;  %v2493_v1 = vor.u32 %v2879_v17, %v2492_v24  ;;  %v3795_v45 = vpop.f32.mrf.mxu2  ;;  %v2510_v24 = vld [vmem:[%s4334_s0 + $0x178] sm:$0xf0]  ;;  %v3806_v17 = vpop.f32.mrf.mxu3 }
 0x16a   :  { %4355 = vst [vmem:[#allocation17_spill] sm:$0xff] %v3795_v45  ;;  %v1340_v45 = vmax.f32 %v3370_v40, 0.0  ;;  %v2508_v40 = vld [vmem:[%s4334_s0 + $0x170] sm:$0xf] }
 0x16b   :  { %v1157_v38 = vpop.f32.mrf.mxu1  ;;  %v1362_v61 = vmax.f32 %v1150_v19, 0.0  ;;  %4357 = vst [vmem:[#allocation19_spill] sm:$0xff] %v3806_v17 }
 0x16d   :  { %v3788_v12 = vmax.f32 %v1337_v52, %v1362_v61 }
 0x16e   :  { %2780 = vmatmul.msk.bf16.gmra.mxu1 %vm664_vm1, %v2505_v20  ;;  %v893_v48 = vpop.f32.mrf.mxu0  ;;  %v2882_v20 = vld [vmem:[%s4334_s0 + $0x174] sm:$0xf] }
 0x16f   :  { %v894_v62 = vadd.f32 %v3305_v60, %v893_v48  ;;  %v2513_v14 = vor.u32 %v2882_v20, %v2510_v24 }
 0x171   :  { %v1153_v59 = vadd.f32 %v1152_v18, %v894_v62  ;;  %932 = vmatmul.bf16.gmra.mxu0 %v2493_v1  ;;  %v1339_v1 = vmax.f32 %v3351_v27, 0.0 }
 0x173   :  { %v1159_v0 = vpop.f32.mrf.mxu1  ;;  %v1363_v43 = vmax.f32 %v1153_v59, 0.0 }
 0x175   :  { %v3797_v3 = vmax.f32 %v1338_v10, %v1363_v43  ;;  %v2500_v43 = vld [vmem:[%s4334_s0 + $0x160] sm:$0xf]  ;;  %v2881_v10 = vld [vmem:[%s4334_s0 + $0x164] sm:$0xf0] }
 0x176   :  { %v895_v19 = vpop.f32.mrf.mxu0  ;;  %v2501_v59 = vor.u32 %v2881_v10, %v2500_v43  ;;  %v2518_v43 = vld [vmem:[%s4334_s0 + $0x188] sm:$0xf0] }
 0x177   :  { %4356 = vst [vmem:[#allocation18_spill] sm:$0xff] %v3797_v3  ;;  %v896_v18 = vadd.f32 %v3305_v60, %v895_v19  ;;  %v3818_v19 = vpop.f32.mrf.mxu2 }
 0x178   :  { %4359 = vst [vmem:[#allocation21_spill] sm:$0xff] %v3818_v19 }
 0x179   :  { %v1155_v52 = vadd.f32 %v1154_v9, %v896_v18  ;;  %v3821_v18 = vpop.f32.mrf.mxu3 }
 0x17a   :  { %4360 = vst [vmem:[#allocation22_spill] sm:$0xff] %v3821_v18  ;;  %v1342_v18 = vmax.f32 %v3408_v5, 0.0 }
 0x17b   :  { %v1162_v61 = vpop.f32.mrf.mxu1  ;;  %v1364_v48 = vmax.f32 %v1155_v52, 0.0 }
 0x17d   :  { %v3815_v62 = vmax.f32 %v1339_v1, %v1364_v48 }
 0x17e   :  { %2781 = vmatmul.msk.bf16.gmra.mxu1 %vm664_vm1, %v2513_v14  ;;  %v898_v9 = vpop.f32.mrf.mxu0  ;;  %v2884_v14 = vld [vmem:[%s4334_s0 + $0x184] sm:$0xf] }
 0x17f   :  { %4358 = vst [vmem:[#allocation20_spill] sm:$0xff] %v3815_v62  ;;  %v899_v20 = vadd.f32 %v3305_v60, %v898_v9  ;;  %v3833_v10 = vpop.f32.mrf.mxu2  ;;  %v2521_v48 = vor.u32 %v2884_v14, %v2518_v43  ;;  %v1346_v62 = vmax.f32 %v3484_v8, 0.0  ;;  %v3910_v8 = vld [vmem:[%s4336_s2] ss:$0 sm:$0xff] }
 0x180   :  { %4362 = vst [vmem:[#allocation24_spill] sm:$0xff] %v3833_v10 }
 0x181   :  { %v1158_v24 = vadd.f32 %v1157_v38, %v899_v20  ;;  %937 = vmatmul.bf16.gmra.mxu0 %v2501_v59  ;;  %v3842_v20 = vpop.f32.mrf.mxu3 }
 0x182   :  { %4363 = vst [vmem:[#allocation25_spill] sm:$0xff] %v3842_v20  ;;  %v1344_v20 = vmax.f32 %v3446_v37, 0.0  ;;  %v1539_v37 = vld [vmem:[%s4337_s3] sm:$0xff] }
 0x183   :  { %v1164_v17 = vpop.f32.mrf.mxu1  ;;  %v1365_v25 = vmax.f32 %v1158_v24, 0.0  ;;  %1585 = vmatpush.msrb.mxu3 %v1539_v37 }
 0x185   :  { %v3824_v27 = vmax.f32 %v1340_v45, %v1365_v25  ;;  %v2883_v45 = vld [vmem:[%s4334_s0 + $0x174] sm:$0xf0]  ;;  %v1341_v25 = vmax.f32 %v3389_v54, 0.0  ;;  %v1542_v54 = vld [vmem:[%s4337_s3 + $0x10] sm:$0xff] }
 0x186   :  { %v900_v52 = vpop.f32.mrf.mxu0  ;;  %1562 = vmatpush.msrb.mxu2 %v1542_v54 }
 0x187   :  { %4361 = vst [vmem:[#allocation23_spill] sm:$0xff] %v3824_v27  ;;  %v901_v38 = vadd.f32 %v3305_v60, %v900_v52 }
 0x189   :  { %v1160_v1 = vadd.f32 %v1159_v0, %v901_v38  ;;  %v2509_v0 = vor.u32 %v2883_v45, %v2508_v40  ;;  %v1040_v38 = vpop.f32.mrf.mxu2  ;;  %v2516_v45 = vld [vmem:[%s4334_s0 + $0x180] sm:$0xf] }
 0x18b   :  { %v1167_v59 = vpop.f32.mrf.mxu1  ;;  %v1366_v9 = vmax.f32 %v1160_v1, 0.0  ;;  %v1299_v1 = vpop.f32.mrf.mxu3 }
 0x18d   :  { %v3844_v24 = vmax.f32 %v1341_v25, %v1366_v9  ;;  %v2885_v9 = vld [vmem:[%s4334_s0 + $0x184] sm:$0xf0] }
 0x18e   :  { %2782 = vmatmul.msk.bf16.gmra.mxu1 %vm664_vm1, %v2521_v48  ;;  %v903_v52 = vpop.f32.mrf.mxu0  ;;  %v2886_v48 = vld [vmem:[%s4334_s0 + $0x194] sm:$0xf]  ;;  %v2517_v54 = vor.u32 %v2885_v9, %v2516_v45 }
 0x18f   :  { %4364 = vst [vmem:[#allocation26_spill] sm:$0xff] %v3844_v24  ;;  %v904_v14 = vadd.f32 %v3305_v60, %v903_v52 }
 0x191   :  { %v1163_v43 = vadd.f32 %v1162_v61, %v904_v14  ;;  %942 = vmatmul.bf16.gmra.mxu0 %v2509_v0  ;;  %v2526_v61 = vld [vmem:[%s4334_s0 + $0x198] sm:$0xf0]  ;;  %v1343_v0 = vmax.f32 %v3427_v23, 0.0  ;;  %v1043_v14 = vpop.f32.mrf.mxu2 }
 0x193   :  { %v1169_v10 = vpop.f32.mrf.mxu1  ;;  %v1367_v19 = vmax.f32 %v1163_v43, 0.0 }
 0x195   :  { %v3849_v27 = vmax.f32 %v1342_v18, %v1367_v19  ;;  %v2529_v19 = vor.u32 %v2886_v48, %v2526_v61  ;;  %v1302_v48 = vpop.f32.mrf.mxu3 }
 0x196   :  { %v905_v25 = vpop.f32.mrf.mxu0 }
 0x197   :  { %4365 = vst [vmem:[#allocation27_spill] sm:$0xff] %v3849_v27  ;;  %v906_v5 = vadd.f32 %v3305_v60, %v905_v25 }
 0x199   :  { %v1165_v40 = vadd.f32 %v1164_v17, %v906_v5  ;;  %v1045_v23 = vpop.f32.mrf.mxu2 }
 0x19b   :  { %v1172_v18 = vpop.f32.mrf.mxu1  ;;  %v1368_v52 = vmax.f32 %v1165_v40, 0.0 }
 0x19d   :  { %v3868_v43 = vmax.f32 %v1343_v0, %v1368_v52  ;;  %v2888_v0 = vld [vmem:[%s4334_s0 + $0x1a4] sm:$0xf]  ;;  %v2524_v52 = vld [vmem:[%s4334_s0 + $0x190] sm:$0xf] }
 0x19e   :  { %2783 = vmatmul.msk.bf16.gmra.mxu1 %vm664_vm1, %v2529_v19  ;;  %v908_v17 = vpop.f32.mrf.mxu0  ;;  %v2534_v19 = vld [vmem:[%s4334_s0 + $0x1a8] sm:$0xf0] }
 0x19f   :  { %4366 = vst [vmem:[#allocation28_spill] sm:$0xff] %v3868_v43  ;;  %v909_v25 = vadd.f32 %v3305_v60, %v908_v17  ;;  %v2537_v9 = vor.u32 %v2888_v0, %v2534_v19  ;;  %v1345_v17 = vmax.f32 %v3465_v56, 0.0 }
 0x1a1   :  { %v1168_v61 = vadd.f32 %v1167_v59, %v909_v25  ;;  %947 = vmatmul.bf16.gmra.mxu0 %v2517_v54  ;;  %v2887_v54 = vld [vmem:[%s4334_s0 + $0x194] sm:$0xf0]  ;;  %v1048_v19 = vpop.f32.mrf.mxu2 }
 0x1a3   :  { %v1174_v5 = vpop.f32.mrf.mxu1  ;;  %v1369_v27 = vmax.f32 %v1168_v61, 0.0  ;;  %v2525_v61 = vor.u32 %v2887_v54, %v2524_v52  ;;  %v2542_v52 = vld [vmem:[%s4334_s0 + $0x1b8] sm:$0xf0] }
 0x1a5   :  { %v3873_v24 = vmax.f32 %v1344_v20, %v1369_v27  ;;  %v1304_v27 = vpop.f32.mrf.mxu3 }
 0x1a6   :  { %v910_v40 = vpop.f32.mrf.mxu0 }
 0x1a7   :  { %4367 = vst [vmem:[#allocation29_spill] sm:$0xff] %v3873_v24  ;;  %v911_v45 = vadd.f32 %v3305_v60, %v910_v40 }
 0x1a9   :  { %v1170_v59 = vadd.f32 %v1169_v10, %v911_v45  ;;  %v1041_v45 = vadd.f32 %v3305_v60, %v1040_v38  ;;  %v1050_v54 = vpop.f32.mrf.mxu2 }
 0x1ab   :  { %v1177_v20 = vpop.f32.mrf.mxu1  ;;  %v1370_v25 = vmax.f32 %v1170_v59, 0.0  ;;  %v1300_v56 = vadd.f32 %v1299_v1, %v1041_v45 }
 0x1ad   :  { %v3892_v10 = vmax.f32 %v1345_v17, %v1370_v25  ;;  %v1307_v3 = vpop.f32.mrf.mxu3 }
 0x1ae   :  { %2784 = vmatmul.msk.bf16.gmra.mxu1 %vm664_vm1, %v2537_v9  ;;  %v913_v40 = vpop.f32.mrf.mxu0  ;;  %v2890_v9 = vld [vmem:[%s4334_s0 + $0x1b4] sm:$0xf] }
 0x1af   :  { %4368 = vst [vmem:[#allocation30_spill] sm:$0xff] %v3892_v10  ;;  %v914_v0 = vadd.f32 %v3305_v60, %v913_v40  ;;  %v2545_v1 = vor.u32 %v2890_v9, %v2542_v52  ;;  %v1397_v40 = vmax.f32 %v3368_v39, 0.0  ;;  %v1046_v10 = vadd.f32 %v3910_v8, %v1045_v23  ;;  %v2550_v23 = vld [vmem:[%s4334_s0 + $0x1c8] sm:$0xf0] }
 0x1b1   :  { %v1173_v24 = vadd.f32 %v1172_v18, %v914_v0  ;;  %952 = vmatmul.bf16.gmra.mxu0 %v2525_v61  ;;  %v1422_v18 = vmax.f32 %v1300_v56, 0.0  ;;  %v2532_v61 = vld [vmem:[%s4334_s0 + $0x1a0] sm:$0xf]  ;;  %v1347_v0 = vmax.f32 %v3506_v30, 0.0 }
 0x1b3   :  { %v1179_v43 = vpop.f32.mrf.mxu1  ;;  %v1371_v37 = vmax.f32 %v1173_v24, 0.0 }
 0x1b5   :  { %v3898_v59 = vmax.f32 %v1346_v62, %v1371_v37  ;;  %v1044_v62 = vadd.f32 %v3910_v8, %v1043_v14  ;;  %v1472_v37 = vmax.f32 %v1397_v40, %v1422_v18  ;;  %v1348_v18 = vmax.f32 %v3525_v47, 0.0 }
 0x1b6   :  { %v915_v17 = vpop.f32.mrf.mxu0  ;;  %v1049_v47 = vadd.f32 %v3910_v8, %v1048_v19 }
 0x1b7   :  { %4369 = vst [vmem:[#allocation31_spill] sm:$0xff] %v3898_v59  ;;  %v916_v38 = vadd.f32 %v3305_v60, %v915_v17  ;;  %v2889_v60 = vld [vmem:[%s4334_s0 + $0x1a4] sm:$0xf0]  ;;  %v1303_v56 = vadd.f32 %v1302_v48, %v1044_v62  ;;  %v1309_v17 = vpop.f32.mrf.mxu3  ;;  %v1398_v48 = vmax.f32 %v3387_v53, 0.0 }
 0x1b8   :  { %v1308_v19 = vadd.f32 %v1307_v3, %v1049_v47  ;;  %v1400_v3 = vmax.f32 %v3425_v22, 0.0 }
 0x1b9   :  { %v1175_v24 = vadd.f32 %v1174_v5, %v916_v38  ;;  %v2533_v5 = vor.u32 %v2889_v60, %v2532_v61  ;;  %v1423_v59 = vmax.f32 %v1303_v56, 0.0  ;;  %v1305_v61 = vadd.f32 %v1304_v27, %v1046_v10  ;;  %v2540_v56 = vld [vmem:[%s4334_s0 + $0x1b0] sm:$0xf] }
 0x1bb   :  { %v1182_v25 = vpop.f32.mrf.mxu1  ;;  %v1372_v45 = vmax.f32 %v1175_v24, 0.0  ;;  %v1053_v24 = vpop.f32.mrf.mxu2 }
 0x1bd   :  { %v1447_v14 = vmax.f32 %v1347_v0, %v1372_v45  ;;  %v2892_v0 = vld [vmem:[%s4334_s0 + $0x1c4] sm:$0xf] }
 0x1be   :  { %2785 = vmatmul.msk.bf16.gmra.mxu1 %vm664_vm1, %v2545_v1  ;;  %v918_v9 = vpop.f32.mrf.mxu0  ;;  %v1473_v1 = vmax.f32 %v1398_v48, %v1423_v59  ;;  %v2553_v10 = vor.u32 %v2892_v0, %v2550_v23  ;;  %v1350_v0 = vmax.f32 %v3566_v28, 0.0  ;;  %v1054_v28 = vadd.f32 %v3910_v8, %v1053_v24 }
 0x1bf   :  { %v1497_v52 = vmax.f32 %v1447_v14, %v1472_v37  ;;  %v919_v38 = vadd.f32 %v3910_v8, %v918_v9  ;;  %v1312_v53 = vpop.f32.mrf.mxu3  ;;  %v1424_v37 = vmax.f32 %v1305_v61, 0.0  ;;  %v2891_v14 = vld [vmem:[%s4334_s0 + $0x1b4] sm:$0xf0]  ;;  %v1349_v9 = vmax.f32 %v3544_v6, 0.0 }
 0x1c0   :  { %v1425_v61 = vmax.f32 %v1308_v19, 0.0  ;;  %v1351_v19 = vmax.f32 %v3585_v51, 0.0 }
 0x1c1   :  { %1523 = vst.msk [vmem:[#allocation2 + $0x50] sm:$0xff] %vm1512_vm2, %v1497_v52  ;;  %v1178_v39 = vadd.f32 %v1177_v20, %v919_v38  ;;  %957 = vmatmul.bf16.gmra.mxu0 %v2533_v5  ;;  %v1399_v5 = vmax.f32 %v3406_v4, 0.0 }
 0x1c3   :  { %v1184_v30 = vpop.f32.mrf.mxu1  ;;  %v1373_v62 = vmax.f32 %v1178_v39, 0.0  ;;  %v1474_v38 = vmax.f32 %v1399_v5, %v1424_v37  ;;  %v1055_v48 = vpop.f32.mrf.mxu2 }
 0x1c5   :  { %v1448_v60 = vmax.f32 %v1348_v18, %v1373_v62 }
 0x1c6   :  { %v920_v40 = vpop.f32.mrf.mxu0 }
 0x1c7   :  { %v1498_v20 = vmax.f32 %v1448_v60, %v1473_v1  ;;  %v921_v45 = vadd.f32 %v3910_v8, %v920_v40  ;;  %v1051_v60 = vadd.f32 %v3910_v8, %v1050_v54  ;;  %v1314_v6 = vpop.f32.mrf.mxu3  ;;  %v2558_v54 = vld [vmem:[%s4334_s0 + $0x1d8] sm:$0xf0] }
 0x1c9   :  { %1524 = vst.msk [vmem:[#allocation2 + $0x58] sm:$0xff] %vm1512_vm2, %v1498_v20  ;;  %v1180_v27 = vadd.f32 %v1179_v43, %v921_v45  ;;  %v2541_v43 = vor.u32 %v2891_v14, %v2540_v56  ;;  %v1475_v20 = vmax.f32 %v1400_v3, %v1425_v61  ;;  %v1310_v45 = vadd.f32 %v1309_v17, %v1051_v60 }
 0x1ca   :  { %v1056_v3 = vadd.f32 %v3910_v8, %v1055_v48 }
 0x1cb   :  { %v1187_v59 = vpop.f32.mrf.mxu1  ;;  %v1374_v52 = vmax.f32 %v1180_v27, 0.0  ;;  %v2894_v27 = vld [vmem:[%s4334_s0 + $0x1d4] sm:$0xf]  ;;  %v1058_v56 = vpop.f32.mrf.mxu2  ;;  %v1426_v22 = vmax.f32 %v1310_v45, 0.0 }
 0x1cc   :  { %v2561_v14 = vor.u32 %v2894_v27, %v2558_v54 }
 0x1cd   :  { %v1449_v39 = vmax.f32 %v1349_v9, %v1374_v52  ;;  %v2548_v9 = vld [vmem:[%s4334_s0 + $0x1c0] sm:$0xf]  ;;  %v2893_v52 = vld [vmem:[%s4334_s0 + $0x1c4] sm:$0xf0] }
 0x1ce   :  { %2786 = vmatmul.msk.bf16.gmra.mxu1 %vm664_vm1, %v2553_v10  ;;  %v923_v18 = vpop.f32.mrf.mxu0 }
 0x1cf   :  { %v1499_v62 = vmax.f32 %v1449_v39, %v1474_v38  ;;  %v924_v1 = vadd.f32 %v3910_v8, %v923_v18  ;;  %v1401_v38 = vmax.f32 %v3444_v36, 0.0  ;;  %v1313_v18 = vadd.f32 %v1312_v53, %v1054_v28 }
 0x1d0   :  { %v1352_v53 = vmax.f32 %v3604_v15, 0.0  ;;  %v1353_v15 = vmax.f32 %v3623_v33, 0.0  ;;  %v1354_v33 = vmax.f32 %v3642_v49, 0.0  ;;  %v1355_v49 = vmax.f32 %v3661_v35, 0.0 }
 0x1d1   :  { %1525 = vst.msk [vmem:[#allocation2 + $0x60] sm:$0xff] %vm1512_vm2, %v1499_v62  ;;  %v1183_v4 = vadd.f32 %v1182_v25, %v924_v1  ;;  %962 = vmatmul.bf16.gmra.mxu0 %v2541_v43  ;;  %v1317_v43 = vpop.f32.mrf.mxu3  ;;  %v1476_v24 = vmax.f32 %v1401_v38, %v1426_v22  ;;  %v1059_v22 = vadd.f32 %v3910_v8, %v1058_v56  ;;  %v1356_v35 = vmax.f32 %v3679_v58, 0.0 }
 0x1d2   :  { %v1357_v58 = vmax.f32 %v3697_v13, 0.0  ;;  %v1358_v13 = vmax.f32 %v3717_v57, 0.0  ;;  %v1359_v57 = vmax.f32 %v3737_v41, 0.0  ;;  %v1360_v41 = vmax.f32 %v3748_v16, 0.0 }
 0x1d3   :  { %v1189_v40 = vpop.f32.mrf.mxu1  ;;  %v1375_v23 = vmax.f32 %v1183_v4, 0.0  ;;  %v1427_v4 = vmax.f32 %v1313_v18, 0.0  ;;  %v1060_v51 = vpop.f32.mrf.mxu2 }
 0x1d4   :  { %v1061_v56 = vadd.f32 %v3910_v8, %v1060_v51 }
 0x1d5   :  { %v1450_v37 = vmax.f32 %v1350_v0, %v1375_v23  ;;  %v1402_v23 = vmax.f32 %v3463_v55, 0.0  ;;  %v1403_v55 = vmax.f32 %v3482_v7, 0.0  ;;  %v1404_v7 = vmax.f32 %v3504_v29, 0.0 }
 0x1d6   :  { %v925_v47 = vpop.f32.mrf.mxu0  ;;  %v1405_v29 = vmax.f32 %v3523_v46, 0.0  ;;  %v1406_v46 = vmax.f32 %v3542_v2, 0.0  ;;  %v1407_v2 = vmax.f32 %v3564_v26, 0.0  ;;  %v1408_v26 = vmax.f32 %v3583_v50, 0.0 }
 0x1d7   :  { %v1500_v25 = vmax.f32 %v1450_v37, %v1475_v20  ;;  %v926_v10 = vadd.f32 %v3910_v8, %v925_v47  ;;  %v1477_v45 = vmax.f32 %v1402_v23, %v1427_v4  ;;  %v1315_v37 = vadd.f32 %v1314_v6, %v1056_v3 }
 0x1d8   :  { %v1409_v50 = vmax.f32 %v3602_v11, 0.0  ;;  %v1410_v11 = vmax.f32 %v3621_v42, 0.0 }
 0x1d9   :  { %1526 = vst.msk [vmem:[#allocation2 + $0x68] sm:$0xff] %vm1512_vm2, %v1500_v25  ;;  %v1185_v17 = vadd.f32 %v1184_v30, %v926_v10  ;;  %v2549_v30 = vor.u32 %v2893_v52, %v2548_v9  ;;  %v1319_v27 = vpop.f32.mrf.mxu3  ;;  %v1428_v48 = vmax.f32 %v1315_v37, 0.0  ;;  %v1318_v9 = vadd.f32 %v1317_v43, %v1059_v22 }
 0x1da   :  { %v1320_v43 = vadd.f32 %v1319_v27, %v1061_v56 }
 0x1db   :  { %v1192_v5 = vpop.f32.mrf.mxu1  ;;  %v1376_v39 = vmax.f32 %v1185_v17, 0.0  ;;  %v1478_v6 = vmax.f32 %v1403_v55, %v1428_v48  ;;  %v1429_v18 = vmax.f32 %v1318_v9, 0.0 }
 0x1dc   :  { %v1430_v23 = vmax.f32 %v1320_v43, 0.0 }
 0x1dd   :  { %v1451_v62 = vmax.f32 %v1351_v19, %v1376_v39 }
 0x1de   :  { %2787 = vmatmul.msk.bf16.gmra.mxu1 %vm664_vm1, %v2561_v14  ;;  %v928_v1 = vpop.f32.mrf.mxu0  ;;  %v1063_v14 = vpop.f32.mrf.mxu2  ;;  %v1480_v37 = vmax.f32 %v1405_v29, %v1430_v23 }
 0x1df   :  { %v1501_v61 = vmax.f32 %v1451_v62, %v1476_v24  ;;  %v929_v60 = vadd.f32 %v3910_v8, %v928_v1  ;;  %v1479_v1 = vmax.f32 %v1404_v7, %v1429_v18  ;;  %v1064_v51 = vadd.f32 %v3910_v8, %v1063_v14 }
 0x1e1   :  { %1527 = vst.msk [vmem:[#allocation2 + $0x70] sm:$0xff] %vm1512_vm2, %v1501_v61  ;;  %v1188_v36 = vadd.f32 %v1187_v59, %v929_v60  ;;  %967 = vmatmul.bf16.gmra.mxu0 %v2549_v30  ;;  %v1322_v24 = vpop.f32.mrf.mxu3 }
 0x1e3   :  { %v1194_v0 = vpop.f32.mrf.mxu1  ;;  %v1377_v20 = vmax.f32 %v1188_v36, 0.0 }
 0x1e5   :  { %v1452_v47 = vmax.f32 %v1352_v53, %v1377_v20 }
 0x1e6   :  { %v930_v54 = vpop.f32.mrf.mxu0  ;;  %v1065_v60 = vpop.f32.mrf.mxu2 }
 0x1e7   :  { %v1502_v25 = vmax.f32 %v1452_v47, %v1477_v45  ;;  %v931_v10 = vadd.f32 %v3910_v8, %v930_v54  ;;  %v1323_v47 = vadd.f32 %v1322_v24, %v1064_v51 }
 0x1e9   :  { %1528 = vst.msk [vmem:[#allocation2 + $0x78] sm:$0xff] %vm1512_vm2, %v1502_v25  ;;  %v1190_v59 = vadd.f32 %v1189_v40, %v931_v10  ;;  %v1324_v53 = vpop.f32.mrf.mxu3  ;;  %v1431_v22 = vmax.f32 %v1323_v47, 0.0 }
 0x1eb   :  { %v1197_v28 = vpop.f32.mrf.mxu1  ;;  %v1378_v17 = vmax.f32 %v1190_v59, 0.0  ;;  %v1066_v59 = vadd.f32 %v3910_v8, %v1065_v60  ;;  %v1481_v14 = vmax.f32 %v1406_v46, %v1431_v22 }
 0x1ed   :  { %v1453_v52 = vmax.f32 %v1353_v15, %v1378_v17 }
 0x1ee   :  { %v933_v38 = vpop.f32.mrf.mxu0  ;;  %v1068_v48 = vpop.f32.mrf.mxu2 }
 0x1ef   :  { %v1503_v19 = vmax.f32 %v1453_v52, %v1478_v6  ;;  %v934_v39 = vadd.f32 %v3910_v8, %v933_v38  ;;  %v1325_v6 = vadd.f32 %v1324_v53, %v1066_v59  ;;  %v1069_v24 = vadd.f32 %v3910_v8, %v1068_v48 }
 0x1f1   :  { %1529 = vst.msk [vmem:[#allocation2 + $0x80] sm:$0xff] %vm1512_vm2, %v1503_v19  ;;  %v1193_v40 = vadd.f32 %v1192_v5, %v934_v39  ;;  %v1327_v17 = vpop.f32.mrf.mxu3  ;;  %v1432_v39 = vmax.f32 %v1325_v6, 0.0 }
 0x1f3   :  { %v1199_v62 = vpop.f32.mrf.mxu1  ;;  %v1379_v30 = vmax.f32 %v1193_v40, 0.0  ;;  %v1482_v7 = vmax.f32 %v1407_v2, %v1432_v39 }
 0x1f5   :  { %v1454_v61 = vmax.f32 %v1354_v33, %v1379_v30  ;;  %v1328_v33 = vadd.f32 %v1327_v17, %v1069_v24 }
 0x1f6   :  { %v935_v4 = vpop.f32.mrf.mxu0  ;;  %v1070_v18 = vpop.f32.mrf.mxu2 }
 0x1f7   :  { %v1504_v3 = vmax.f32 %v1454_v61, %v1479_v1  ;;  %v936_v36 = vadd.f32 %v3910_v8, %v935_v4  ;;  %v1433_v4 = vmax.f32 %v1328_v33, 0.0 }
 0x1f9   :  { %1530 = vst.msk [vmem:[#allocation2 + $0x88] sm:$0xff] %vm1512_vm2, %v1504_v3  ;;  %v1195_v5 = vadd.f32 %v1194_v0, %v936_v36  ;;  %v1329_v1 = vpop.f32.mrf.mxu3  ;;  %v1071_v3 = vadd.f32 %v3910_v8, %v1070_v18 }
 0x1fb   :  { %v1202_v20 = vpop.f32.mrf.mxu1  ;;  %v1380_v45 = vmax.f32 %v1195_v5, 0.0  ;;  %v1483_v5 = vmax.f32 %v1408_v26, %v1433_v4  ;;  %v1330_v53 = vadd.f32 %v1329_v1, %v1071_v3  ;;  %v1592_v1 = vld [vmem:[%s4337_s3 + $0x28] sm:$0xff]  ;;  %v1412_v4 = vmax.f32 %v3659_v34, 0.0  ;;  %v1618_v34 = vld [vmem:[%s4337_s3 + $0x30] sm:$0xff] }
 0x1fc   :  { %1610 = vmatpush.msra.mxu2 %v1592_v1  ;;  %v1019_v3 = vadd.f32 %v3910_v8, %v3677_v32  ;;  %v1699_v1 = vld [vmem:[%s4337_s3 + $0x60] sm:$0xff] }
 0x1fd   :  { %v1455_v27 = vmax.f32 %v1355_v49, %v1380_v45 }
 0x1fe   :  { %v938_v54 = vpop.f32.mrf.mxu0  ;;  %v1073_v51 = vpop.f32.mrf.mxu2 }
 0x1ff   :  { %v1505_v25 = vmax.f32 %v1455_v27, %v1480_v37  ;;  %v939_v10 = vadd.f32 %v3910_v8, %v938_v54  ;;  %v1434_v27 = vmax.f32 %v1330_v53, 0.0  ;;  %v1074_v54 = vadd.f32 %v3910_v8, %v1073_v51 }
 0x201   :  { %1531 = vst.msk [vmem:[#allocation2 + $0x90] sm:$0xff] %vm1512_vm2, %v1505_v25  ;;  %v1198_v0 = vadd.f32 %v1197_v28, %v939_v10  ;;  %v1332_v47 = vpop.f32.mrf.mxu3  ;;  %v1484_v48 = vmax.f32 %v1409_v50, %v1434_v27  ;;  %v4371_v27 = vld [vmem:[#allocation18_spill] sm:$0xff] }
 0x202   :  { %v1333_v22 = vadd.f32 %v1332_v47, %v1074_v54 }
 0x203   :  { %v1204_v55 = vpop.f32.mrf.mxu1  ;;  %v1381_v15 = vmax.f32 %v1198_v0, 0.0 }
 0x204   :  { %v1435_v17 = vmax.f32 %v1333_v22, 0.0 }
 0x205   :  { %v1456_v9 = vmax.f32 %v1356_v35, %v1381_v15 }
 0x206   :  { %v940_v52 = vpop.f32.mrf.mxu0  ;;  %v1075_v0 = vpop.f32.mrf.mxu2 }
 0x207   :  { %v1506_v38 = vmax.f32 %v1456_v9, %v1481_v14  ;;  %v941_v19 = vadd.f32 %v3910_v8, %v940_v52  ;;  %v1076_v14 = vadd.f32 %v3910_v8, %v1075_v0 }
 0x209   :  { %1532 = vst.msk [vmem:[#allocation2 + $0x98] sm:$0xff] %vm1512_vm2, %v1506_v38  ;;  %v1200_v28 = vadd.f32 %v1199_v62, %v941_v19  ;;  %v1334_v6 = vpop.f32.mrf.mxu3  ;;  %v1485_v38 = vmax.f32 %v1410_v11, %v1435_v17  ;;  %v4374_v17 = vld [vmem:[#allocation20_spill] sm:$0xff]  ;;  %v1672_v11 = vld [vmem:[%s4337_s3 + $0x50] sm:$0xff] }
 0x20a   :  { %v1335_v19 = vadd.f32 %v1334_v6, %v1076_v14  ;;  %v1646_v6 = vld [vmem:[%s4337_s3 + $0x48] sm:$0xff] }
 0x20b   :  { %v1207_v56 = vpop.f32.mrf.mxu1  ;;  %v1382_v40 = vmax.f32 %v1200_v28, 0.0 }
 0x20c   :  { %v1436_v2 = vmax.f32 %v1335_v19, 0.0 }
 0x20d   :  { %v1457_v30 = vmax.f32 %v1357_v58, %v1382_v40 }
 0x20e   :  { %v943_v43 = vpop.f32.mrf.mxu0 }
 0x20f   :  { %v1507_v61 = vmax.f32 %v1457_v30, %v1482_v7  ;;  %v944_v60 = vadd.f32 %v3910_v8, %v943_v43  ;;  %v1361_v7 = vmax.f32 %v3768_v21, 0.0 }
 0x211   :  { %1533 = vst.msk [vmem:[#allocation2 + $0xa0] sm:$0xff] %vm1512_vm2, %v1507_v61  ;;  %v1203_v62 = vadd.f32 %v1202_v20, %v944_v60  ;;  %v1591_v60 = vld [vmem:[%s4337_s3 + $0x20] sm:$0xff] }
 0x212   :  { %1611 = vmatpush.msra.mxu2 %v1591_v60  ;;  %v4378_v60 = vld [vmem:[#allocation13_spill] sm:$0xff] }
 0x213   :  { %v1209_v36 = vpop.f32.mrf.mxu1  ;;  %v1383_v23 = vmax.f32 %v1203_v62, 0.0 }
 0x215   :  { %v1458_v29 = vmax.f32 %v1358_v13, %v1383_v23  ;;  %v1619_v13 = vld [vmem:[%s4337_s3 + $0x38] sm:$0xff]  ;;  %v1278_v23 = vadd.f32 %v3693_v44, %v1019_v3 }
 0x216   :  { %v945_v49 = vpop.f32.mrf.mxu0  ;;  %1637 = vmatpush.msra.mxu3 %v1619_v13 }
 0x217   :  { %v1508_v45 = vmax.f32 %v1458_v29, %v1483_v5  ;;  %v946_v37 = vadd.f32 %v3910_v8, %v945_v49  ;;  %v1413_v29 = vmax.f32 %v1278_v23, 0.0  ;;  %v1021_v49 = vadd.f32 %v3910_v8, %v3705_v31  ;;  %v4381_v23 = vld [vmem:[#allocation26_spill] sm:$0xff] }
 0x218   :  { %1638 = vmatpush.msra.mxu3 %v1618_v34  ;;  %v1727_v34 = vld [vmem:[%s4337_s3 + $0x78] sm:$0xff] }
 0x219   :  { %1534 = vst.msk [vmem:[#allocation2 + $0xa8] sm:$0xff] %vm1512_vm2, %v1508_v45  ;;  %v1205_v20 = vadd.f32 %v1204_v55, %v946_v37 }
 0x21b   :  { %v1212_v25 = vpop.f32.mrf.mxu1  ;;  %v1384_v10 = vmax.f32 %v1205_v20, 0.0 }
 0x21d   :  { %v1459_v59 = vmax.f32 %v1359_v57, %v1384_v10 }
 0x21e   :  { %v948_v46 = vpop.f32.mrf.mxu0 }
 0x21f   :  { %v1509_v35 = vmax.f32 %v1459_v59, %v1484_v48  ;;  %v949_v15 = vadd.f32 %v3910_v8, %v948_v46  ;;  %v4372_v48 = vld [vmem:[#allocation9_spill] sm:$0xff]  ;;  %v1673_v46 = vld [vmem:[%s4337_s3 + $0x58] sm:$0xff] }
 0x220   :  { %v1024_v31 = vadd.f32 %v3910_v8, %v4372_v48 }
 0x221   :  { %1535 = vst.msk [vmem:[#allocation2 + $0xb0] sm:$0xff] %vm1512_vm2, %v1509_v35  ;;  %v1208_v55 = vadd.f32 %v1207_v56, %v949_v15  ;;  %v1411_v56 = vmax.f32 %v3640_v63, 0.0  ;;  %v4373_v35 = vld [vmem:[#allocation10_spill] sm:$0xff] }
 0x222   :  { %v1283_v15 = vadd.f32 %v4373_v35, %v1024_v31 }
 0x223   :  { %v1214_v9 = vpop.f32.mrf.mxu1  ;;  %v1385_v52 = vmax.f32 %v1208_v55, 0.0  ;;  %v1486_v33 = vmax.f32 %v1411_v56, %v1436_v2  ;;  %v4377_v56 = vld [vmem:[#allocation23_spill] sm:$0xff] }
 0x224   :  { %v1415_v19 = vmax.f32 %v1283_v15, 0.0 }
 0x225   :  { %v1460_v39 = vmax.f32 %v1360_v41, %v1385_v52  ;;  %v1645_v52 = vld [vmem:[%s4337_s3 + $0x40] sm:$0xff] }
 0x226   :  { %v950_v24 = vpop.f32.mrf.mxu0 }
 0x227   :  { %v1510_v28 = vmax.f32 %v1460_v39, %v1485_v38  ;;  %v951_v18 = vadd.f32 %v3910_v8, %v950_v24  ;;  %v4375_v39 = vld [vmem:[#allocation11_spill] sm:$0xff] }
 0x228   :  { %v1026_v24 = vadd.f32 %v3910_v8, %v4375_v39 }
 0x229   :  { %1536 = vst.msk [vmem:[#allocation2 + $0xb8] sm:$0xff] %vm1512_vm2, %v1510_v28  ;;  %v1210_v58 = vadd.f32 %v1209_v36, %v951_v18 }
 0x22b   :  { %v1217_v40 = vpop.f32.mrf.mxu1  ;;  %v1386_v42 = vmax.f32 %v1210_v58, 0.0  ;;  %v4376_v58 = vld [vmem:[#allocation12_spill] sm:$0xff] }
 0x22d   :  { %v1461_v16 = vmax.f32 %v1361_v7, %v1386_v42 }
 0x22e   :  { %v953_v30 = vpop.f32.mrf.mxu0 }
 0x22f   :  { %v1511_v43 = vmax.f32 %v1461_v16, %v1486_v33  ;;  %v954_v61 = vadd.f32 %v3910_v8, %v953_v30  ;;  %v1700_v33 = vld [vmem:[%s4337_s3 + $0x68] sm:$0xff] }
 0x231   :  { %1537 = vst.msk [vmem:[#allocation2 + $0xc0] sm:$0xff] %vm1512_vm2, %v1511_v43  ;;  %v1213_v63 = vadd.f32 %v1212_v25, %v954_v61 }
 0x233   :  { %v1219_v21 = vpop.f32.mrf.mxu1  ;;  %v1387_v62 = vmax.f32 %v1213_v63, 0.0  ;;  %v1029_v63 = vadd.f32 %v3910_v8, %v4378_v60 }
 0x235   :  { %v1462_v36 = vmax.f32 %v1387_v62, %v1412_v4  ;;  %v4379_v4 = vld [vmem:[#allocation21_spill] sm:$0xff] }
 0x236   :  { %v955_v26 = vpop.f32.mrf.mxu0  ;;  %v1036_v3 = vadd.f32 %v3910_v8, %v4379_v4 }
 0x237   :  { %v1487_v51 = vmax.f32 %v3788_v12, %v1462_v36  ;;  %v956_v5 = vadd.f32 %v3910_v8, %v955_v26  ;;  %v4370_v12 = vld [vmem:[#allocation8_spill] sm:$0xff]  ;;  %v4380_v26 = vld [vmem:[#allocation14_spill] sm:$0xff] }
 0x238   :  { %v1280_v47 = vadd.f32 %v4370_v12, %v1021_v49  ;;  %v1288_v13 = vadd.f32 %v4380_v26, %v1029_v63  ;;  %v4383_v49 = vld [vmem:[#allocation22_spill] sm:$0xff] }
 0x239   :  { %1513 = vst.msk [vmem:[#allocation2] sm:$0xff] %vm1512_vm2, %v1487_v51  ;;  %v1215_v32 = vadd.f32 %v1214_v9, %v956_v5  ;;  %v1780_v26 = vld [vmem:[%s4337_s3 + $0x90] sm:$0xff] }
 0x23a   :  { %v1414_v10 = vmax.f32 %v1280_v47, 0.0  ;;  %v1417_v47 = vmax.f32 %v1288_v13, 0.0 }
 0x23b   :  { %v1222_v53 = vpop.f32.mrf.mxu1  ;;  %v1388_v45 = vmax.f32 %v1215_v32, 0.0 }
 0x23d   :  { %v1463_v44 = vmax.f32 %v1388_v45, %v1413_v29  ;;  %v1295_v45 = vadd.f32 %v4383_v49, %v1036_v3  ;;  %v4394_v3 = vld [vmem:[#allocation31_spill] sm:$0xff] }
 0x23e   :  { %v958_v37 = vpop.f32.mrf.mxu0 }
 0x23f   :  { %v1488_v54 = vmax.f32 %v4371_v27, %v1463_v44  ;;  %v959_v20 = vadd.f32 %v3910_v8, %v958_v37  ;;  %v1726_v37 = vld [vmem:[%s4337_s3 + $0x70] sm:$0xff] }
 0x240   :  { %v1538_v25 = vld [vmem:[#allocation2] sm:$0x3]  ;;  %v4384_v27 = vld [vmem:[#allocation15_spill] sm:$0xff] }
 0x241   :  { %1514 = vst.msk [vmem:[#allocation2 + $0x8] sm:$0xff] %vm1512_vm2, %v1488_v54  ;;  %v1218_v50 = vadd.f32 %v1217_v40, %v959_v20  ;;  %2809 = vmatmul.msk.f32.vlgmr.msrb.gmra.mxu3 %vm1512_vm2, %v1538_v25  ;;  %v1285_v40 = vadd.f32 %v4376_v58, %v1026_v24  ;;  %v1031_v54 = vadd.f32 %v3910_v8, %v4384_v27  ;;  %v1753_v24 = vld [vmem:[%s4337_s3 + $0x80] sm:$0xff] }
 0x242   :  { %1691 = vmatpush.msrb.mxu3 %v1673_v46  ;;  %v4387_v46 = vld [vmem:[#allocation27_spill] sm:$0xff] }
 0x243   :  { %v1224_v57 = vpop.f32.mrf.mxu1  ;;  %v1389_v22 = vmax.f32 %v1218_v50, 0.0  ;;  %v1416_v61 = vmax.f32 %v1285_v40, 0.0  ;;  %v1420_v50 = vmax.f32 %v1295_v45, 0.0 }
 0x244   :  { %1692 = vmatpush.msrb.mxu3 %v1672_v11  ;;  %v4389_v11 = vld [vmem:[#allocation25_spill] sm:$0xff] }
 0x245   :  { %v1464_v59 = vmax.f32 %v1389_v22, %v1414_v10  ;;  %v4385_v10 = vld [vmem:[#allocation24_spill] sm:$0xff] }
 0x246   :  { %v960_v0 = vpop.f32.mrf.mxu0  ;;  %v1039_v48 = vadd.f32 %v3910_v8, %v4385_v10  ;;  %v1970_v10 = vld [vmem:[%s4337_s3 + $0x108] sm:$0xff] }
 0x247   :  { %v1489_v14 = vmax.f32 %v4374_v17, %v1464_v59  ;;  %v961_v55 = vadd.f32 %v3910_v8, %v960_v0  ;;  %v4386_v59 = vld [vmem:[#allocation16_spill] sm:$0xff] }
 0x248   :  { %v1541_v9 = vld [vmem:[#allocation2 + $0x8] sm:$0x3]  ;;  %v1290_v0 = vadd.f32 %v4386_v59, %v1031_v54  ;;  %v1806_v54 = vld [vmem:[#allocation2 + $0x50] sm:$0x3]  ;;  %v1997_v59 = vld [vmem:[%s4337_s3 + $0x118] sm:$0xff] }
 0x249   :  { %1515 = vst.msk [vmem:[#allocation2 + $0x10] sm:$0xff] %vm1512_vm2, %v1489_v14  ;;  %v1220_v41 = vadd.f32 %v1219_v21, %v961_v55  ;;  %2808 = vmatmul.msk.f32.vlgmr.msrb.gmra.mxu2 %vm1512_vm2, %v1541_v9  ;;  %v1754_v14 = vld [vmem:[%s4337_s3 + $0x88] sm:$0xff]  ;;  %v4388_v55 = vld [vmem:[#allocation7_spill] sm:$0xff] }
 0x24a   :  { %1664 = vmatpush.msrb.mxu2 %v1646_v6  ;;  %v976_v6 = vadd.f32 %v3910_v8, %v4388_v55  ;;  %v2078_v55 = vld [vmem:[%s4337_s3 + $0x148] sm:$0xff] }
 0x24b   :  { %v1227_v38 = vpop.f32.mrf.mxu1  ;;  %v1390_v28 = vmax.f32 %v1220_v41, 0.0  ;;  %v1298_v41 = vadd.f32 %v4389_v11, %v1039_v48  ;;  %v1833_v48 = vld [vmem:[#allocation2 + $0x58] sm:$0x3]  ;;  %v2050_v11 = vld [vmem:[%s4337_s3 + $0x130] sm:$0xff] }
 0x24c   :  { %1665 = vmatpush.msrb.mxu2 %v1645_v52  ;;  %v4390_v52 = vld [vmem:[#allocation30_spill] sm:$0xff] }
 0x24d   :  { %v1465_v18 = vmax.f32 %v1390_v28, %v1415_v19 }
 0x24e   :  { %v963_v2 = vpop.f32.mrf.mxu0 }
 0x24f   :  { %v1490_v7 = vmax.f32 %v4377_v56, %v1465_v18  ;;  %v964_v42 = vadd.f32 %v3910_v8, %v963_v2  ;;  %v1418_v18 = vmax.f32 %v1290_v0, 0.0  ;;  %v4391_v2 = vld [vmem:[#allocation17_spill] sm:$0xff] }
 0x250   :  { %v1590_v16 = vld [vmem:[#allocation2 + $0x10] sm:$0x3]  ;;  %v1034_v58 = vadd.f32 %v3910_v8, %v4391_v2  ;;  %v2024_v0 = vld [vmem:[%s4337_s3 + $0x128] sm:$0xff]  ;;  %v2159_v2 = vld [vmem:[%s4337_s3 + $0x178] sm:$0xff] }
 0x251   :  { %1516 = vst.msk [vmem:[#allocation2 + $0x18] sm:$0xff] %vm1512_vm2, %v1490_v7  ;;  %v1223_v30 = vadd.f32 %v1222_v53, %v964_v42  ;;  %2810 = vmatmul.msk.f32.vlgmr.msra.gmra.mxu2 %vm1512_vm2, %v1590_v16  ;;  %v4382_v53 = vld [vmem:[#allocation6_spill] sm:$0xff]  ;;  %v1421_v7 = vmax.f32 %v1298_v41, 0.0  ;;  %v4392_v16 = vld [vmem:[#allocation19_spill] sm:$0xff]  ;;  %v2077_v41 = vld [vmem:[%s4337_s3 + $0x140] sm:$0xff] }
 0x252   :  { %1718 = vmatpush.msra.mxu2 %v1700_v33  ;;  %v974_v29 = vadd.f32 %v3910_v8, %v4382_v53  ;;  %v1835_v53 = vld [vmem:[%s4337_s3 + $0xb8] sm:$0xff] }
 0x253   :  { %v4077_v43 = vpop.f32.mrf.mxu1  ;;  %v1391_v21 = vmax.f32 %v1223_v30, 0.0  ;;  %v1293_v30 = vadd.f32 %v4392_v16, %v1034_v58  ;;  %v2186_v58 = vld [vmem:[%s4337_s3 + $0x188] sm:$0xff]  ;;  %v2157_v16 = vld [vmem:[#allocation2 + $0xb8] sm:$0x3] }
 0x254   :  { %1719 = vmatpush.msra.mxu2 %v1699_v1  ;;  %v4393_v1 = vld [vmem:[#allocation28_spill] sm:$0xff] }
 0x255   :  { %v1466_v62 = vmax.f32 %v1391_v21, %v1416_v61  ;;  %v1781_v21 = vld [vmem:[%s4337_s3 + $0x98] sm:$0xff]  ;;  %v1419_v13 = vmax.f32 %v1293_v30, 0.0  ;;  %v2184_v30 = vld [vmem:[#allocation2 + $0xc0] sm:$0x3] }
 0x256   :  { %v965_v36 = vpop.f32.mrf.mxu0 }
 0x257   :  { %v1491_v51 = vmax.f32 %v4381_v23, %v1466_v62  ;;  %v966_v5 = vadd.f32 %v3910_v8, %v965_v36 }
 0x258   :  { %v1617_v32 = vld [vmem:[#allocation2 + $0x18] sm:$0x3] }
 0x259   :  { %1517 = vst.msk [vmem:[#allocation2 + $0x20] sm:$0xff] %vm1512_vm2, %v1491_v51  ;;  %v1225_v44 = vadd.f32 %v1224_v57, %v966_v5  ;;  %2811 = vmatmul.msk.f32.vlgmr.msra.gmra.mxu3 %vm1512_vm2, %v1617_v32  ;;  %v4395_v51 = vld [vmem:[#allocation29_spill] sm:$0xff] }
 0x25a   :  { %1745 = vmatpush.msra.mxu3 %v1727_v34  ;;  %v1808_v34 = vld [vmem:[%s4337_s3 + $0xa8] sm:$0xff]  ;;  %v1807_v32 = vld [vmem:[%s4337_s3 + $0xa0] sm:$0xff] }
 0x25b   :  { %v1232_v12 = vpop.f32.mrf.mxu1  ;;  %v1392_v20 = vmax.f32 %v1225_v44, 0.0  ;;  %v1834_v44 = vld [vmem:[%s4337_s3 + $0xb0] sm:$0xff] }
 0x25c   :  { %v1233_v25 = vadd.f32 %v1232_v12, %v974_v29  ;;  %1746 = vmatpush.msra.mxu3 %v1726_v37  ;;  %v1862_v29 = vld [vmem:[%s4337_s3 + $0xc8] sm:$0xff]  ;;  %v1861_v37 = vld [vmem:[%s4337_s3 + $0xc0] sm:$0xff]  ;;  %v1889_v12 = vld [vmem:[%s4337_s3 + $0xd8] sm:$0xff] }
 0x25d   :  { %v1467_v57 = vmax.f32 %v1392_v20, %v1417_v47  ;;  %v1916_v47 = vld [vmem:[%s4337_s3 + $0xe8] sm:$0xff]  ;;  %v1888_v20 = vld [vmem:[%s4337_s3 + $0xd0] sm:$0xff] }
 0x25e   :  { %v1395_v31 = vmax.f32 %v1233_v25, 0.0  ;;  %v968_v22 = vpop.f32.mrf.mxu0  ;;  %v1915_v25 = vld [vmem:[%s4337_s3 + $0xe0] sm:$0xff] }
 0x25f   :  { %v1492_v35 = vmax.f32 %v4387_v46, %v1467_v57  ;;  %v969_v17 = vadd.f32 %v3910_v8, %v968_v22  ;;  %v1860_v57 = vld [vmem:[#allocation2 + $0x60] sm:$0x3]  ;;  %v1887_v46 = vld [vmem:[#allocation2 + $0x68] sm:$0x3] }
 0x260   :  { %v1470_v15 = vmax.f32 %v1395_v31, %v1420_v50  ;;  %v1644_v9 = vld [vmem:[#allocation2 + $0x20] sm:$0x3]  ;;  %v1943_v50 = vld [vmem:[%s4337_s3 + $0xf8] sm:$0xff]  ;;  %v1942_v31 = vld [vmem:[%s4337_s3 + $0xf0] sm:$0xff] }
 0x261   :  { %1518 = vst.msk [vmem:[#allocation2 + $0x28] sm:$0xff] %vm1512_vm2, %v1492_v35  ;;  %v1228_v39 = vadd.f32 %v1227_v38, %v969_v17  ;;  %2812 = vmatmul.msk.f32.vlgmr.msrb.gmra.mxu2 %vm1512_vm2, %v1644_v9  ;;  %v1969_v22 = vld [vmem:[%s4337_s3 + $0x100] sm:$0xff]  ;;  %v1914_v35 = vld [vmem:[#allocation2 + $0x70] sm:$0x3] }
 0x262   :  { %v1495_v19 = vmax.f32 %v4390_v52, %v1470_v15  ;;  %1772 = vmatpush.msrb.mxu2 %v1754_v14  ;;  %v1996_v15 = vld [vmem:[%s4337_s3 + $0x110] sm:$0xff]  ;;  %v2023_v17 = vld [vmem:[%s4337_s3 + $0x120] sm:$0xff]  ;;  %v2051_v14 = vld [vmem:[%s4337_s3 + $0x138] sm:$0xff] }
 0x263   :  { %v1234_v28 = vpop.f32.mrf.mxu1  ;;  %v1393_v40 = vmax.f32 %v1228_v39, 0.0  ;;  %v1968_v9 = vld [vmem:[#allocation2 + $0x80] sm:$0x3]  ;;  %v2105_v52 = vld [vmem:[%s4337_s3 + $0x158] sm:$0xff]  ;;  %v1995_v39 = vld [vmem:[#allocation2 + $0x88] sm:$0x3] }
 0x264   :  { %1521 = vst.msk [vmem:[#allocation2 + $0x40] sm:$0xff] %vm1512_vm2, %v1495_v19  ;;  %v1235_v56 = vadd.f32 %v1234_v28, %v976_v6  ;;  %1773 = vmatpush.msrb.mxu2 %v1753_v24  ;;  %v1941_v6 = vld [vmem:[#allocation2 + $0x78] sm:$0x3]  ;;  %v2132_v19 = vld [vmem:[%s4337_s3 + $0x168] sm:$0xff]  ;;  %v2022_v24 = vld [vmem:[#allocation2 + $0x90] sm:$0x3] }
 0x265   :  { %v1468_v42 = vmax.f32 %v1393_v40, %v1418_v18  ;;  %v2104_v28 = vld [vmem:[%s4337_s3 + $0x150] sm:$0xff]  ;;  %v2131_v18 = vld [vmem:[%s4337_s3 + $0x160] sm:$0xff]  ;;  %v2049_v40 = vld [vmem:[#allocation2 + $0x98] sm:$0x3] }
 0x266   :  { %v1396_v38 = vmax.f32 %v1235_v56, 0.0  ;;  %v970_v33 = vpop.f32.mrf.mxu0  ;;  %v2076_v56 = vld [vmem:[#allocation2 + $0xa0] sm:$0x3] }
 0x267   :  { %v1493_v61 = vmax.f32 %v4393_v1, %v1468_v42  ;;  %v971_v63 = vadd.f32 %v3910_v8, %v970_v33  ;;  %v2185_v42 = vld [vmem:[%s4337_s3 + $0x180] sm:$0xff]  ;;  %v2130_v33 = vld [vmem:[#allocation2 + $0xb0] sm:$0x3] }
 0x268   :  { %v1471_v60 = vmax.f32 %v1396_v38, %v1421_v7  ;;  %v1671_v4 = vld [vmem:[#allocation2 + $0x28] sm:$0x3]  ;;  %v2158_v7 = vld [vmem:[%s4337_s3 + $0x170] sm:$0xff] }
 0x269   :  { %1519 = vst.msk [vmem:[#allocation2 + $0x30] sm:$0xff] %vm1512_vm2, %v1493_v61  ;;  %v1230_v36 = vadd.f32 %v4077_v43, %v971_v63  ;;  %2813 = vmatmul.msk.f32.vlgmr.msrb.gmra.mxu3 %vm1512_vm2, %v1671_v4  ;;  %v2103_v38 = vld [vmem:[#allocation2 + $0xa8] sm:$0x3] }
 0x26a   :  { %v1496_v62 = vmax.f32 %v4394_v3, %v1471_v60  ;;  %1799 = vmatpush.msrb.mxu3 %v1781_v21 }
 0x26b   :  { %v1394_v8 = vmax.f32 %v1230_v36, 0.0  ;;  %v1752_v45 = vld [vmem:[#allocation2 + $0x40] sm:$0x3] }
 0x26c   :  { %1522 = vst.msk [vmem:[#allocation2 + $0x48] sm:$0xff] %vm1512_vm2, %v1496_v62  ;;  %1800 = vmatpush.msrb.mxu3 %v1780_v26 }
 0x26d   :  { %v1469_v23 = vmax.f32 %v1394_v8, %v1419_v13 }
 0x26f   :  { %v1494_v5 = vmax.f32 %v4395_v51, %v1469_v23 }
 0x270   :  { %v1698_v43 = vld [vmem:[#allocation2 + $0x30] sm:$0x3] }
 0x271   :  { %1520 = vst.msk [vmem:[#allocation2 + $0x38] sm:$0xff] %vm1512_vm2, %v1494_v5  ;;  %2814 = vmatmul.msk.f32.vlgmr.msra.gmra.mxu2 %vm1512_vm2, %v1698_v43  ;;  %v2230_v43 = vld [vmem:[%s4339_s5 + $0x68] sm:$0xff] }
 0x272   :  { %1826 = vmatpush.msra.mxu2 %v1808_v34  ;;  %v2231_v34 = vld [vmem:[%s4339_s5 + $0x70] sm:$0xff] }
 0x273   :  { %v1779_v27 = vld [vmem:[#allocation2 + $0x48] sm:$0x3] }
 0x274   :  { %1827 = vmatpush.msra.mxu2 %v1807_v32 }
 0x278   :  { %v1725_v49 = vld [vmem:[#allocation2 + $0x38] sm:$0x3] }
 0x279   :  { %2815 = vmatmul.msk.f32.vlgmr.msra.gmra.mxu3 %vm1512_vm2, %v1725_v49  ;;  %2816 = vmatmul.msk.f32.vlgmr.msrb.gmra.mxu2 %vm1512_vm2, %v1752_v45  ;;  %v2229_v45 = vld [vmem:[%s4339_s5 + $0x60] sm:$0xff] }
 0x27a   :  { %1853 = vmatpush.msra.mxu3 %v1835_v53  ;;  %1880 = vmatpush.msrb.mxu2 %v1862_v29 }
 0x27c   :  { %1854 = vmatpush.msra.mxu3 %v1834_v44  ;;  %1881 = vmatpush.msrb.mxu2 %v1861_v37  ;;  %v2228_v37 = vld [vmem:[%s4339_s5 + $0x58] sm:$0xff] }
 0x281   :  { %2817 = vmatmul.msk.f32.vlgmr.msrb.gmra.mxu3 %vm1512_vm2, %v1779_v27  ;;  %2818 = vmatmul.msk.f32.vlgmr.msra.gmra.mxu2 %vm1512_vm2, %v1806_v54 }
 0x282   :  { %1907 = vmatpush.msrb.mxu3 %v1889_v12  ;;  %1934 = vmatpush.msra.mxu2 %v1916_v47  ;;  %v2227_v12 = vld [vmem:[%s4339_s5 + $0x50] sm:$0xff]  ;;  %v2226_v47 = vld [vmem:[%s4339_s5 + $0x48] sm:$0xff] }
 0x284   :  { %1908 = vmatpush.msrb.mxu3 %v1888_v20  ;;  %1935 = vmatpush.msra.mxu2 %v1915_v25 }
 0x289   :  { %2819 = vmatmul.msk.f32.vlgmr.msra.gmra.mxu3 %vm1512_vm2, %v1833_v48  ;;  %2820 = vmatmul.msk.f32.vlgmr.msrb.gmra.mxu2 %vm1512_vm2, %v1860_v57  ;;  %v2223_v57 = vld [vmem:[%s4339_s5 + $0x30] sm:$0xff] }
 0x28a   :  { %1961 = vmatpush.msra.mxu3 %v1943_v50  ;;  %1988 = vmatpush.msrb.mxu2 %v1970_v10  ;;  %v2225_v50 = vld [vmem:[%s4339_s5 + $0x40] sm:$0xff]  ;;  %v2224_v10 = vld [vmem:[%s4339_s5 + $0x38] sm:$0xff] }
 0x28c   :  { %1962 = vmatpush.msra.mxu3 %v1942_v31  ;;  %1989 = vmatpush.msrb.mxu2 %v1969_v22  ;;  %v2222_v31 = vld [vmem:[%s4339_s5 + $0x28] sm:$0xff] }
 0x291   :  { %2821 = vmatmul.msk.f32.vlgmr.msrb.gmra.mxu3 %vm1512_vm2, %v1887_v46  ;;  %2822 = vmatmul.msk.f32.vlgmr.msra.gmra.mxu2 %vm1512_vm2, %v1914_v35  ;;  %v2221_v46 = vld [vmem:[%s4339_s5 + $0x20] sm:$0xff] }
 0x292   :  { %2015 = vmatpush.msrb.mxu3 %v1997_v59  ;;  %2042 = vmatpush.msra.mxu2 %v2024_v0 }
 0x294   :  { %2016 = vmatpush.msrb.mxu3 %v1996_v15  ;;  %2043 = vmatpush.msra.mxu2 %v2023_v17  ;;  %v2220_v15 = vld [vmem:[%s4339_s5 + $0x18] sm:$0xff] }
 0x299   :  { %2823 = vmatmul.msk.f32.vlgmr.msra.gmra.mxu3 %vm1512_vm2, %v1941_v6  ;;  %2824 = vmatmul.msk.f32.vlgmr.msrb.gmra.mxu2 %vm1512_vm2, %v1968_v9  ;;  %v2217_v9 = vld [vmem:[%s4339_s5] sm:$0xff] }
 0x29a   :  { %2069 = vmatpush.msra.mxu3 %v2051_v14  ;;  %2096 = vmatpush.msrb.mxu2 %v2078_v55  ;;  %v2219_v14 = vld [vmem:[%s4339_s5 + $0x10] sm:$0xff]  ;;  %v2218_v55 = vld [vmem:[%s4339_s5 + $0x8] sm:$0xff] }
 0x29c   :  { %2070 = vmatpush.msra.mxu3 %v2050_v11  ;;  %2097 = vmatpush.msrb.mxu2 %v2077_v41 }
 0x2a1   :  { %2825 = vmatmul.msk.f32.vlgmr.msrb.gmra.mxu3 %vm1512_vm2, %v1995_v39  ;;  %2826 = vmatmul.msk.f32.vlgmr.msra.gmra.mxu2 %vm1512_vm2, %v2022_v24  ;;  %v2270_v39 = vld [vmem:[%s4341_s7 + $0x48] sm:$0xff]  ;;  %v2269_v24 = vld [vmem:[%s4341_s7 + $0x40] sm:$0xff] }
 0x2a2   :  { %2123 = vmatpush.msrb.mxu3 %v2105_v52  ;;  %2150 = vmatpush.msra.mxu2 %v2132_v19  ;;  %v2271_v19 = vld [vmem:[%s4341_s7 + $0x50] sm:$0xf] }
 0x2a4   :  { %2124 = vmatpush.msrb.mxu3 %v2104_v28  ;;  %2151 = vmatpush.msra.mxu2 %v2131_v18  ;;  %v2268_v18 = vld [vmem:[%s4341_s7 + $0x38] sm:$0xff] }
 0x2a9   :  { %2827 = vmatmul.msk.f32.vlgmr.msra.gmra.mxu3 %vm1512_vm2, %v2049_v40  ;;  %2828 = vmatmul.msk.f32.vlgmr.msrb.gmra.mxu2 %vm1512_vm2, %v2076_v56 }
 0x2aa   :  { %2177 = vmatpush.msra.mxu3 %v2159_v2  ;;  %2204 = vmatpush.msrb.mxu2 %v2186_v58  ;;  %v2267_v58 = vld [vmem:[%s4341_s7 + $0x30] sm:$0xff] }
 0x2ac   :  { %2178 = vmatpush.msra.mxu3 %v2158_v7  ;;  %2205 = vmatpush.msrb.mxu2 %v2185_v42  ;;  %v2266_v7 = vld [vmem:[%s4341_s7 + $0x28] sm:$0xff] }
 0x2b1   :  { %2829 = vmatmul.msk.f32.vlgmr.msrb.gmra.mxu3 %vm1512_vm2, %v2103_v38  ;;  %2830 = vmatmul.msk.f32.vlgmr.msra.gmra.mxu2 %vm1512_vm2, %v2130_v33  ;;  %v2265_v38 = vld [vmem:[%s4341_s7 + $0x20] sm:$0xff] }
 0x2b2   :  { %2241 = vmatpush.msrb.mxu3 %v2231_v34  ;;  %2834 = vmatpush.msk.msra.mxu2 %vm2280_vm3, %v2271_v19 }
 0x2b4   :  { %2242 = vmatpush.msrb.mxu3 %v2230_v43  ;;  %2290 = vmatpush.msra.mxu2 %v2270_v39 }
 0x2b6   :  { %2243 = vmatpush.msrb.mxu3 %v2229_v45  ;;  %2291 = vmatpush.msra.mxu2 %v2269_v24 }
 0x2b8   :  { %2244 = vmatpush.msrb.mxu3 %v2228_v37  ;;  %2292 = vmatpush.msra.mxu2 %v2268_v18 }
 0x2b9   :  { %2831 = vmatmul.msk.f32.vlgmr.msra.gmra.mxu3 %vm1512_vm2, %v2157_v16  ;;  %2832 = vmatmul.msk.f32.vlgmr.msrb.gmra.mxu2 %vm1512_vm2, %v2184_v30  ;;  %v2264_v16 = vld [vmem:[%s4341_s7 + $0x18] sm:$0xff] }
 0x2ba   :  { %2245 = vmatpush.msrb.mxu3 %v2227_v12  ;;  %2293 = vmatpush.msra.mxu2 %v2267_v58 }
 0x2bc   :  { %2246 = vmatpush.msrb.mxu3 %v2226_v47  ;;  %2294 = vmatpush.msra.mxu2 %v2266_v7 }
 0x2be   :  { %2247 = vmatpush.msrb.mxu3 %v2225_v50  ;;  %2295 = vmatpush.msra.mxu2 %v2265_v38 }
 0x2c0   :  { %2248 = vmatpush.msrb.mxu3 %v2224_v10  ;;  %2296 = vmatpush.msra.mxu2 %v2264_v16 }
 0x2c2   :  { %2249 = vmatpush.msrb.mxu3 %v2223_v57 }
 0x2c4   :  { %v1587_v61 = vpop.f32.mrf.mxu3  ;;  %2250 = vmatpush.msrb.mxu3 %v2222_v31 }
 0x2c6   :  { %2251 = vmatpush.msrb.mxu3 %v2221_v46 }
 0x2c8   :  { %2252 = vmatpush.msrb.mxu3 %v2220_v15 }
 0x2ca   :  { %2253 = vmatpush.msrb.mxu3 %v2219_v14 }
 0x2cc   :  { %v1564_v1 = vpop.f32.mrf.mxu2  ;;  %2254 = vmatpush.msrb.mxu3 %v2218_v55 }
 0x2cd   :  { %v1588_v26 = vadd.f32 %v1587_v61, %v1564_v1 }
 0x2ce   :  { %2255 = vmatpush.msrb.mxu3 %v2217_v9 }
 0x2d4   :  { %v1613_v60 = vpop.f32.mrf.mxu2 }
 0x2d5   :  { %v1616_v13 = vadd.f32 %v1613_v60, %v1588_v26 }
 0x2dc   :  { %v1640_v63 = vpop.f32.mrf.mxu3 }
 0x2dd   :  { %v1643_v51 = vadd.f32 %v1640_v63, %v1616_v13 }
 0x2e4   :  { %v1667_v21 = vpop.f32.mrf.mxu2 }
 0x2e5   :  { %v1670_v5 = vadd.f32 %v1667_v21, %v1643_v51  ;;  %v2261_v51 = vld [vmem:[%s4341_s7] sm:$0xff] }
 0x2ec   :  { %v1694_v4 = vpop.f32.mrf.mxu3 }
 0x2ed   :  { %v1697_v32 = vadd.f32 %v1694_v4, %v1670_v5  ;;  %v2958_v5 = vld [vmem:[%s4340_s6] ss:$0 sm:$0xff] }
 0x2f4   :  { %v1721_v3 = vpop.f32.mrf.mxu2 }
 0x2f5   :  { %v1724_v53 = vadd.f32 %v1721_v3, %v1697_v32  ;;  %v2957_v3 = vld [vmem:[%s4338_s4] ss:$0 sm:$0xff] }
 0x2fc   :  { %v1748_v62 = vpop.f32.mrf.mxu3  ;;  %v1775_v36 = vpop.f32.mrf.mxu2 }
 0x2fd   :  { %v1751_v44 = vadd.f32 %v1748_v62, %v1724_v53  ;;  %v2959_v53 = vld [vmem:[%s4342_s8] ss:$0 sm:$0xff] }
 0x2ff   :  { %v1778_v27 = vadd.f32 %v1775_v36, %v1751_v44 }
 0x304   :  { %v1802_v8 = vpop.f32.mrf.mxu3  ;;  %v1829_v23 = vpop.f32.mrf.mxu2 }
 0x305   :  { %v1805_v54 = vadd.f32 %v1802_v8, %v1778_v27  ;;  %v2263_v8 = vld [vmem:[%s4341_s7 + $0x10] sm:$0xff] }
 0x306   :  { %2297 = vmatpush.msra.mxu2 %v2263_v8 }
 0x307   :  { %v1832_v48 = vadd.f32 %v1829_v23, %v1805_v54  ;;  %v2262_v23 = vld [vmem:[%s4341_s7 + $0x8] sm:$0xff]  ;;  %s2313_s7 = sshll.u32 %s4343_s9, 4  ;;  %s2314_s7 = int_to_ptr.hbm [resolvable:$true] %s2313_s7 }
 0x308   :  { %2298 = vmatpush.msra.mxu2 %v2262_v23 }
 0x30a   :  { %2299 = vmatpush.msra.mxu2 %v2261_v51 }
 0x30c   :  { %v1856_v29 = vpop.f32.mrf.mxu3  ;;  %v1883_v49 = vpop.f32.mrf.mxu2 }
 0x30d   :  { %v1859_v22 = vadd.f32 %v1856_v29, %v1832_v48 }
 0x30f   :  { %v1886_v35 = vadd.f32 %v1883_v49, %v1859_v22 }
 0x314   :  { %v1910_v20 = vpop.f32.mrf.mxu3  ;;  %v1937_v25 = vpop.f32.mrf.mxu2 }
 0x315   :  { %v1913_v17 = vadd.f32 %v1910_v20, %v1886_v35 }
 0x317   :  { %v1940_v6 = vadd.f32 %v1937_v25, %v1913_v17 }
 0x31c   :  { %v1964_v59 = vpop.f32.mrf.mxu3  ;;  %v1991_v0 = vpop.f32.mrf.mxu2 }
 0x31d   :  { %v1967_v52 = vadd.f32 %v1964_v59, %v1940_v6 }
 0x31f   :  { %v1994_v28 = vadd.f32 %v1991_v0, %v1967_v52 }
 0x324   :  { %v2018_v11 = vpop.f32.mrf.mxu3  ;;  %v2045_v41 = vpop.f32.mrf.mxu2 }
 0x325   :  { %v2021_v2 = vadd.f32 %v2018_v11, %v1994_v28 }
 0x327   :  { %v2048_v42 = vadd.f32 %v2045_v41, %v2021_v2 }
 0x32c   :  { %v2072_v40 = vpop.f32.mrf.mxu3  ;;  %v2099_v56 = vpop.f32.mrf.mxu2 }
 0x32d   :  { %v2075_v33 = vadd.f32 %v2072_v40, %v2048_v42 }
 0x32f   :  { %v2102_v61 = vadd.f32 %v2099_v56, %v2075_v33 }
 0x334   :  { %v2126_v30 = vpop.f32.mrf.mxu3  ;;  %v2153_v1 = vpop.f32.mrf.mxu2 }
 0x335   :  { %v2129_v60 = vadd.f32 %v2126_v30, %v2102_v61 }
 0x337   :  { %v2156_v63 = vadd.f32 %v2153_v1, %v2129_v60 }
 0x33c   :  { %v2180_v21 = vpop.f32.mrf.mxu3  ;;  %v2207_v62 = vpop.f32.mrf.mxu2 }
 0x33d   :  { %v2183_v4 = vadd.f32 %v2180_v21, %v2156_v63 }
 0x33f   :  { %v2210_v36 = vadd.f32 %v2207_v62, %v2183_v4 }
 0x341   :  { %v2215_v26 = vadd.f32 %v2957_v3, %v2210_v36 }
 0x343   :  { %v2216_v13 = vmax.f32 %v2215_v26, 0.0 }
 0x345   :  { %2833 = vmatmul.msk.f32.vlgmr.msrb.gmra.mxu3 %vm2236_vm4, %v2216_v13 }
 0x3c8   :  { %v2257_v34 = vpop.f32.mrf.mxu3 }
 0x3c9   :  { %v2258_v43 = vadd.f32 %v2958_v5, %v2257_v34 }
 0x3cb   :  { %v2260_v32 = vmax.f32 %v2258_v43, 0.0 }
 0x3cd   :  { %2835 = vmatmul.msk.f32.vlgmr.msra.gmra.mxu2 %vm2276_vm5, %v2260_v32 }
 0x450   :  { %v2301_v29 = vpop.f32.mrf.mxu2 }
 0x451   :  { %v2302_v49 = vadd.f32 %v2959_v53, %v2301_v29 }
 0x453   :  { %2305 = vst.msk [vmem:[#allocation3] sm:$0x3] %vm2304_vm6, %v2302_v49 }
 0x454   :  { %2316 = dma.vmem_to_hbm [thread:$0]  %s2312_s24, 32, %s2314_s7, [#allocation4]  }
 0x455   :  { %2985 = dma.done.wait [#allocation4], 32  }
 0x456   :  { %2986 = vsyncadd [#allocation4], 4294967264 }
 0x457   :  { %2321 = vsyncpa [#allocation4], 1 }

</bundles_post_ra>
